<compile_context>
chip_gen: v5e
topology: v5e:2x2
jax: 0.10.0
libtpu: 0.0.40
codegen_flags: <defaults>
</compile_context>

<pallas_src>
import functools

import jax
import jax.numpy as jnp
from jax.experimental import pallas as pl
from jax.experimental.pallas import tpu as pltpu


def _safety_nn_kernel(x_ref, w1_ref, b1_ref, w2f_ref, b2_ref,
                      w3_ref, b3_ref, w4_ref, b4_ref, pool_ref, o_ref,
                      *, seq_len: int, ksize: int, l_pad: int):
    """One group of TB batch elements per grid step.

    x_ref   : VMEM (1, 1, TB*l_pad) f32   TB samples concatenated on the lane axis
    w1_ref  : VMEM (K, H, 1)        f32   conv1 weight, tap-major
    b1_ref  : VMEM (H, 1)           f32   conv1 bias
    w2f_ref : VMEM (H, K*H)         f32   conv2 weight, taps fused: [o, k*H + i] = W2[o,i,k]
    b2_ref  : VMEM (H, 1)           f32   conv2 bias
    w3_ref  : VMEM (FC, H)          f32   fc1 weight
    b3_ref  : VMEM (FC, 1)          f32   fc1 bias
    w4_ref  : VMEM (OUT, FC)        f32   fc2 weight
    b4_ref  : VMEM (OUT, 1)         f32   fc2 bias
    pool_ref: VMEM (TB*l_pad, TB)   f32   block-diagonal 1/seq_len pooling matrix
    o_ref   : VMEM (1, OUT, TB)     f32   logits for the TB samples of this group
    """
    l_total = x_ref.shape[-1]                   # TB * l_pad
    hidden = b1_ref.shape[0]
    pad = ksize // 2

    lane = jax.lax.broadcasted_iota(jnp.int32, (1, l_total), 1)
    pos = lane % l_pad                          # position within each sample's lane slot
    valid = pos < seq_len                       # true (un-padded) sequence positions

    # ---- torch.nan_to_num(x, nan=0.0) (also clamps +/-inf to finite max/min, like torch) ----
    x = x_ref[0]                                # (1, TB*l_pad)
    x = jnp.where(jnp.isnan(x), 0.0, x)
    fmax = float(jnp.finfo(jnp.float32).max)
    x = jnp.clip(x, -fmax, fmax)
    # The wrapper pad lanes are exact zeros, so no re-mask of x is needed here.
    # Note: the torch forward also computes `mask = (x != padding_value).all(dim=1)` but
    # never uses it, so it is omitted (no effect on the output).

    def shifted(v, offset):
        # out[:, l] = v[:, l + offset] *within the same sample slot*, zero outside.
        # pltpu.roll uses the XLU slot, idle while the VPU/MXU do the conv work.
        if offset == 0:
            return v
        r = pltpu.roll(v, shift=(-offset) % l_total, axis=1)
        if offset > 0:
            return jnp.where(pos >= l_pad - offset, 0.0, r)
        return jnp.where(pos < -offset, 0.0, r)

    # ---- conv1 (1 -> H channels): per-tap broadcast FMA on the VPU ----
    acc1 = jnp.broadcast_to(b1_ref[...], (hidden, l_total))
    for k in range(ksize):
        acc1 = acc1 + w1_ref[k] * shifted(x, k - pad)          # (H,1)*(1,L) -> (H,L)
    h1 = jnp.where(valid, jnp.maximum(acc1, 0.0), 0.0)         # ReLU + zero "same" padding

    # ---- conv2 (H -> H channels): all taps fused into one MXU matmul ----
    # stacked[k*H + i, l] = h1[i, l + k - pad]  ->  (K*H, TB*l_pad)
    stacked = jnp.concatenate([shifted(h1, k - pad) for k in range(ksize)], axis=0)
    acc2 = jnp.dot(w2f_ref[...], stacked,
                   preferred_element_type=jnp.float32) + b2_ref[...]
    h2 = jnp.where(valid, jnp.maximum(acc2, 0.0), 0.0)

    # ---- AdaptiveAvgPool1d(1): per-sample mean via block-diagonal 1/seq_len matmul ----
    pooled = jnp.dot(h2, pool_ref[...], preferred_element_type=jnp.float32)    # (H, TB)

    # ---- fc1 + ReLU, fc2: small MXU matmuls over the TB batch columns ----
    z1 = jnp.maximum(
        jnp.dot(w3_ref[...], pooled, preferred_element_type=jnp.float32) + b3_ref[...],
        0.0)                                                                   # (FC, TB)
    z2 = jnp.dot(w4_ref[...], z1,
                 preferred_element_type=jnp.float32) + b4_ref[...]             # (OUT, TB)

    o_ref[0] = z2.astype(o_ref.dtype)


def _full_spec(arr):
    """Whole-array VMEM block with a constant index_map (kept resident across the grid)."""
    n = arr.ndim
    return pl.BlockSpec(arr.shape, lambda g, _n=n: (0,) * _n)


def safety_nn_forward(x, params, *, tb=8):
    """Pallas TPU forward of SafetyNN.  x: (B, 1, L) or (B, L) -> (B, output_dim)."""
    if x.ndim == 2:
        x = x[:, None, :]
    B, C, L = x.shape
    assert C == 1, "SafetyNN.conv1 expects a single input channel"

    w1, b1 = params["conv1_w"], params["conv1_b"]     # (H,1,K), (H,)
    w2, b2 = params["conv2_w"], params["conv2_b"]     # (H,H,K), (H,)
    w3, b3 = params["fc1_w"], params["fc1_b"]         # (FC,H), (FC,)
    w4, b4 = params["fc2_w"], params["fc2_b"]         # (OUT,FC), (OUT,)

    hidden, _, ksize = w1.shape
    fc_dim, out_dim = w3.shape[0], w4.shape[0]
    # Even kernel_size would change the output length under padding=k//2 in PyTorch.
    assert ksize % 2 == 1, "only odd kernel_size is supported (conv 'same' length)"

    # Lane-align each sample (zeros), then concatenate TB samples per grid step along the
    # lane axis.  The conv halo is handled in-kernel with roll + (lane % l_pad) masks, so
    # no halo copy and no per-sample grid step are ever materialized.
    l_pad = pl.cdiv(L, 128) * 128
    tb = max(1, min(tb, B))
    b_pad = pl.cdiv(B, tb) * tb
    n_groups = b_pad // tb
    l_total = tb * l_pad

    xf = x.astype(jnp.float32)
    xf = jnp.pad(xf, ((0, b_pad - B), (0, 0), (0, l_pad - L)))
    xg = xf.reshape(n_groups, 1, l_total)              # free row-major reshape

    # One-time, tiny parameter re-layouts into TPU-friendly shapes.
    w1c = jnp.transpose(w1[:, 0, :], (1, 0)).reshape(ksize, hidden, 1).astype(jnp.float32)
    b1c = b1.reshape(hidden, 1).astype(jnp.float32)
    # Fused conv2 weight: (O, I, K) -> (O, K, I) -> (O, K*I), matching the stacked layout.
    w2f = jnp.transpose(w2, (0, 2, 1)).reshape(hidden, ksize * hidden).astype(jnp.float32)
    b2c = b2.reshape(hidden, 1).astype(jnp.float32)
    w3r = w3.astype(jnp.float32)                                     # (FC, H)
    b3c = b3.reshape(fc_dim, 1).astype(jnp.float32)
    w4r = w4.astype(jnp.float32)                                     # (OUT, FC)
    b4c = b4.reshape(out_dim, 1).astype(jnp.float32)

    # Block-diagonal pooling matrix: pool[l, t] = 1/seq_len if l // l_pad == t else 0.
    slot = jnp.arange(l_total, dtype=jnp.int32) // l_pad
    cols = jnp.arange(tb, dtype=jnp.int32)
    pool = jnp.where(slot[:, None] == cols[None, :], 1.0 / L, 0.0).astype(jnp.float32)

    kernel = functools.partial(_safety_nn_kernel, seq_len=L, ksize=ksize, l_pad=l_pad)

    flops = int(b_pad * (2 * hidden * ksize * L
                         + 2 * hidden * hidden * ksize * L
                         + 2 * hidden * l_pad
                         + 2 * fc_dim * hidden + 2 * out_dim * fc_dim))
    bytes_accessed = int(4 * (xg.size + w1c.size + b1c.size + w2f.size + b2c.size
                              + w3r.size + b3c.size + w4r.size + b4c.size + pool.size
                              + b_pad * out_dim))

    out = pl.pallas_call(
        kernel,
        out_shape=jax.ShapeDtypeStruct((n_groups, out_dim, tb), jnp.float32),
        grid=(n_groups,),
        in_specs=[
            pl.BlockSpec((1, 1, l_total), lambda g: (g, 0, 0)),   # TB samples per step
            _full_spec(w1c), _full_spec(b1c),
            _full_spec(w2f), _full_spec(b2c),
            _full_spec(w3r), _full_spec(b3c),
            _full_spec(w4r), _full_spec(b4c),
            _full_spec(pool),
        ],
        out_specs=pl.BlockSpec((1, out_dim, tb), lambda g: (g, 0, 0)),
        compiler_params=pltpu.CompilerParams(
            dimension_semantics=("parallel",),      # shard grouped batch across TCs on v7x
        ),
        cost_estimate=pl.CostEstimate(flops=flops, transcendentals=0,
                                      bytes_accessed=bytes_accessed),
    )(xg, w1c, b1c, w2f, b2c, w3r, b3c, w4r, b4c, pool)

    # (n_groups, OUT, TB) -> (b_pad, OUT) -> (B, OUT)
    out = jnp.transpose(out, (0, 2, 1)).reshape(b_pad, out_dim)
    return out[:B]


def _reference_forward(x, params):
    """Plain-JAX mirror of the PyTorch SafetyNN.forward (for verification)."""
    if x.ndim == 2:
        x = x[:, None, :]
    x = jnp.nan_to_num(x.astype(jnp.float32), nan=0.0)
    k = params["conv1_w"].shape[-1]
    pad = [(k // 2, k // 2)]
    h = jax.lax.conv_general_dilated(x, params["conv1_w"].astype(jnp.float32),
                                     (1,), pad, dimension_numbers=("NCH", "OIH", "NCH"))
    h = jnp.maximum(h + params["conv1_b"][None, :, None], 0.0)
    h = jax.lax.conv_general_dilated(h, params["conv2_w"].astype(jnp.float32),
                                     (1,), pad, dimension_numbers=("NCH", "OIH", "NCH"))
    h = jnp.maximum(h + params["conv2_b"][None, :, None], 0.0)
    p = jnp.mean(h, axis=-1)                                   # AdaptiveAvgPool1d(1) + squeeze
    z = jnp.maximum(p @ params["fc1_w"].T + params["fc1_b"], 0.0)
    return z @ params["fc2_w"].T + params["fc2_b"]


if __name__ == "__main__":
    B, L = 10, 74                      # input_dim = 74 time steps, 1 input channel
    HIDDEN, FC, OUT, K = 64, 64, 4, 3
    PADDING_VALUE = 1_000_000.0

    key = jax.random.PRNGKey(0)
    ks = jax.random.split(key, 9)
    params = {
        "conv1_w": jax.random.normal(ks[0], (HIDDEN, 1, K), jnp.float32) * 0.3,
        "conv1_b": jax.random.normal(ks[1], (HIDDEN,), jnp.float32) * 0.1,
        "conv2_w": jax.random.normal(ks[2], (HIDDEN, HIDDEN, K), jnp.float32) * 0.05,
        "conv2_b": jax.random.normal(ks[3], (HIDDEN,), jnp.float32) * 0.1,
        "fc1_w":   jax.random.normal(ks[4], (FC, HIDDEN), jnp.float32) * 0.1,
        "fc1_b":   jax.random.normal(ks[5], (FC,), jnp.float32) * 0.1,
        "fc2_w":   jax.random.normal(ks[6], (OUT, FC), jnp.float32) * 0.1,
        "fc2_b":   jax.random.normal(ks[7], (OUT,), jnp.float32) * 0.1,
    }

    x = jax.random.normal(ks[8], (B, 1, L), jnp.float32)
    x = x.at[0, 0, 5].set(jnp.nan)               # exercise nan_to_num
    x = x.at[1, 0, 11].set(jnp.nan)
    x = x.at[1, 0, 20].set(PADDING_VALUE)        # mask is dead code in the torch forward

    out = jax.block_until_ready(safety_nn_forward(x, params, tb=8))
    ref = _reference_forward(x, params)

    assert out.shape == (B, OUT), out.shape
    assert bool(jnp.allclose(out, ref, atol=1e-3, rtol=1e-3)), (out, ref)
    print("KERNEL_OK")
</pallas_src>

<mosaic_0001>
module attributes {stable_mosaic.version = 11 : i64} {
  func.func @_safety_nn_kernel(%arg0: i32, %arg1: memref<1x1x1024xf32, #tpu.memory_space<vmem>>, %arg2: memref<3x64x1xf32, #tpu.memory_space<vmem>>, %arg3: memref<64x1xf32, #tpu.memory_space<vmem>>, %arg4: memref<64x192xf32, #tpu.memory_space<vmem>>, %arg5: memref<64x1xf32, #tpu.memory_space<vmem>>, %arg6: memref<64x64xf32, #tpu.memory_space<vmem>>, %arg7: memref<64x1xf32, #tpu.memory_space<vmem>>, %arg8: memref<4x64xf32, #tpu.memory_space<vmem>>, %arg9: memref<4x1xf32, #tpu.memory_space<vmem>>, %arg10: memref<1024x8xf32, #tpu.memory_space<vmem>>, %arg11: memref<1x4x8xf32, #tpu.memory_space<vmem>>) attributes {dimension_semantics = [#tpu.dimension_semantics<parallel>], iteration_bounds = array<i64: 2>, scalar_prefetch = 0 : i64, scratch_operands = 0 : i64, tpu.core_type = #tpu.core_type<tc>, window_params = [{transform_indices = @transform_0, window_bounds = array<i64: 1, 1, 1024>}, {pipeline_mode = #tpu.pipeline_mode<synchronous>, transform_indices = @transform_1, window_bounds = array<i64: 3, 64, 1>}, {pipeline_mode = #tpu.pipeline_mode<synchronous>, transform_indices = @transform_2, window_bounds = array<i64: 64, 1>}, {pipeline_mode = #tpu.pipeline_mode<synchronous>, transform_indices = @transform_3, window_bounds = array<i64: 64, 192>}, {pipeline_mode = #tpu.pipeline_mode<synchronous>, transform_indices = @transform_4, window_bounds = array<i64: 64, 1>}, {pipeline_mode = #tpu.pipeline_mode<synchronous>, transform_indices = @transform_5, window_bounds = array<i64: 64, 64>}, {pipeline_mode = #tpu.pipeline_mode<synchronous>, transform_indices = @transform_6, window_bounds = array<i64: 64, 1>}, {pipeline_mode = #tpu.pipeline_mode<synchronous>, transform_indices = @transform_7, window_bounds = array<i64: 4, 64>}, {pipeline_mode = #tpu.pipeline_mode<synchronous>, transform_indices = @transform_8, window_bounds = array<i64: 4, 1>}, {pipeline_mode = #tpu.pipeline_mode<synchronous>, transform_indices = @transform_9, window_bounds = array<i64: 1024, 8>}, {transform_indices = @transform_10, window_bounds = array<i64: 1, 4, 8>}]} {
    %0 = tpu.iota {dimensions = array<i32: 1>} : vector<1x1024xi32>
    %c128_i32 = arith.constant 128 : i32
    %c0_i32 = arith.constant 0 : i32
    %1 = arith.cmpi eq, %c128_i32, %c0_i32 : i32
    %c1_i32 = arith.constant 1 : i32
    %2 = arith.select %1, %c1_i32, %c128_i32 : i32
    %3 = vector.broadcast %2 : i32 to vector<1x1024xi32>
    %4 = arith.remsi %0, %3 : vector<1x1024xi32>
    %c0_i32_0 = arith.constant 0 : i32
    %5 = vector.broadcast %c0_i32_0 : i32 to vector<1x1024xi32>
    %6 = arith.cmpi ne, %4, %5 : vector<1x1024xi32>
    %c0_i32_1 = arith.constant 0 : i32
    %7 = vector.broadcast %c0_i32_1 : i32 to vector<1x1024xi32>
    %8 = arith.cmpi slt, %4, %7 : vector<1x1024xi32>
    %c0_i32_2 = arith.constant 0 : i32
    %9 = arith.cmpi slt, %2, %c0_i32_2 : i32
    %10 = vector.broadcast %9 : i1 to vector<1x1024xi1>
    %11 = vector.broadcast %10 : vector<1x1024xi1> to vector<1x1024xi1>
    %12 = arith.xori %8, %11 : vector<1x1024xi1>
    %13 = arith.andi %12, %6 : vector<1x1024xi1>
    %14 = vector.broadcast %2 : i32 to vector<1x1024xi32>
    %15 = arith.addi %4, %14 : vector<1x1024xi32>
    %16 = arith.select %13, %15, %4 : vector<1x1024xi1>, vector<1x1024xi32>
    %c74_i32 = arith.constant 74 : i32
    %17 = vector.broadcast %c74_i32 : i32 to vector<1x1024xi32>
    %18 = arith.cmpi slt, %16, %17 : vector<1x1024xi32>
    %c0 = arith.constant 0 : index
    %c0_3 = arith.constant 0 : index
    %c0_4 = arith.constant 0 : index
    %19 = vector.load %arg1[%c0, %c0_3, %c0_4] : memref<1x1x1024xf32, #tpu.memory_space<vmem>>, vector<1x1x1024xf32>
    %20 = vector.shape_cast %19 : vector<1x1x1024xf32> to vector<1x1024xf32>
    %21 = arith.cmpf one, %20, %20 : vector<1x1024xf32>
    %cst = arith.constant 0.000000e+00 : f32
    %22 = vector.broadcast %cst : f32 to vector<1x1024xf32>
    %23 = arith.select %21, %22, %20 : vector<1x1024xi1>, vector<1x1024xf32>
    %cst_5 = arith.constant -3.40282347E+38 : f32
    %cst_6 = arith.constant 3.40282347E+38 : f32
    %24 = vector.broadcast %cst_5 : f32 to vector<1x1024xf32>
    %25 = arith.maximumf %24, %23 : vector<1x1024xf32>
    %26 = vector.broadcast %cst_6 : f32 to vector<1x1024xf32>
    %27 = arith.minimumf %26, %25 : vector<1x1024xf32>
    %c0_7 = arith.constant 0 : index
    %c0_8 = arith.constant 0 : index
    %28 = vector.load %arg3[%c0_7, %c0_8] : memref<64x1xf32, #tpu.memory_space<vmem>>, vector<64x1xf32>
    %29 = vector.shape_cast %28 : vector<64x1xf32> to vector<64x1xf32>
    %30 = vector.broadcast %29 : vector<64x1xf32> to vector<64x1024xf32>
    %c0_9 = arith.constant 0 : index
    %c0_10 = arith.constant 0 : index
    %c0_11 = arith.constant 0 : index
    %31 = vector.load %arg2[%c0_9, %c0_10, %c0_11] : memref<3x64x1xf32, #tpu.memory_space<vmem>>, vector<1x64x1xf32>
    %32 = vector.shape_cast %31 : vector<1x64x1xf32> to vector<64x1xf32>
    %c1_i32_12 = arith.constant 1 : i32
    %33 = tpu.dynamic_rotate %27 by %c1_i32_12 dim 1 : vector<1x1024xf32>, i32 -> vector<1x1024xf32>
    %c1_i32_13 = arith.constant 1 : i32
    %34 = vector.broadcast %c1_i32_13 : i32 to vector<1x1024xi32>
    %35 = arith.cmpi slt, %16, %34 : vector<1x1024xi32>
    %cst_14 = arith.constant 0.000000e+00 : f32
    %36 = vector.broadcast %cst_14 : f32 to vector<1x1024xf32>
    %37 = arith.select %35, %36, %33 : vector<1x1024xi1>, vector<1x1024xf32>
    %38 = vector.broadcast %32 : vector<64x1xf32> to vector<64x1024xf32>
    %39 = vector.broadcast %37 : vector<1x1024xf32> to vector<64x1024xf32>
    %40 = arith.mulf %38, %39 : vector<64x1024xf32>
    %41 = arith.addf %30, %40 : vector<64x1024xf32>
    %c1 = arith.constant 1 : index
    %c0_15 = arith.constant 0 : index
    %c0_16 = arith.constant 0 : index
    %42 = vector.load %arg2[%c1, %c0_15, %c0_16] : memref<3x64x1xf32, #tpu.memory_space<vmem>>, vector<1x64x1xf32>
    %43 = vector.shape_cast %42 : vector<1x64x1xf32> to vector<64x1xf32>
    %44 = vector.broadcast %43 : vector<64x1xf32> to vector<64x1024xf32>
    %45 = vector.broadcast %27 : vector<1x1024xf32> to vector<64x1024xf32>
    %46 = arith.mulf %44, %45 : vector<64x1024xf32>
    %47 = arith.addf %41, %46 : vector<64x1024xf32>
    %c2 = arith.constant 2 : index
    %c0_17 = arith.constant 0 : index
    %c0_18 = arith.constant 0 : index
    %48 = vector.load %arg2[%c2, %c0_17, %c0_18] : memref<3x64x1xf32, #tpu.memory_space<vmem>>, vector<1x64x1xf32>
    %49 = vector.shape_cast %48 : vector<1x64x1xf32> to vector<64x1xf32>
    %c1023_i32 = arith.constant 1023 : i32
    %50 = tpu.dynamic_rotate %27 by %c1023_i32 dim 1 : vector<1x1024xf32>, i32 -> vector<1x1024xf32>
    %c127_i32 = arith.constant 127 : i32
    %51 = vector.broadcast %c127_i32 : i32 to vector<1x1024xi32>
    %52 = arith.cmpi sge, %16, %51 : vector<1x1024xi32>
    %cst_19 = arith.constant 0.000000e+00 : f32
    %53 = vector.broadcast %cst_19 : f32 to vector<1x1024xf32>
    %54 = arith.select %52, %53, %50 : vector<1x1024xi1>, vector<1x1024xf32>
    %55 = vector.broadcast %49 : vector<64x1xf32> to vector<64x1024xf32>
    %56 = vector.broadcast %54 : vector<1x1024xf32> to vector<64x1024xf32>
    %57 = arith.mulf %55, %56 : vector<64x1024xf32>
    %58 = arith.addf %47, %57 : vector<64x1024xf32>
    %cst_20 = arith.constant 0.000000e+00 : f32
    %59 = vector.broadcast %cst_20 : f32 to vector<64x1024xf32>
    %60 = arith.maximumf %58, %59 : vector<64x1024xf32>
    %cst_21 = arith.constant 0.000000e+00 : f32
    %61 = vector.shape_cast %18 : vector<1x1024xi1> to vector<1x1024xi1>
    %62 = vector.broadcast %61 : vector<1x1024xi1> to vector<64x1024xi1>
    %63 = vector.broadcast %cst_21 : f32 to vector<64x1024xf32>
    %64 = arith.select %62, %60, %63 : vector<64x1024xi1>, vector<64x1024xf32>
    %c1_i32_22 = arith.constant 1 : i32
    %65 = tpu.dynamic_rotate %64 by %c1_i32_22 dim 1 : vector<64x1024xf32>, i32 -> vector<64x1024xf32>
    %c1_i32_23 = arith.constant 1 : i32
    %66 = vector.broadcast %c1_i32_23 : i32 to vector<1x1024xi32>
    %67 = arith.cmpi slt, %16, %66 : vector<1x1024xi32>
    %cst_24 = arith.constant 0.000000e+00 : f32
    %68 = vector.shape_cast %67 : vector<1x1024xi1> to vector<1x1024xi1>
    %69 = vector.broadcast %68 : vector<1x1024xi1> to vector<64x1024xi1>
    %70 = vector.broadcast %cst_24 : f32 to vector<64x1024xf32>
    %71 = arith.select %69, %70, %65 : vector<64x1024xi1>, vector<64x1024xf32>
    %c1023_i32_25 = arith.constant 1023 : i32
    %72 = tpu.dynamic_rotate %64 by %c1023_i32_25 dim 1 : vector<64x1024xf32>, i32 -> vector<64x1024xf32>
    %c127_i32_26 = arith.constant 127 : i32
    %73 = vector.broadcast %c127_i32_26 : i32 to vector<1x1024xi32>
    %74 = arith.cmpi sge, %16, %73 : vector<1x1024xi32>
    %cst_27 = arith.constant 0.000000e+00 : f32
    %75 = vector.shape_cast %74 : vector<1x1024xi1> to vector<1x1024xi1>
    %76 = vector.broadcast %75 : vector<1x1024xi1> to vector<64x1024xi1>
    %77 = vector.broadcast %cst_27 : f32 to vector<64x1024xf32>
    %78 = arith.select %76, %77, %72 : vector<64x1024xi1>, vector<64x1024xf32>
    %79 = tpu.concatenate %71, %64, %78 in 0 : vector<64x1024xf32>, vector<64x1024xf32>, vector<64x1024xf32> -> vector<192x1024xf32>
    %c0_28 = arith.constant 0 : index
    %c0_29 = arith.constant 0 : index
    %80 = vector.load %arg4[%c0_28, %c0_29] : memref<64x192xf32, #tpu.memory_space<vmem>>, vector<64x192xf32>
    %cst_30 = arith.constant dense<0.000000e+00> : vector<64x1024xf32>
    %81 = tpu.matmul %80, %79, %cst_30 {dimension_numbers = #tpu.dot_dimension_numbers<[1], [0], [0], [1], [0, 0, 1, 1], [], []>} : vector<64x192xf32>, vector<192x1024xf32>, vector<64x1024xf32> -> vector<64x1024xf32>
    %c0_31 = arith.constant 0 : index
    %c0_32 = arith.constant 0 : index
    %82 = vector.load %arg5[%c0_31, %c0_32] : memref<64x1xf32, #tpu.memory_space<vmem>>, vector<64x1xf32>
    %83 = vector.broadcast %82 : vector<64x1xf32> to vector<64x1024xf32>
    %84 = arith.addf %81, %83 : vector<64x1024xf32>
    %cst_33 = arith.constant 0.000000e+00 : f32
    %85 = vector.broadcast %cst_33 : f32 to vector<64x1024xf32>
    %86 = arith.maximumf %84, %85 : vector<64x1024xf32>
    %cst_34 = arith.constant 0.000000e+00 : f32
    %87 = vector.shape_cast %18 : vector<1x1024xi1> to vector<1x1024xi1>
    %88 = vector.broadcast %87 : vector<1x1024xi1> to vector<64x1024xi1>
    %89 = vector.broadcast %cst_34 : f32 to vector<64x1024xf32>
    %90 = arith.select %88, %86, %89 : vector<64x1024xi1>, vector<64x1024xf32>
    %c0_35 = arith.constant 0 : index
    %c0_36 = arith.constant 0 : index
    %91 = vector.load %arg10[%c0_35, %c0_36] : memref<1024x8xf32, #tpu.memory_space<vmem>>, vector<1024x8xf32>
    %cst_37 = arith.constant dense<0.000000e+00> : vector<64x8xf32>
    %92 = tpu.matmul %90, %91, %cst_37 {dimension_numbers = #tpu.dot_dimension_numbers<[1], [0], [0], [1], [0, 0, 1, 1], [], []>} : vector<64x1024xf32>, vector<1024x8xf32>, vector<64x8xf32> -> vector<64x8xf32>
    %c0_38 = arith.constant 0 : index
    %c0_39 = arith.constant 0 : index
    %93 = vector.load %arg6[%c0_38, %c0_39] : memref<64x64xf32, #tpu.memory_space<vmem>>, vector<64x64xf32>
    %cst_40 = arith.constant dense<0.000000e+00> : vector<64x8xf32>
    %94 = tpu.matmul %93, %92, %cst_40 {dimension_numbers = #tpu.dot_dimension_numbers<[1], [0], [0], [1], [0, 0, 1, 1], [], []>} : vector<64x64xf32>, vector<64x8xf32>, vector<64x8xf32> -> vector<64x8xf32>
    %c0_41 = arith.constant 0 : index
    %c0_42 = arith.constant 0 : index
    %95 = vector.load %arg7[%c0_41, %c0_42] : memref<64x1xf32, #tpu.memory_space<vmem>>, vector<64x1xf32>
    %96 = vector.broadcast %95 : vector<64x1xf32> to vector<64x8xf32>
    %97 = arith.addf %94, %96 : vector<64x8xf32>
    %cst_43 = arith.constant 0.000000e+00 : f32
    %98 = vector.broadcast %cst_43 : f32 to vector<64x8xf32>
    %99 = arith.maximumf %97, %98 : vector<64x8xf32>
    %c0_44 = arith.constant 0 : index
    %c0_45 = arith.constant 0 : index
    %100 = vector.load %arg8[%c0_44, %c0_45] : memref<4x64xf32, #tpu.memory_space<vmem>>, vector<4x64xf32>
    %cst_46 = arith.constant dense<0.000000e+00> : vector<4x8xf32>
    %101 = tpu.matmul %100, %99, %cst_46 {dimension_numbers = #tpu.dot_dimension_numbers<[1], [0], [0], [1], [0, 0, 1, 1], [], []>} : vector<4x64xf32>, vector<64x8xf32>, vector<4x8xf32> -> vector<4x8xf32>
    %c0_47 = arith.constant 0 : index
    %c0_48 = arith.constant 0 : index
    %102 = vector.load %arg9[%c0_47, %c0_48] : memref<4x1xf32, #tpu.memory_space<vmem>>, vector<4x1xf32>
    %103 = vector.broadcast %102 : vector<4x1xf32> to vector<4x8xf32>
    %104 = arith.addf %101, %103 : vector<4x8xf32>
    %c0_49 = arith.constant 0 : index
    %c0_50 = arith.constant 0 : index
    %c0_51 = arith.constant 0 : index
    %105 = vector.load %arg11[%c0_49, %c0_50, %c0_51] : memref<1x4x8xf32, #tpu.memory_space<vmem>>, vector<1x4x8xf32>
    %106 = vector.shape_cast %105 : vector<1x4x8xf32> to vector<4x8xf32>
    %107 = vector.shape_cast %104 : vector<4x8xf32> to vector<1x4x8xf32>
    tpu.vector_store %arg11[%c0_49, %c0_50, %c0_51], %107 {strides = array<i32>} : memref<1x4x8xf32, #tpu.memory_space<vmem>>, vector<1x4x8xf32>,
    return
  }
  func.func @transform_0(%arg0: i32) -> (i32, i32, i32) {
    %c0_i32 = arith.constant 0 : i32
    %c0_i32_0 = arith.constant 0 : i32
    %c0_i32_1 = arith.constant 0 : i32
    return %arg0, %c0_i32, %c0_i32_0 : i32, i32, i32
  }
  func.func @transform_1(%arg0: i32) -> (i32, i32, i32) {
    %c0_i32 = arith.constant 0 : i32
    %c0_i32_0 = arith.constant 0 : i32
    %c0_i32_1 = arith.constant 0 : i32
    %c0_i32_2 = arith.constant 0 : i32
    return %c0_i32, %c0_i32_0, %c0_i32_1 : i32, i32, i32
  }
  func.func @transform_2(%arg0: i32) -> (i32, i32) {
    %c0_i32 = arith.constant 0 : i32
    %c0_i32_0 = arith.constant 0 : i32
    %c0_i32_1 = arith.constant 0 : i32
    return %c0_i32, %c0_i32_0 : i32, i32
  }
  func.func @transform_3(%arg0: i32) -> (i32, i32) {
    %c0_i32 = arith.constant 0 : i32
    %c0_i32_0 = arith.constant 0 : i32
    %c0_i32_1 = arith.constant 0 : i32
    return %c0_i32, %c0_i32_0 : i32, i32
  }
  func.func @transform_4(%arg0: i32) -> (i32, i32) {
    %c0_i32 = arith.constant 0 : i32
    %c0_i32_0 = arith.constant 0 : i32
    %c0_i32_1 = arith.constant 0 : i32
    return %c0_i32, %c0_i32_0 : i32, i32
  }
  func.func @transform_5(%arg0: i32) -> (i32, i32) {
    %c0_i32 = arith.constant 0 : i32
    %c0_i32_0 = arith.constant 0 : i32
    %c0_i32_1 = arith.constant 0 : i32
    return %c0_i32, %c0_i32_0 : i32, i32
  }
  func.func @transform_6(%arg0: i32) -> (i32, i32) {
    %c0_i32 = arith.constant 0 : i32
    %c0_i32_0 = arith.constant 0 : i32
    %c0_i32_1 = arith.constant 0 : i32
    return %c0_i32, %c0_i32_0 : i32, i32
  }
  func.func @transform_7(%arg0: i32) -> (i32, i32) {
    %c0_i32 = arith.constant 0 : i32
    %c0_i32_0 = arith.constant 0 : i32
    %c0_i32_1 = arith.constant 0 : i32
    return %c0_i32, %c0_i32_0 : i32, i32
  }
  func.func @transform_8(%arg0: i32) -> (i32, i32) {
    %c0_i32 = arith.constant 0 : i32
    %c0_i32_0 = arith.constant 0 : i32
    %c0_i32_1 = arith.constant 0 : i32
    return %c0_i32, %c0_i32_0 : i32, i32
  }
  func.func @transform_9(%arg0: i32) -> (i32, i32) {
    %c0_i32 = arith.constant 0 : i32
    %c0_i32_0 = arith.constant 0 : i32
    %c0_i32_1 = arith.constant 0 : i32
    return %c0_i32, %c0_i32_0 : i32, i32
  }
  func.func @transform_10(%arg0: i32) -> (i32, i32, i32) {
    %c0_i32 = arith.constant 0 : i32
    %c0_i32_0 = arith.constant 0 : i32
    %c0_i32_1 = arith.constant 0 : i32
    return %arg0, %c0_i32, %c0_i32_0 : i32, i32, i32
  }
}

</mosaic_0001>

<bundles_post_ra>
// kernel: tpu_custom_call.1
= control target key start
LH: loop header
LB: loop body
LE: loop exit
PB: predicated region body
PF: predicated region fallthrough
CT: control target
= control target key end

     0   :  { %s8082_s0 = inlined_call_operand.vmem [shape: f32[2,1,1024], index: 0, kind: input, shape index: {}]   ;;  %s8083_s1 = inlined_call_operand.vmem [shape: f32[3,64,1], index: 1, kind: input, shape index: {}]   ;;  %s8084_s2 = inlined_call_operand.vmem [shape: f32[64,1], index: 2, kind: input, shape index: {}]   ;;  %s8085_s3 = inlined_call_operand.vmem [shape: f32[64,192], index: 3, kind: input, shape index: {}]   ;;  %s8086_s4 = inlined_call_operand.vmem [shape: f32[64,1], index: 4, kind: input, shape index: {}]   ;;  %s8087_s5 = inlined_call_operand.vmem [shape: f32[64,64], index: 5, kind: input, shape index: {}]   ;;  %s8088_s6 = inlined_call_operand.vmem [shape: f32[64,1], index: 6, kind: input, shape index: {}]   ;;  %s8089_s7 = inlined_call_operand.vmem [shape: f32[4,64], index: 7, kind: input, shape index: {}]   ;;  %s8090_s8 = inlined_call_operand.vmem [shape: f32[4,1], index: 8, kind: input, shape index: {}]   ;;  %s8091_s9 = inlined_call_operand.vmem [shape: f32[1024,8], index: 9, kind: input, shape index: {}]   ;;  %s8092_s10 = inlined_call_operand.hbm [shape: f32[2,4,8], index: 10, kind: output, shape index: {}]  }
   0x1   :  { %8324 = sst [smem:[#allocation96_spill]] %s8082_s0 }
   0x2   :  { %15 = vsyncpa [#allocation3], 0 }
   0x3   :  { %17 = vsyncpa [#allocation3 + $0x1], 0  ;;  %s4094_s13 = smov 0   ;;  %s4096_s14 = smov 0  }
   0x4   :  { %s4098_s15 = smov 0   ;;  %s4100_s16 = smov 0  }
   0x5 LB: > { %s4115_s17 = sadd.s32 4294967295, %s4034_s16   ;;  %s3419_s18 = sadd.s32 4294967294, %s4034_s16   ;;  %s4034_s16 = sphi %s4100_s16, %s8757_s16   ;;  %s4030_s15 = sphi %s4098_s15, %s8756_s15   ;;  %s4026_s14 = sphi %s4096_s14, %s8755_s14   ;;  %s4022_s13 = sphi %s4094_s13, %s8754_s13  }
   0x6   : > { %s4119_s19 = sadd.s32 1, %s4034_s16   ;;  %s245_s20 = sadd.s32 1, %s4030_s15 }
   0x7   : > { %s242_s21 = ssub.s32 %s4034_s16, %s4119_s19  ;;  %p255_p0 = scmp.ne.s32.totalorder %s4030_s15, %s4026_s14 }
   0x8   : > { %p243_p1 = scmp.eq.s32.totalorder %s242_s21, 0  ;;  %p256_p2 = scmp.eq.s32.totalorder %s4115_s17, 1 }
   0x9   : > { %p261_p3 = scmp.ne.s32.totalorder %s4026_s14, %s4022_s13  ;;  %p262_p4 = scmp.eq.s32.totalorder %s3419_s18, 1 }
   0xa   : > { %s4130_s22 = scalar_select %p243_p1, %s4030_s15, %s245_s20  }
   0xb   : > { %p4132_p5 = por %p256_p2, %p255_p0  ;;  %p4136_p6 = por %p262_p4, %p261_p3 }
   0xc   : > { %p3422_p7 = scmp.ge.s32.totalorder %s4034_s16, 1  ;;  %p314_p8 = scmp.lt.s32.totalorder %s4034_s16, 3 }
   0xe   : > { %p315_p9 = pnand %p3422_p7, %p314_p8 }
  0x10   : > { %318 = sbr.rel (%p315_p9) target bundleno = 1577 (0x629), region = 60 }
  0x15   : > { %v528_v0 = vld [vmem:[%s8083_s1 + $0x38] sm:$0xff]  ;;  %p351_p10 = scmp.lt.s32.totalorder %s4115_s17, 1  ;;  %v4036_v1 = vmov 0   ;;  %s8327_s0 = sld [smem:[#allocation96_spill]]  ;;  %v479_v9 = vld [vmem:[%s8084_s2 + $0x30] sm:$0xff]  ;;  %v526_v13 = vld [vmem:[%s8083_s1 + $0x28] sm:$0xff]  ;;  %v355_v46 = vlaneseq }
  0x16   : > { %3953 = vset.pattern.permute.xlu1 %v4036_v1  ;;  %3954 = vset.pattern.permute.xlu2 %v4036_v1  ;;  %s4037_s12 = smov 1   ;;  %s8093_s18 = smov 127   ;;  %v480_v8 = vld [vmem:[%s8084_s2 + $0x38] sm:$0xff]  ;;  %v527_v10 = vld [vmem:[%s8083_s1 + $0x30] sm:$0xff]  ;;  %v525_v15 = vld [vmem:[%s8083_s1 + $0x20] sm:$0xff] }
  0x17   : > { %624 = vperm.xlu1 %3953, %v528_v0   ;;  %s352_s27 = scalar_select %p351_p10, %s4115_s17, 1  ;;  %3955 = vset.pattern.permute.xlu0 %v4036_v1  ;;  %v3432_v12 = vld [vmem:[%s8083_s1 + $0x70] sm:$0xff]  ;;  %v3433_v14 = vld [vmem:[%s8083_s1 + $0x78] sm:$0xff]  ;;  %v478_v17 = vld [vmem:[%s8084_s2 + $0x28] sm:$0xff]  ;;  %v4293_v50 = vand.u32 127, %v355_v46 }
  0x18   : > { %v3441_v16 = vld [vmem:[%s8083_s1 + $0xb8] sm:$0xff]  ;;  %v477_v18 = vld [vmem:[%s8084_s2 + $0x20] sm:$0xff]  ;;  %v3431_v19 = vld [vmem:[%s8083_s1 + $0x68] sm:$0xff]  ;;  %s8331_s26 = smov 127   ;;  %s348_s30 = sand.u32 1, %s4026_s14  }
  0x19   : > { %s3424_s28 = sshll.u32 %s352_s27, 3  ;;  %v3440_v20 = vld [vmem:[%s8083_s1 + $0xb0] sm:$0xff]  ;;  %v3439_v21 = vld [vmem:[%s8083_s1 + $0xa8] sm:$0xff]  ;;  %v524_v22 = vld [vmem:[%s8083_s1 + $0x18] sm:$0xff]  ;;  %v357_v51 = vadd.s32 128, %v4293_v50  ;;  %vm562_vm1 = vcmp.lt.s32.totalorder %v4293_v50, 1 }
  0x1a   : > { %v3430_v23 = vld [vmem:[%s8083_s1 + $0x60] sm:$0xff]  ;;  %v3429_v24 = vld [vmem:[%s8083_s1 + $0x58] sm:$0xff]  ;;  %v523_v26 = vld [vmem:[%s8083_s1 + $0x10] sm:$0xff]  ;;  %vm965_vm3 = vcmp.lt.s32.totalorder %v4293_v50, 127  ;;  %vm974_vm5 = vcmp.ge.s32.totalorder %v4293_v50, 127  ;;  %vm8208_vm6 = vcmp.lt.s32.totalorder %v4293_v50, 74 }
  0x1b   : > { %s354_s11 = scalar_lea.vmem %s8327_s0, %s3424_s28  ;;  %v476_v25 = vld [vmem:[%s8084_s2 + $0x18] sm:$0xff]  ;;  %v522_v27 = vld [vmem:[%s8083_s1 + $0x8] sm:$0xff]  ;;  %v3438_v28 = vld [vmem:[%s8083_s1 + $0xa0] sm:$0xff]  ;;  %v4300_v54 = vand.u32 127, %v357_v51  ;;  %s3345_s28 = scalar_lea.sflag [#allocation3], %s348_s30 }
  0x1c   : > { %v468_v2 = vld [vmem:[%s354_s11] sm:$0xff]  ;;  %v475_v29 = vld [vmem:[%s8084_s2 + $0x10] sm:$0xff]  ;;  %v474_v30 = vld [vmem:[%s8084_s2 + $0x8] sm:$0xff] }
  0x1d   : > { %vm469_vm0 = vcmp.ne.f32.partialorder %v468_v2, %v468_v2  ;;  %v3428_v31 = vld [vmem:[%s8083_s1 + $0x50] sm:$0xff]  ;;  %v3437_v32 = vld [vmem:[%s8083_s1 + $0x98] sm:$0xff]  ;;  %v521_v34 = vld [vmem:[%s8083_s1] sm:$0xff]  ;;  %8337 = vst [vmem:[#allocation13_spill] sm:$0xff] %v4300_v54  ;;  %vm572_vm2 = vcmp.lt.s32.totalorder %v4300_v54, 1  ;;  %vm975_vm4 = vcmp.ge.s32.totalorder %v4300_v54, 127 }
  0x1e   : > { %v470_v3 = vsel %vm469_vm0, 0.0, %v468_v2  ;;  %v3436_v33 = vld [vmem:[%s8083_s1 + $0x90] sm:$0xff]  ;;  %v3427_v35 = vld [vmem:[%s8083_s1 + $0x48] sm:$0xff]  ;;  %v473_v37 = vld [vmem:[%s8084_s2] sm:$0xff]  ;;  %vm8209_vm7 = vcmp.lt.s32.totalorder %v4300_v54, 74 }
  0x1f   : > { %v4150_v4 = vclamps-f32 %v470_v3, 3.4028235e+38  ;;  %v3435_v36 = vld [vmem:[%s8083_s1 + $0x88] sm:$0xff]  ;;  %v3426_v38 = vld [vmem:[%s8083_s1 + $0x40] sm:$0xff]  ;;  %vm4885_vm14 = vmneg %vm974_vm5 }
  0x20   : > { %v3434_v41 = vld [vmem:[%s8083_s1 + $0x80] sm:$0xff]  ;;  %vm5099_vm15 = vmneg %vm562_vm1 }
  0x21   : > { %8328 = vst [vmem:[#allocation5_spill] sm:$0xff] %v4150_v4  ;;  %v4153_v5 = vperm.slane %v4150_v4, 7  ;;  %v4156_v6 = vperm.slane %v4150_v4, 0  ;;  %v4165_v7 = vperm.slane %v4150_v4, 1  ;;  %v4181_v11 = vperm.slane %v4150_v4, 2  ;;  %vm5132_vm0 = vmneg %vm572_vm2 }
  0x22   : > { %v4269_v40 = vperm.slane %v4150_v4, 6  ;;  %v4279_v43 = vperm.slane %v4150_v4, 3 }
  0x23   : > { %560 = vrot.lane.b32.xlu1 %v4153_v5, %s4037_s12  ;;  %949 = vrot.lane.b32.xlu2 %v4156_v6, %s8093_s18 }
  0x24   : > { %546 = vrot.lane.b32.xlu0 %v4156_v6, %s4037_s12  ;;  %8329 = vst [vmem:[#allocation6_spill] sm:$0xff] %v4269_v40 }
  0x25   : > { %8330 = vst [vmem:[#allocation7_spill] sm:$0xff] %v4279_v43 }
  0x2b   : > { %518 = vperm.xlu1 %3953, %v480_v8   ;;  %951 = vrot.lane.b32.xlu2 %v4165_v7, %s8093_s18 }
  0x2c   : > { %548 = vrot.lane.b32.xlu0 %v4165_v7, %s4037_s12 }
  0x33   : > { %513 = vperm.xlu1 %3953, %v479_v9   ;;  %619 = vperm.xlu2 %3954, %v527_v10  }
  0x34   : > { %953 = vrot.lane.b32.xlu0 %v4181_v11, %s8093_s18 }
  0x3b   : > { %804 = vperm.xlu1 %3953, %v3432_v12   ;;  %614 = vperm.xlu2 %3954, %v526_v13  }
  0x3c   : > { %809 = vperm.xlu0 %3955, %v3433_v14  }
  0x43   : > { %609 = vperm.xlu1 %3953, %v525_v15   ;;  %1027 = vperm.xlu2 %3954, %v3441_v16  }
  0x44   : > { %508 = vperm.xlu0 %3955, %v478_v17  }
  0x4b   : > { %503 = vperm.xlu1 %3953, %v477_v18   ;;  %799 = vperm.xlu2 %3954, %v3431_v19  }
  0x4c   : > { %1022 = vperm.xlu0 %3955, %v3440_v20  }
  0x53   : > { %1017 = vperm.xlu1 %3953, %v3439_v21   ;;  %604 = vperm.xlu2 %3954, %v524_v22  }
  0x54   : > { %794 = vperm.xlu0 %3955, %v3430_v23  }
  0x5b   : > { %789 = vperm.xlu1 %3953, %v3429_v24   ;;  %498 = vperm.xlu2 %3954, %v476_v25  }
  0x5c   : > { %599 = vperm.xlu0 %3955, %v523_v26  }
  0x63   : > { %594 = vperm.xlu1 %3953, %v522_v27   ;;  %1012 = vperm.xlu2 %3954, %v3438_v28  }
  0x64   : > { %493 = vperm.xlu0 %3955, %v475_v29  }
  0x6b   : > { %488 = vperm.xlu1 %3953, %v474_v30   ;;  %784 = vperm.xlu2 %3954, %v3428_v31  }
  0x6c   : > { %1007 = vperm.xlu0 %3955, %v3437_v32  }
  0x73   : > { %1002 = vperm.xlu1 %3953, %v3436_v33   ;;  %589 = vperm.xlu2 %3954, %v521_v34  }
  0x74   : > { %779 = vperm.xlu0 %3955, %v3427_v35  }
  0x7b   : > { %997 = vperm.xlu1 %3953, %v3435_v36   ;;  %483 = vperm.xlu2 %3954, %v473_v37  }
  0x7c   : > { %774 = vperm.xlu0 %3955, %v3426_v38  }
  0x7d   : > { %v4266_v39 = vpop.permute.xlu2 %949 }
  0x83   : > { %558 = vrot.lane.b32.xlu1 %v4269_v40, %s4037_s12  ;;  %992 = vperm.xlu2 %3954, %v3434_v41  }
  0x84   : > { %550 = vrot.lane.b32.xlu0 %v4181_v11, %s4037_s12 }
  0x85   : > { %v952_v42 = vpop.permute.xlu2 %951 }
  0x86   : > { %v972_v1 = vsel %vm965_vm3, %v4266_v39, %v952_v42 }
  0x87   : > { %v982_v8 = vsel %vm974_vm5, 0.0, %v972_v1 }
  0x88   : > { %v4347_v14 = vperm.slane %v982_v8, 0 }
  0x89   : > { %v4283_v44 = vpop.permute.xlu1 %624 }
  0x8a   : > { %8332 = vst [vmem:[#allocation8_spill] sm:$0xff] %v4283_v44 }
  0x8b   : > { %955 = vrot.lane.b32.xlu2 %v4279_v43, %s8331_s26 }
  0x8c   : > { %963 = vrot.lane.b32.xlu0 %v4153_v5, %s8331_s26 }
  0x8d   : > { %v4287_v45 = vpop.permute.xlu2 %619 }
  0x8e   : > { %8333 = vst [vmem:[#allocation9_spill] sm:$0xff] %v4287_v45 }
  0x95   : > { %v4289_v47 = vpop.permute.xlu1 %560  ;;  %v4291_v48 = vpop.permute.xlu2 %614 }
  0x96   : > { %8334 = vst [vmem:[#allocation10_spill] sm:$0xff] %v4291_v48  ;;  %v547_v49 = vpop.permute.xlu0 %546 }
  0x97   : > { %v570_v57 = vsel %vm562_vm1, %v4289_v47, %v547_v49 }
  0x98   : > { %v579_v60 = vsel %vm562_vm1, 0.0, %v570_v57 }
  0x99   : > { %v4333_v2 = vperm.slane %v579_v60, 0 }
  0x9b   : > { %v691_v13 = vmul.f32 %v4333_v2, %v4283_v44  ;;  %v683_v34 = vmul.f32 %v4333_v2, %v4287_v45 }
  0x9d   : > { %v4296_v52 = vpop.permute.xlu1 %518  ;;  %v4298_v53 = vpop.permute.xlu2 %1027 }
  0x9e   : > { %8335 = vst [vmem:[#allocation11_spill] sm:$0xff] %v4296_v52  ;;  %v4302_v55 = vpop.permute.xlu0 %548  ;;  %v755_v16 = vadd.f32 %v691_v13, %v4296_v52  ;;  %v1094_v22 = vmul.f32 %v4347_v14, %v4298_v53 }
  0x9f   : > { %8336 = vst [vmem:[#allocation12_spill] sm:$0xff] %v4298_v53  ;;  %v569_v56 = vsel %vm562_vm1, %v547_v49, %v4302_v55  ;;  %v675_v49 = vmul.f32 %v4333_v2, %v4291_v48 }
  0xa0   : > { %v580_v58 = vsel %vm572_vm2, 0.0, %v569_v56  ;;  %vm5187_vm2 = vmneg %vm975_vm4 }
  0xa1   : > { %v4321_v62 = vperm.slane %v580_v58, 0 }
  0xa3   : > { %v692_v9 = vmul.f32 %v4321_v62, %v4283_v44  ;;  %v684_v36 = vmul.f32 %v4321_v62, %v4287_v45  ;;  %v676_v60 = vmul.f32 %v4321_v62, %v4291_v48 }
  0xa5   : > { %v4315_v59 = vpop.permute.xlu1 %513  ;;  %v4323_v63 = vpop.permute.xlu2 %799  ;;  %v756_v18 = vadd.f32 %v692_v9, %v4296_v52 }
  0xa6   : > { %8338 = vst [vmem:[#allocation14_spill] sm:$0xff] %v4315_v59  ;;  %v4319_v61 = vpop.permute.xlu0 %953  ;;  %v747_v41 = vadd.f32 %v683_v34, %v4315_v59 }
  0xa7   : > { %8339 = vst [vmem:[#allocation15_spill] sm:$0xff] %v4323_v63  ;;  %v971_v0 = vsel %vm965_vm3, %v952_v42, %v4319_v61  ;;  %v748_v42 = vadd.f32 %v684_v36, %v4315_v59 }
  0xa8   : > { %v983_v3 = vsel %vm975_vm4, 0.0, %v971_v0 }
  0xa9   : > { %v4341_v10 = vperm.slane %v983_v3, 0 }
  0xab   : > { %v1095_v24 = vmul.f32 %v4341_v10, %v4298_v53 }
  0xad   : > { %v4343_v12 = vpop.permute.xlu1 %804  ;;  %v4357_v20 = vpop.permute.xlu2 %604 }
  0xae   : > { %8340 = vst [vmem:[#allocation16_spill] sm:$0xff] %v4343_v12  ;;  %v4349_v15 = vpop.permute.xlu0 %809  ;;  %v860_v35 = vmul.f32 %v4343_v12, %v4156_v6  ;;  %v861_v37 = vmul.f32 %v4343_v12, %v4165_v7 }
  0xaf   : > { %8341 = vst [vmem:[#allocation17_spill] sm:$0xff] %v4349_v15  ;;  %v868_v17 = vmul.f32 %v4349_v15, %v4156_v6  ;;  %v869_v19 = vmul.f32 %v4349_v15, %v4165_v7 }
  0xb0   : > { %8342 = vst [vmem:[#allocation18_spill] sm:$0xff] %v4357_v20  ;;  %v924_v51 = vadd.f32 %v860_v35, %v747_v41  ;;  %v925_v57 = vadd.f32 %v861_v37, %v748_v42 }
  0xb1   : > { %v932_v21 = vadd.f32 %v868_v17, %v755_v16  ;;  %v933_v23 = vadd.f32 %v869_v19, %v756_v18  ;;  %v852_v16 = vmul.f32 %v4323_v63, %v4156_v6  ;;  %v853_v17 = vmul.f32 %v4323_v63, %v4165_v7 }
  0xb3   : > { %v1158_v25 = vadd.f32 %v1094_v22, %v932_v21  ;;  %v1159_v26 = vadd.f32 %v1095_v24, %v933_v23 }
  0xb5   : > { %v4365_v27 = vpop.permute.xlu1 %609  ;;  %v1222_v28 = vmax.f32 %v1158_v25, 0.0  ;;  %v1223_v29 = vmax.f32 %v1159_v26, 0.0  ;;  %v4385_v33 = vpop.permute.xlu2 %498 }
  0xb6   : > { %8343 = vst [vmem:[#allocation19_spill] sm:$0xff] %v4365_v27  ;;  %v4367_v30 = vpop.permute.xlu0 %508  ;;  %v667_v18 = vmul.f32 %v4333_v2, %v4365_v27  ;;  %v668_v25 = vmul.f32 %v4321_v62, %v4365_v27 }
  0xb7   : > { %8344 = vst [vmem:[#allocation20_spill] sm:$0xff] %v4367_v30  ;;  %3442 = vmatpush.msk.msra.mxu0 %vm8208_vm6, %v1222_v28  ;;  %3490 = vmatpush.msk.msra.mxu2 %vm8209_vm7, %v1223_v29  ;;  %v4375_v31 = vsel %vm8209_vm7, %v1223_v29, 0.0  ;;  %v4379_v32 = vsel %vm8208_vm6, %v1222_v28, 0.0  ;;  %v739_v3 = vadd.f32 %v675_v49, %v4367_v30  ;;  %v740_v8 = vadd.f32 %v676_v60, %v4367_v30 }
  0xb8   : > { %1612 = vrot.lane.b32.xlu2 %v4375_v31, %s8331_s26  ;;  %1596 = vrot.lane.b32.xlu1 %v4379_v32, %s8331_s26  ;;  %8345 = vst [vmem:[#allocation21_spill] sm:$0xff] %v4385_v33 }
  0xb9   : > { %v916_v24 = vadd.f32 %v852_v16, %v739_v3  ;;  %v917_v29 = vadd.f32 %v853_v17, %v740_v8 }
  0xbd   : > { %v4395_v38 = vpop.permute.xlu1 %503  ;;  %v4417_v19 = vpop.permute.xlu2 %1012 }
  0xbe   : > { %8346 = vst [vmem:[#allocation22_spill] sm:$0xff] %v4395_v38  ;;  %v4399_v46 = vpop.permute.xlu0 %1022  ;;  %v731_v35 = vadd.f32 %v667_v18, %v4395_v38  ;;  %v732_v37 = vadd.f32 %v668_v25, %v4395_v38 }
  0xbf   : > { %8347 = vst [vmem:[#allocation23_spill] sm:$0xff] %v4399_v46  ;;  %v1086_v56 = vmul.f32 %v4347_v14, %v4399_v46  ;;  %v1087_v58 = vmul.f32 %v4341_v10, %v4399_v46 }
  0xc0   : > { %8348 = vst [vmem:[#allocation24_spill] sm:$0xff] %v4417_v19 }
  0xc1   : > { %v1150_v0 = vadd.f32 %v1086_v56, %v924_v51  ;;  %v1151_v1 = vadd.f32 %v1087_v58, %v925_v57  ;;  %v1070_v56 = vmul.f32 %v4347_v14, %v4417_v19  ;;  %v1071_v58 = vmul.f32 %v4341_v10, %v4417_v19 }
  0xc3   : > { %v1214_v9 = vmax.f32 %v1150_v0, 0.0  ;;  %v1215_v13 = vmax.f32 %v1151_v1, 0.0 }
  0xc5   : > { %3443 = vmatpush.msk.msra.mxu0 %vm8208_vm6, %v1214_v9  ;;  %3491 = vmatpush.msk.msra.mxu2 %vm8209_vm7, %v1215_v13  ;;  %v4423_v21 = vpop.permute.xlu1 %1017  ;;  %v4427_v22 = vsel %vm8209_vm7, %v1215_v13, 0.0  ;;  %v4431_v23 = vsel %vm8208_vm6, %v1214_v9, 0.0 }
  0xc6   : > { %8349 = vst [vmem:[#allocation25_spill] sm:$0xff] %v4423_v21  ;;  %1610 = vrot.lane.b32.xlu1 %v4427_v22, %s8331_s26  ;;  %v4437_v26 = vpop.permute.xlu0 %794  ;;  %1594 = vrot.lane.b32.xlu0 %v4431_v23, %s8331_s26  ;;  %v1078_v28 = vmul.f32 %v4347_v14, %v4423_v21  ;;  %v1079_v34 = vmul.f32 %v4341_v10, %v4423_v21 }
  0xc7   : > { %8350 = vst [vmem:[#allocation26_spill] sm:$0xff] %v4437_v26  ;;  %v844_v36 = vmul.f32 %v4437_v26, %v4156_v6  ;;  %v845_v41 = vmul.f32 %v4437_v26, %v4165_v7 }
  0xc8   : > { %v1142_v42 = vadd.f32 %v1078_v28, %v916_v24  ;;  %v1143_v49 = vadd.f32 %v1079_v34, %v917_v29  ;;  %v4475_v24 = vpop.permute.xlu2 %784 }
  0xc9   : > { %v908_v51 = vadd.f32 %v844_v36, %v731_v35  ;;  %v909_v57 = vadd.f32 %v845_v41, %v732_v37  ;;  %8352 = vst [vmem:[#allocation28_spill] sm:$0xff] %v4475_v24  ;;  %v659_v36 = vmul.f32 %v4333_v2, %v4357_v20  ;;  %v660_v41 = vmul.f32 %v4321_v62, %v4357_v20 }
  0xca   : > { %v1206_v60 = vmax.f32 %v1142_v42, 0.0  ;;  %v1207_v0 = vmax.f32 %v1143_v49, 0.0 }
  0xcb   : > { %v1134_v1 = vadd.f32 %v1070_v56, %v908_v51  ;;  %v1135_v3 = vadd.f32 %v1071_v58, %v909_v57  ;;  %v723_v51 = vadd.f32 %v659_v36, %v4385_v33  ;;  %v724_v56 = vadd.f32 %v660_v41, %v4385_v33 }
  0xcc   : > { %3444 = vmatpush.msk.msra.mxu0 %vm8208_vm6, %v1206_v60  ;;  %3492 = vmatpush.msk.msra.mxu2 %vm8209_vm7, %v1207_v0  ;;  %v4461_v8 = vsel %vm8208_vm6, %v1206_v60, 0.0  ;;  %v4465_v9 = vsel %vm8209_vm7, %v1207_v0, 0.0 }
  0xcd   : > { %v4467_v13 = vpop.permute.xlu1 %789  ;;  %1592 = vrot.lane.b32.xlu2 %v4461_v8, %s8331_s26  ;;  %v1198_v16 = vmax.f32 %v1134_v1, 0.0  ;;  %v1199_v17 = vmax.f32 %v1135_v3, 0.0 }
  0xce   : > { %8351 = vst [vmem:[#allocation27_spill] sm:$0xff] %v4467_v13  ;;  %v4471_v18 = vpop.permute.xlu0 %599  ;;  %1608 = vrot.lane.b32.xlu0 %v4465_v9, %s8331_s26  ;;  %v836_v37 = vmul.f32 %v4467_v13, %v4156_v6  ;;  %v837_v42 = vmul.f32 %v4467_v13, %v4165_v7 }
  0xcf   : > { %3445 = vmatpush.msk.msra.mxu0 %vm8208_vm6, %v1198_v16  ;;  %3493 = vmatpush.msk.msra.mxu2 %vm8209_vm7, %v1199_v17  ;;  %v4483_v25 = vsel %vm8208_vm6, %v1198_v16, 0.0  ;;  %v4489_v28 = vsel %vm8209_vm7, %v1199_v17, 0.0  ;;  %v651_v58 = vmul.f32 %v4333_v2, %v4471_v18  ;;  %v652_v16 = vmul.f32 %v4321_v62, %v4471_v18 }
  0xd0   : > { %1590 = vrot.lane.b32.xlu1 %v4483_v25, %s8331_s26  ;;  %v4497_v35 = vpop.permute.xlu2 %589  ;;  %v900_v60 = vadd.f32 %v836_v37, %v723_v51  ;;  %v901_v1 = vadd.f32 %v837_v42, %v724_v56  ;;  %v828_v51 = vmul.f32 %v4475_v24, %v4156_v6  ;;  %v829_v42 = vmul.f32 %v4475_v24, %v4165_v7 }
  0xd5   : > { %v4491_v29 = vpop.permute.xlu1 %594  ;;  %1606 = vrot.lane.b32.xlu2 %v4489_v28, %s8331_s26 }
  0xd6   : > { %8353 = vst [vmem:[#allocation29_spill] sm:$0xff] %v4491_v29  ;;  %v4495_v34 = vpop.permute.xlu0 %493 }
  0xd7   : > { %8354 = vst [vmem:[#allocation30_spill] sm:$0xff] %v4495_v34  ;;  %v715_v41 = vadd.f32 %v651_v58, %v4495_v34  ;;  %v716_v40 = vadd.f32 %v652_v16, %v4495_v34 }
  0xd8   : > { %v4523_v13 = vpop.permute.xlu2 %483 }
  0xd9   : > { %v893_v16 = vadd.f32 %v829_v42, %v716_v40  ;;  %v363_v40 = vadd.s32 896, %v4293_v50 }
  0xdd   : > { %v4507_v49 = vpop.permute.xlu1 %488 }
  0xde   : > { %8355 = vst [vmem:[#allocation31_spill] sm:$0xff] %v4507_v49  ;;  %v4511_v57 = vpop.permute.xlu0 %1007 }
  0xdf   : > { %8356 = vst [vmem:[#allocation32_spill] sm:$0xff] %v4511_v57  ;;  %v1062_v0 = vmul.f32 %v4347_v14, %v4511_v57  ;;  %v1063_v3 = vmul.f32 %v4341_v10, %v4511_v57 }
  0xe1   : > { %v1126_v17 = vadd.f32 %v1062_v0, %v900_v60  ;;  %v1127_v36 = vadd.f32 %v1063_v3, %v901_v1  ;;  %v892_v0 = vadd.f32 %v828_v51, %v715_v41  ;;  %v644_v41 = vmul.f32 %v4321_v62, %v4491_v29 }
  0xe3   : > { %v1190_v33 = vmax.f32 %v1126_v17, 0.0  ;;  %v1191_v37 = vmax.f32 %v1127_v36, 0.0 }
  0xe5   : > { %3446 = vmatpush.msk.msra.mxu0 %vm8208_vm6, %v1190_v33  ;;  %3494 = vmatpush.msk.msra.mxu2 %vm8209_vm7, %v1191_v37  ;;  %v4533_v56 = vpop.permute.xlu1 %1002  ;;  %v4537_v58 = vsel %vm8209_vm7, %v1191_v37, 0.0  ;;  %v4541_v60 = vsel %vm8208_vm6, %v1190_v33, 0.0  ;;  %v643_v33 = vmul.f32 %v4333_v2, %v4491_v29 }
  0xe6   : > { %8357 = vst [vmem:[#allocation33_spill] sm:$0xff] %v4533_v56  ;;  %1604 = vrot.lane.b32.xlu1 %v4537_v58, %s8331_s26  ;;  %v4545_v1 = vpop.permute.xlu0 %779  ;;  %1588 = vrot.lane.b32.xlu0 %v4541_v60, %s8331_s26  ;;  %v1054_v3 = vmul.f32 %v4347_v14, %v4533_v56  ;;  %v1055_v17 = vmul.f32 %v4341_v10, %v4533_v56 }
  0xe7   : > { %8358 = vst [vmem:[#allocation34_spill] sm:$0xff] %v4537_v58  ;;  %v820_v4 = vmul.f32 %v4545_v1, %v4156_v6  ;;  %v821_v20 = vmul.f32 %v4545_v1, %v4165_v7 }
  0xe8   : > { %8359 = vst [vmem:[#allocation35_spill] sm:$0xff] %v4541_v60  ;;  %v1118_v36 = vadd.f32 %v1054_v3, %v892_v0  ;;  %v1119_v37 = vadd.f32 %v1055_v17, %v893_v16  ;;  %v707_v3 = vadd.f32 %v643_v33, %v4507_v49  ;;  %v708_v16 = vadd.f32 %v644_v41, %v4507_v49  ;;  %v4576_v17 = vpop.permute.xlu2 %992 }
  0xe9   : > { %8360 = vst [vmem:[#allocation36_spill] sm:$0xff] %v4545_v1 }
  0xea   : > { %v1182_v51 = vmax.f32 %v1118_v36, 0.0  ;;  %v1183_v57 = vmax.f32 %v1119_v37, 0.0  ;;  %8363 = vst [vmem:[#allocation39_spill] sm:$0xff] %v4576_v17  ;;  %v358_v36 = vadd.s32 256, %v4293_v50  ;;  %v884_v33 = vadd.f32 %v820_v4, %v707_v3 }
  0xeb   : > { %v885_v43 = vadd.f32 %v821_v20, %v708_v16  ;;  %v4601_v4 = vand.u32 127, %v363_v40  ;;  %v1038_v20 = vmul.f32 %v4347_v14, %v4576_v17 }
  0xec   : > { %3447 = vmatpush.msk.msra.mxu0 %vm8208_vm6, %v1182_v51  ;;  %3495 = vmatpush.msk.msra.mxu2 %vm8209_vm7, %v1183_v57  ;;  %v4568_v42 = vsel %vm8208_vm6, %v1182_v51, 0.0  ;;  %v4572_v0 = vsel %vm8209_vm7, %v1183_v57, 0.0  ;;  %v635_v51 = vmul.f32 %v4333_v2, %v4497_v35  ;;  %v636_v57 = vmul.f32 %v4321_v62, %v4497_v35 }
  0xed   : > { %8361 = vst [vmem:[#allocation37_spill] sm:$0xff] %v4568_v42  ;;  %v4579_v37 = vpop.permute.xlu1 %997  ;;  %1586 = vrot.lane.b32.xlu2 %v4568_v42, %s8331_s26  ;;  %vm8295_vm8 = vcmp.lt.s32.totalorder %v4601_v4, 1  ;;  %vm981_vm11 = vcmp.ge.s32.totalorder %v4601_v4, 127  ;;  %vm8296_vm13 = vcmp.lt.s32.totalorder %v4601_v4, 74 }
  0xee   : > { %8362 = vst [vmem:[#allocation38_spill] sm:$0xff] %v4572_v0  ;;  %v4587_v19 = vpop.permute.xlu0 %774  ;;  %1602 = vrot.lane.b32.xlu0 %v4572_v0, %s8331_s26  ;;  %v1046_v41 = vmul.f32 %v4347_v14, %v4579_v37  ;;  %v1047_v26 = vmul.f32 %v4341_v10, %v4579_v37  ;;  %v699_v42 = vadd.f32 %v635_v51, %v4523_v13 }
  0xef   : > { %8364 = vst [vmem:[#allocation40_spill] sm:$0xff] %v4579_v37  ;;  %v812_v2 = vmul.f32 %v4587_v19, %v4156_v6  ;;  %v700_v62 = vadd.f32 %v636_v57, %v4523_v13  ;;  %v813_v38 = vmul.f32 %v4587_v19, %v4165_v7  ;;  %v1039_v51 = vmul.f32 %v4341_v10, %v4576_v17 }
  0xf0   : > { %v1110_v27 = vadd.f32 %v1046_v41, %v884_v33  ;;  %v1111_v0 = vadd.f32 %v1047_v26, %v885_v43  ;;  %8365 = vst [vmem:[#allocation41_spill] sm:$0xff] %v4601_v4  ;;  %v4607_v6 = vand.u32 127, %v358_v36 }
  0xf1   : > { %v876_v3 = vadd.f32 %v812_v2, %v699_v42  ;;  %v877_v16 = vadd.f32 %v813_v38, %v700_v62 }
  0xf2   : > { %v1174_v58 = vmax.f32 %v1110_v27, 0.0  ;;  %v1175_v60 = vmax.f32 %v1111_v0, 0.0  ;;  %8366 = vst [vmem:[#allocation42_spill] sm:$0xff] %v4607_v6  ;;  %vm573_vm9 = vcmp.lt.s32.totalorder %v4607_v6, 1  ;;  %vm976_vm10 = vcmp.ge.s32.totalorder %v4607_v6, 127 }
  0xf3   : > { %v1102_v57 = vadd.f32 %v1038_v20, %v876_v3  ;;  %v1103_v21 = vadd.f32 %v1039_v51, %v877_v16  ;;  %v870_v51 = vmul.f32 %v4349_v15, %v4181_v11  ;;  %vm8191_vm12 = vcmp.lt.s32.totalorder %v4607_v6, 74 }
  0xf4   : > { %3448 = vmatpush.msk.msra.mxu0 %vm8208_vm6, %v1174_v58  ;;  %3496 = vmatpush.msk.msra.mxu2 %vm8209_vm7, %v1175_v60  ;;  %v4616_v7 = vsel %vm8209_vm7, %v1175_v60, 0.0  ;;  %v4620_v43 = vsel %vm8208_vm6, %v1174_v58, 0.0  ;;  %v4635_v58 = vpop.permute.xlu2 %955 }
  0xf5   : > { %v4622_v10 = vpop.permute.xlu1 %558  ;;  %1600 = vrot.lane.b32.xlu2 %v4616_v7, %s8331_s26  ;;  %1584 = vrot.lane.b32.xlu1 %v4620_v43, %s8331_s26  ;;  %v1166_v14 = vmax.f32 %v1102_v57, 0.0  ;;  %v1167_v27 = vmax.f32 %v1103_v21, 0.0 }
  0xf6   : > { %8367 = vst [vmem:[#allocation43_spill] sm:$0xff] %v4622_v10  ;;  %v563_v38 = vsel %vm562_vm1, %v4622_v10, %v4289_v47  ;;  %v4633_v26 = vpop.permute.xlu0 %550  ;;  %v8463_v6 = vld [vmem:[#allocation40_spill] sm:$0xff] }
  0xf7   : > { %v586_v60 = vsel %vm8295_vm8, 0.0, %v563_v38  ;;  %v568_v40 = vsel %vm562_vm1, %v4302_v55, %v4633_v26  ;;  %3449 = vmatpush.msk.msra.mxu0 %vm8208_vm6, %v1166_v14  ;;  %3497 = vmatpush.msk.msra.mxu2 %vm8209_vm7, %v1167_v27  ;;  %v4649_v47 = vsel %vm8208_vm6, %v1166_v14, 0.0  ;;  %v970_v55 = vsel %vm965_vm3, %v4319_v61, %v4635_v58 }
  0xf8   : > { %v4651_v21 = vperm.slane %v586_v60, 0  ;;  %v581_v42 = vsel %vm573_vm9, 0.0, %v568_v40  ;;  %1582 = vrot.lane.b32.xlu0 %v4649_v47, %s8331_s26  ;;  %v4670_v41 = vsel %vm8209_vm7, %v1167_v27, 0.0  ;;  %v984_v2 = vsel %vm976_vm10, 0.0, %v970_v55 }
  0xf9   : > { %v4657_v0 = vperm.slane %v581_v42, 0  ;;  %v4687_v16 = vperm.slane %v984_v2, 0  ;;  %v875_v14 = vmul.f32 %v4349_v15, %v4153_v5 }
  0xfa   : > { %v698_v36 = vmul.f32 %v4651_v21, %v4283_v44  ;;  %v658_v42 = vmul.f32 %v4651_v21, %v4471_v18  ;;  %v650_v10 = vmul.f32 %v4651_v21, %v4491_v29 }
  0xfb   : > { %v693_v33 = vmul.f32 %v4657_v0, %v4283_v44  ;;  %v1096_v40 = vmul.f32 %v4687_v16, %v4298_v53  ;;  %v685_v2 = vmul.f32 %v4657_v0, %v4287_v45 }
  0xfc   : > { %v762_v20 = vadd.f32 %v698_v36, %v4296_v52 }
  0xfd   : > { %1324 = vrot.lane.b32.xlu2 %v4379_v32, %s4037_s12  ;;  %1598 = vrot.lane.b32.xlu1 %v4670_v41, %s8331_s26  ;;  %v757_v62 = vadd.f32 %v693_v33, %v4296_v52  ;;  %v867_v33 = vmul.f32 %v4343_v12, %v4153_v5 }
  0xfe   : > { %v4679_v61 = vpop.permute.xlu0 %963  ;;  %v939_v38 = vadd.f32 %v875_v14, %v762_v20  ;;  %v827_v20 = vmul.f32 %v4545_v1, %v4153_v5  ;;  %v1056_v14 = vmul.f32 %v4687_v16, %v4533_v56 }
  0xff   : > { %8368 = vst [vmem:[#allocation44_spill] sm:$0xff] %v4679_v61  ;;  %v973_v3 = vsel %vm965_vm3, %v4679_v61, %v4266_v39  ;;  %v934_v27 = vadd.f32 %v870_v51, %v757_v62  ;;  %v690_v39 = vmul.f32 %v4651_v21, %v4287_v45  ;;  %v830_v62 = vmul.f32 %v4475_v24, %v4181_v11 }
 0x100   : > { %v989_v32 = vsel %vm981_vm11, 0.0, %v973_v3  ;;  %1340 = vrot.lane.b32.xlu0 %v4375_v31, %s4037_s12  ;;  %v722_v51 = vadd.f32 %v658_v42, %v4495_v34  ;;  %v653_v61 = vmul.f32 %v4657_v0, %v4471_v18 }
 0x101   : > { %v4695_v57 = vperm.slane %v989_v32, 0  ;;  %v4713_v55 = vadd.f32 %v1096_v40, %v934_v27  ;;  %v754_v36 = vadd.f32 %v690_v39, %v4315_v59  ;;  %v822_v32 = vmul.f32 %v4545_v1, %v4181_v11 }
 0x102   : > { %v1048_v27 = vmul.f32 %v4687_v16, %v4579_v37  ;;  %v819_v39 = vmul.f32 %v4587_v19, %v4153_v5 }
 0x103   : > { %v1101_v60 = vmul.f32 %v4695_v57, %v4298_v53  ;;  %v1061_v40 = vmul.f32 %v4695_v57, %v4533_v56  ;;  %v1093_v42 = vmul.f32 %v4695_v57, %v4399_v46 }
 0x105   : > { %1338 = vrot.lane.b32.xlu2 %v4427_v22, %s4037_s12  ;;  %1322 = vrot.lane.b32.xlu1 %v4431_v23, %s4037_s12  ;;  %v4709_v31 = vadd.f32 %v1101_v60, %v939_v38  ;;  %v862_v22 = vmul.f32 %v4343_v12, %v4181_v11  ;;  %v835_v23 = vmul.f32 %v4475_v24, %v4153_v5 }
 0x106   : > { %v931_v38 = vadd.f32 %v867_v33, %v754_v36  ;;  %v749_v60 = vadd.f32 %v685_v2, %v4315_v59  ;;  %v1053_v33 = vmul.f32 %v4695_v57, %v4579_v37  ;;  %v645_v2 = vmul.f32 %v4657_v0, %v4491_v29 }
 0x107   : > { %8369 = vst [vmem:[#allocation45_spill] sm:$0xff] %v4709_v31  ;;  %v899_v3 = vadd.f32 %v835_v23, %v722_v51  ;;  %v8370_v24 = vmax.f32 %v4709_v31, 0.0  ;;  %v642_v23 = vmul.f32 %v4651_v21, %v4497_v35  ;;  %v8373_v31 = vmax.f32 %v4713_v55, 0.0 }
 0x108   : > { %1320 = vrot.lane.b32.xlu0 %v4461_v8, %s4037_s12  ;;  %v714_v8 = vadd.f32 %v650_v10, %v4507_v49  ;;  %v709_v37 = vadd.f32 %v645_v2, %v4507_v49  ;;  %v637_v10 = vmul.f32 %v4657_v0, %v4497_v35 }
 0x109   : > { %v4756_v36 = vsel %vm8296_vm13, %v8370_v24, 0.0  ;;  %v4768_v51 = vadd.f32 %v1061_v40, %v899_v3  ;;  %v717_v24 = vadd.f32 %v653_v61, %v4495_v34  ;;  %v4776_v56 = vsel %vm8191_vm12, %v8373_v31, 0.0 }
 0x10a   : > { %8371 = vst [vmem:[#allocation46_spill] sm:$0xff] %v4756_v36  ;;  %v706_v1 = vadd.f32 %v642_v23, %v4523_v13  ;;  %v891_v40 = vadd.f32 %v827_v20, %v714_v8  ;;  %v926_v61 = vadd.f32 %v862_v22, %v749_v60  ;;  %v677_v31 = vmul.f32 %v4657_v0, %v4291_v48 }
 0x10b   : > { %8372 = vst [vmem:[#allocation47_spill] sm:$0xff] %v4768_v51  ;;  %v894_v3 = vadd.f32 %v830_v62, %v717_v24  ;;  %v886_v2 = vadd.f32 %v822_v32, %v709_v37  ;;  %v814_v62 = vmul.f32 %v4587_v19, %v4181_v11  ;;  %v1088_v20 = vmul.f32 %v4687_v16, %v4399_v46 }
 0x10c   : > { %8374 = vst [vmem:[#allocation48_spill] sm:$0xff] %v4776_v56  ;;  %v883_v34 = vadd.f32 %v819_v39, %v706_v1  ;;  %v4792_v49 = vadd.f32 %v1053_v33, %v891_v40  ;;  %v682_v22 = vmul.f32 %v4651_v21, %v4291_v48  ;;  %v1040_v32 = vmul.f32 %v4687_v16, %v4576_v17  ;;  %v8379_v33 = vld [vmem:[#allocation25_spill] sm:$0xff] }
 0x10d   : > { %1436 = vrot.lane.b32.xlu2 %v4756_v36, %s4037_s12  ;;  %1336 = vrot.lane.b32.xlu1 %v4465_v9, %s4037_s12  ;;  %v1045_v36 = vmul.f32 %v4695_v57, %v4576_v17  ;;  %v4782_v9 = vadd.f32 %v1093_v42, %v931_v38  ;;  %v4790_v23 = vadd.f32 %v1056_v14, %v894_v3 }
 0x10e   : > { %8376 = vst [vmem:[#allocation50_spill] sm:$0xff] %v4792_v49  ;;  %v701_v38 = vadd.f32 %v637_v10, %v4523_v13  ;;  %v4801_v8 = vadd.f32 %v1048_v27, %v886_v2  ;;  %v4808_v14 = vadd.f32 %v1088_v20, %v926_v61  ;;  %v741_v39 = vadd.f32 %v677_v31, %v4367_v30 }
 0x10f   : > { %8375 = vst [vmem:[#allocation49_spill] sm:$0xff] %v4782_v9  ;;  %v4803_v60 = vadd.f32 %v1045_v36, %v883_v34  ;;  %v8140_v1 = vmax.f32 %v4782_v9, 0.0  ;;  %v746_v34 = vadd.f32 %v682_v22, %v4367_v30  ;;  %v854_v42 = vmul.f32 %v4323_v63, %v4181_v11 }
 0x110   : > { %1628 = vrot.lane.b32.xlu0 %v4776_v56, %s8331_s26  ;;  %v878_v37 = vadd.f32 %v814_v62, %v701_v38  ;;  %v1085_v24 = vmul.f32 %v4695_v57, %v8379_v33  ;;  %v1080_v10 = vmul.f32 %v4687_v16, %v8379_v33  ;;  %v8382_v38 = vld [vmem:[#allocation35_spill] sm:$0xff]  ;;  %v8383_v62 = vld [vmem:[#allocation34_spill] sm:$0xff] }
 0x111   : > { %8377 = vst [vmem:[#allocation51_spill] sm:$0xff] %v4803_v60  ;;  %v4824_v36 = vsel %vm8296_vm13, %v8140_v1, 0.0  ;;  %v918_v3 = vadd.f32 %v854_v42, %v741_v39 }
 0x112   : > { %v4815_v27 = vadd.f32 %v1040_v32, %v878_v37  ;;  %8378 = vst [vmem:[#allocation52_spill] sm:$0xff] %v4824_v36  ;;  %v8384_v37 = vld [vmem:[#allocation19_spill] sm:$0xff] }
 0x113   : > { %v4843_v2 = vadd.f32 %v1080_v10, %v918_v3  ;;  %v669_v32 = vmul.f32 %v4657_v0, %v8384_v37  ;;  %v674_v39 = vmul.f32 %v4651_v21, %v8384_v37 }
 0x115   : > { %1334 = vrot.lane.b32.xlu2 %v4489_v28, %s4037_s12  ;;  %1318 = vrot.lane.b32.xlu1 %v4483_v25, %s4037_s12  ;;  %v8142_v28 = vmax.f32 %v4808_v14, 0.0  ;;  %v859_v25 = vmul.f32 %v4323_v63, %v4153_v5  ;;  %v8141_v22 = vmax.f32 %v4843_v2, 0.0 }
 0x117   : > { %v923_v40 = vadd.f32 %v859_v25, %v746_v34  ;;  %v4839_v61 = vsel %vm8191_vm12, %v8142_v28, 0.0  ;;  %v4867_v42 = vsel %vm8191_vm12, %v8141_v22, 0.0  ;;  %v8387_v25 = vld [vmem:[#allocation22_spill] sm:$0xff]  ;;  %v8430_v22 = vmax.f32 %v4843_v2, 0.0 }
 0x118   : > { %1434 = vrot.lane.b32.xlu0 %v4824_v36, %s4037_s12  ;;  %8380 = vst [vmem:[#allocation53_spill] sm:$0xff] %v4839_v61  ;;  %v738_v3 = vadd.f32 %v674_v39, %v8387_v25  ;;  %v4889_v39 = vpop.permute.xlu2 %1612 }
 0x119   : > { %v4841_v31 = vadd.f32 %v1085_v24, %v923_v40  ;;  %8386 = vst [vmem:[#allocation34_spill] sm:$0xff] %v4867_v42  ;;  %v733_v24 = vadd.f32 %v669_v32, %v8387_v25  ;;  %v8388_v40 = vld [vmem:[#allocation26_spill] sm:$0xff] }
 0x11a   : > { %v846_v10 = vmul.f32 %v8388_v40, %v4181_v11 }
 0x11b   : > { %8381 = vst [vmem:[#allocation54_spill] sm:$0xff] %v4841_v31  ;;  %v8139_v20 = vmax.f32 %v4841_v31, 0.0 }
 0x11c   : > { %v910_v1 = vadd.f32 %v846_v10, %v733_v24  ;;  %v8395_v10 = vld [vmem:[#allocation5_spill] sm:$0xff] }
 0x11d   : > { %1626 = vrot.lane.b32.xlu1 %v4839_v61, %s8331_s26  ;;  %1316 = vrot.lane.b32.xlu2 %v8382_v38, %s4037_s12  ;;  %v4861_v34 = vsel %vm8296_vm13, %v8139_v20, 0.0  ;;  %v8389_v38 = vld [vmem:[#allocation7_spill] sm:$0xff]  ;;  %v8390_v20 = vld [vmem:[#allocation24_spill] sm:$0xff] }
 0x11e   : > { %8385 = vst [vmem:[#allocation35_spill] sm:$0xff] %v4861_v34  ;;  %v1077_v32 = vmul.f32 %v4695_v57, %v8390_v20  ;;  %v1072_v9 = vmul.f32 %v4687_v16, %v8390_v20  ;;  %v8399_v20 = vld [vmem:[#allocation38_spill] sm:$0xff] }
 0x120   : > { %1332 = vrot.lane.b32.xlu0 %v8383_v62, %s4037_s12  ;;  %v851_v62 = vmul.f32 %v8388_v40, %v4153_v5 }
 0x122   : > { %v915_v31 = vadd.f32 %v851_v62, %v738_v3  ;;  %v8397_v62 = vld [vmem:[#allocation37_spill] sm:$0xff] }
 0x124   : > { %v4910_v3 = vadd.f32 %v1077_v32, %v915_v31  ;;  %v8401_v32 = vld [vmem:[#allocation32_spill] sm:$0xff] }
 0x125   : > { %1432 = vrot.lane.b32.xlu1 %v4861_v34, %s4037_s12  ;;  %1624 = vrot.lane.b32.xlu2 %v4867_v42, %s8331_s26  ;;  %v8394_v34 = vld [vmem:[#allocation18_spill] sm:$0xff]  ;;  %v4902_v42 = vperm.slane %v8395_v10, 4 }
 0x126   : > { %v666_v36 = vmul.f32 %v4651_v21, %v8394_v34  ;;  %v661_v61 = vmul.f32 %v4657_v0, %v8394_v34  ;;  %8396 = vst [vmem:[#allocation22_spill] sm:$0xff] %v4910_v3  ;;  %v4912_v21 = vadd.f32 %v1072_v9, %v910_v1  ;;  %v8156_v17 = vmax.f32 %v4910_v3, 0.0  ;;  %v8400_v9 = vld [vmem:[#allocation27_spill] sm:$0xff] }
 0x127   : > { %v843_v1 = vmul.f32 %v8400_v9, %v4153_v5 }
 0x128   : > { %552 = vrot.lane.b32.xlu0 %v8389_v38, %s4037_s12  ;;  %v8158_v31 = vmax.f32 %v4912_v21, 0.0 }
 0x12a   : > { %v4891_v28 = vpop.permute.xlu1 %1596 }
 0x12b   : > { %8393 = vst [vmem:[#allocation19_spill] sm:$0xff] %v4891_v28  ;;  %v1765_v24 = vsel %vm965_vm3, %v4891_v28, %v4889_v39  ;;  %v8398_v28 = vld [vmem:[#allocation21_spill] sm:$0xff] }
 0x12c   : > { %3467 = vmatpush.msk.msra.mxu1 %vm4885_vm14, %v1765_v24  ;;  %3903 = vmatpush.msk.msra.mxu3 %vm4885_vm14, %v1765_v24  ;;  %v730_v56 = vadd.f32 %v666_v36, %v8398_v28  ;;  %v725_v0 = vadd.f32 %v661_v61, %v8398_v28  ;;  %v1069_v24 = vmul.f32 %v4695_v57, %v8401_v32  ;;  %v4934_v61 = vsel %vm8296_vm13, %v8156_v17, 0.0  ;;  %v4944_v57 = vpop.permute.xlu2 %1592 }
 0x12d   : > { %554 = vrot.lane.b32.xlu1 %v4902_v42, %s4037_s12  ;;  %1314 = vrot.lane.b32.xlu2 %v8397_v62, %s4037_s12  ;;  %v838_v62 = vmul.f32 %v8400_v9, %v4181_v11  ;;  %8402 = vst [vmem:[#allocation26_spill] sm:$0xff] %v4934_v61  ;;  %v1064_v11 = vmul.f32 %v4687_v16, %v8401_v32  ;;  %v5007_v17 = vperm.slane %v8395_v10, 5  ;;  %v8159_v10 = vmax.f32 %v4768_v51, 0.0 }
 0x12e   : > { %v907_v33 = vadd.f32 %v843_v1, %v730_v56  ;;  %8404 = vst [vmem:[#allocation5_spill] sm:$0xff] %v4944_v57 }
 0x12f   : > { %v902_v36 = vadd.f32 %v838_v62, %v725_v0  ;;  %8409 = vst [vmem:[#allocation55_spill] sm:$0xff] %v5007_v17 }
 0x130   : > { %1330 = vrot.lane.b32.xlu0 %v8399_v20, %s4037_s12  ;;  %v4940_v20 = vsel %vm8191_vm12, %v8158_v31, 0.0  ;;  %v4942_v5 = vadd.f32 %v1069_v24, %v907_v33 }
 0x131   : > { %v4952_v56 = vadd.f32 %v1064_v11, %v902_v36 }
 0x132   : > { %8403 = vst [vmem:[#allocation7_spill] sm:$0xff] %v4942_v5  ;;  %v8155_v33 = vmax.f32 %v4942_v5, 0.0 }
 0x133   : > { %v8157_v16 = vmax.f32 %v4952_v56, 0.0  ;;  %v8432_v2 = vmax.f32 %v4952_v56, 0.0 }
 0x134   : > { %v4980_v62 = vpop.permute.xlu2 %1606 }
 0x135   : > { %1430 = vrot.lane.b32.xlu1 %v4934_v61, %s4037_s12  ;;  %1622 = vrot.lane.b32.xlu2 %v4940_v20, %s8331_s26  ;;  %v4986_v36 = vsel %vm8191_vm12, %v8157_v16, 0.0  ;;  %v1184_v16 = vmax.f32 %v4790_v23, 0.0  ;;  %v8164_v23 = vmax.f32 %v4792_v49, 0.0 }
 0x136   : > { %8407 = vst [vmem:[#allocation38_spill] sm:$0xff] %v4986_v36 }
 0x138   : > { %v4954_v0 = vpop.permute.xlu1 %1610  ;;  %v4956_v1 = vpop.permute.xlu0 %1594  ;;  %1312 = vrot.lane.b32.xlu0 %v4620_v43, %s4037_s12  ;;  %v4974_v43 = vsel %vm8296_vm13, %v8155_v33, 0.0 }
 0x139   : > { %8405 = vst [vmem:[#allocation37_spill] sm:$0xff] %v4956_v1  ;;  %v1764_v24 = vsel %vm965_vm3, %v4956_v1, %v4954_v0 }
 0x13a   : > { %3469 = vmatpush.msk.msra.mxu1 %vm4885_vm14, %v1764_v24  ;;  %3904 = vmatpush.msk.msra.mxu3 %vm4885_vm14, %v1764_v24  ;;  %8406 = vst [vmem:[#allocation21_spill] sm:$0xff] %v4974_v43 }
 0x13d   : > { %1328 = vrot.lane.b32.xlu1 %v4616_v7, %s4037_s12  ;;  %1428 = vrot.lane.b32.xlu2 %v4974_v43, %s4037_s12  ;;  %v8429_v43 = vmax.f32 %v4808_v14, 0.0 }
 0x140   : > { %v4988_v11 = vpop.permute.xlu0 %1608  ;;  %1620 = vrot.lane.b32.xlu0 %v4986_v36, %s8331_s26 }
 0x141   : > { %v1763_v7 = vsel %vm965_vm3, %v4944_v57, %v4988_v11  ;;  %v1168_v57 = vmax.f32 %v4815_v27, 0.0 }
 0x142   : > { %v4996_v24 = vpop.permute.xlu1 %1590  ;;  %3471 = vmatpush.msk.msra.mxu1 %vm4885_vm14, %v1763_v7  ;;  %3905 = vmatpush.msk.msra.mxu3 %vm4885_vm14, %v1763_v7 }
 0x143   : > { %8408 = vst [vmem:[#allocation32_spill] sm:$0xff] %v4996_v24  ;;  %v1762_v33 = vsel %vm965_vm3, %v4996_v24, %v4980_v62  ;;  %v8167_v24 = vmax.f32 %v4803_v60, 0.0 }
 0x144   : > { %3473 = vmatpush.msk.msra.mxu1 %vm4885_vm14, %v1762_v33  ;;  %3906 = vmatpush.msk.msra.mxu3 %vm4885_vm14, %v1762_v33  ;;  %v5027_v33 = vsel %vm8296_vm13, %v8159_v10, 0.0  ;;  %v1176_v10 = vmax.f32 %v4801_v8, 0.0 }
 0x145   : > { %957 = vrot.lane.b32.xlu1 %v4902_v42, %s8331_s26  ;;  %959 = vrot.lane.b32.xlu2 %v5007_v17, %s8331_s26  ;;  %8411 = vst [vmem:[#allocation57_spill] sm:$0xff] %v5027_v33  ;;  %v5062_v8 = vsel %vm8296_vm13, %v8167_v24, 0.0  ;;  %v5081_v24 = vsel %vm8191_vm12, %v1168_v57, 0.0 }
 0x146   : > { %v5052_v51 = vsel %vm8191_vm12, %v1176_v10, 0.0  ;;  %8415 = vst [vmem:[#allocation61_spill] sm:$0xff] %v5062_v8 }
 0x147   : > { %v5017_v7 = vpop.permute.xlu2 %1586  ;;  %8414 = vst [vmem:[#allocation60_spill] sm:$0xff] %v5052_v51 }
 0x148   : > { %8410 = vst [vmem:[#allocation56_spill] sm:$0xff] %v5017_v7  ;;  %1310 = vrot.lane.b32.xlu0 %v4649_v47, %s4037_s12  ;;  %v5037_v47 = vsel %vm8191_vm12, %v1184_v16, 0.0 }
 0x149   : > { %8412 = vst [vmem:[#allocation58_spill] sm:$0xff] %v5037_v47 }
 0x14a   : > { %8417 = vst [vmem:[#allocation63_spill] sm:$0xff] %v5081_v24 }
 0x14d   : > { %1326 = vrot.lane.b32.xlu1 %v4670_v41, %s4037_s12  ;;  %1426 = vrot.lane.b32.xlu2 %v5027_v33, %s4037_s12  ;;  %v5048_v41 = vsel %vm8296_vm13, %v8164_v23, 0.0 }
 0x14e   : > { %8413 = vst [vmem:[#allocation59_spill] sm:$0xff] %v5048_v41 }
 0x14f   : > { %v5033_v31 = vpop.permute.xlu2 %1600 }
 0x150   : > { %1618 = vrot.lane.b32.xlu0 %v5037_v47, %s8331_s26 }
 0x155   : > { %1424 = vrot.lane.b32.xlu1 %v5048_v41, %s4037_s12  ;;  %1616 = vrot.lane.b32.xlu2 %v5052_v51, %s8331_s26 }
 0x157   : > { %v1325_v5 = vpop.permute.xlu2 %1324 }
 0x158   : > { %v5064_v49 = vpop.permute.xlu1 %1604  ;;  %1422 = vrot.lane.b32.xlu0 %v5062_v8, %s4037_s12  ;;  %v5068_v23 = vpop.permute.xlu0 %1588 }
 0x159   : > { %8416 = vst [vmem:[#allocation62_spill] sm:$0xff] %v5068_v23  ;;  %v1761_v3 = vsel %vm965_vm3, %v5068_v23, %v5064_v49 }
 0x15a   : > { %3475 = vmatpush.msk.msra.mxu1 %vm4885_vm14, %v1761_v3  ;;  %3907 = vmatpush.msk.msra.mxu3 %vm4885_vm14, %v1761_v3 }
 0x15d   : > { %1614 = vrot.lane.b32.xlu1 %v5081_v24, %s8331_s26 }
 0x15f   : > { %v5085_v60 = vpop.permute.xlu2 %1338 }
 0x160   : > { %8418 = vst [vmem:[#allocation64_spill] sm:$0xff] %v5085_v60  ;;  %v5087_v27 = vpop.permute.xlu0 %1602 }
 0x161   : > { %v1760_v23 = vsel %vm965_vm3, %v5017_v7, %v5087_v27 }
 0x162   : > { %3477 = vmatpush.msk.msra.mxu1 %vm4885_vm14, %v1760_v23  ;;  %3908 = vmatpush.msk.msra.mxu3 %vm4885_vm14, %v1760_v23 }
 0x167   : > { %v5103_v1 = vpop.permute.xlu1 %1584  ;;  %v5105_v4 = vpop.permute.xlu2 %1436 }
 0x168   : > { %8421 = vst [vmem:[#allocation65_spill] sm:$0xff] %v5103_v1  ;;  %v1501_v7 = vsel %vm562_vm1, %v5105_v4, %v1325_v5  ;;  %v1759_v8 = vsel %vm965_vm3, %v5103_v1, %v5033_v31 }
 0x169   : > { %8422 = vst [vmem:[#allocation66_spill] sm:$0xff] %v5105_v4  ;;  %3451 = vmatpush.msk.msra.mxu0 %vm5099_vm15, %v1501_v7  ;;  %3479 = vmatpush.msk.msra.mxu1 %vm4885_vm14, %v1759_v8  ;;  %v8428_v4 = vmax.f32 %v4713_v55, 0.0 }
 0x16a   : > { %3909 = vmatpush.msk.msra.mxu3 %vm4885_vm14, %v1759_v8  ;;  %v5120_v23 = vpop.permute.xlu0 %1582 }
 0x16b   : > { %8423 = vst [vmem:[#allocation67_spill] sm:$0xff] %v5120_v23 }
 0x16f   : > { %v5122_v41 = vpop.permute.xlu1 %1598  ;;  %v5124_v33 = vpop.permute.xlu2 %1334 }
 0x170   : > { %8424 = vst [vmem:[#allocation68_spill] sm:$0xff] %v5124_v33  ;;  %v1758_v1 = vsel %vm965_vm3, %v5120_v23, %v5122_v41 }
 0x171   : > { %3481 = vmatpush.msk.msra.mxu1 %vm4885_vm14, %v1758_v1  ;;  %3910 = vmatpush.msk.msra.mxu3 %vm4885_vm14, %v1758_v1 }
 0x172   : > { %v5140_v8 = vpop.permute.xlu0 %1340 }
 0x173   : > { %8427 = vst [vmem:[#allocation69_spill] sm:$0xff] %v5140_v8  ;;  %3538 = vmatpush.msk.msrb.mxu1 %vm8191_vm12, %v8428_v4  ;;  %v1493_v23 = vsel %vm562_vm1, %v1325_v5, %v5140_v8  ;;  %v8431_v4 = vmax.f32 %v4912_v21, 0.0 }
 0x174   : > { %3499 = vmatpush.msk.msra.mxu2 %vm5132_vm0, %v1493_v23 }
 0x175   : > { %3539 = vmatpush.msk.msrb.mxu1 %vm8191_vm12, %v8429_v43 }
 0x177   : > { %3540 = vmatpush.msk.msrb.mxu1 %vm8191_vm12, %v8430_v22  ;;  %v1323_v55 = vpop.permute.xlu1 %1322  ;;  %v1317_v1 = vpop.permute.xlu2 %1316 }
 0x178   : > { %v1492_v5 = vsel %vm562_vm1, %v1323_v55, %v5085_v60 }
 0x179   : > { %3541 = vmatpush.msk.msrb.mxu1 %vm8191_vm12, %v8431_v4  ;;  %3501 = vmatpush.msk.msra.mxu2 %vm5132_vm0, %v1492_v5 }
 0x17a   : > { %v1321_v14 = vpop.permute.xlu0 %1320 }
 0x17b   : > { %3542 = vmatpush.msk.msrb.mxu1 %vm8191_vm12, %v8432_v2 }
 0x17d   : > { %3543 = vmatpush.msk.msrb.mxu1 %vm8191_vm12, %v1184_v16 }
 0x17f   : > { %3544 = vmatpush.msk.msrb.mxu1 %vm8191_vm12, %v1176_v10  ;;  %v5176_v21 = vpop.permute.xlu1 %1336  ;;  %v5178_v43 = vpop.permute.xlu2 %1624 }
 0x180   : > { %8433 = vst [vmem:[#allocation70_spill] sm:$0xff] %v5176_v21  ;;  %v1491_v56 = vsel %vm562_vm1, %v1321_v14, %v5176_v21  ;;  %v864_v21 = vmul.f32 %v4343_v12, %v4902_v42 }
 0x181   : > { %8434 = vst [vmem:[#allocation71_spill] sm:$0xff] %v5178_v43  ;;  %3545 = vmatpush.msk.msrb.mxu1 %vm8191_vm12, %v1168_v57  ;;  %3503 = vmatpush.msk.msra.mxu2 %vm5132_vm0, %v1491_v56 }
 0x182   : > { %v5193_v16 = vpop.permute.xlu0 %1628 }
 0x183   : > { %8437 = vst [vmem:[#allocation72_spill] sm:$0xff] %v5193_v16  ;;  %v1757_v57 = vsel %vm965_vm3, %v4889_v39, %v5193_v16 }
 0x184   : > { %3515 = vmatpush.msk.msrb.mxu3 %vm5187_vm2, %v1757_v57 }
 0x187   : > { %v1319_v10 = vpop.permute.xlu1 %1318  ;;  %v1315_v22 = vpop.permute.xlu2 %1314 }
 0x188   : > { %v1490_v4 = vsel %vm562_vm1, %v1319_v10, %v5124_v33 }
 0x189   : > { %3505 = vmatpush.msk.msra.mxu2 %vm5132_vm0, %v1490_v4 }
 0x18a   : > { %v5206_v5 = vpop.permute.xlu0 %1434 }
 0x18b   : > { %8438 = vst [vmem:[#allocation73_spill] sm:$0xff] %v5206_v5  ;;  %v1500_v2 = vsel %vm562_vm1, %v5206_v5, %v1323_v55  ;;  %v1755_v55 = vsel %vm965_vm3, %v4988_v11, %v5178_v43 }
 0x18c   : > { %3453 = vmatpush.msk.msra.mxu0 %vm5099_vm15, %v1500_v2 }
 0x18f   : > { %v5213_v39 = vpop.permute.xlu1 %1626  ;;  %v5215_v56 = vpop.permute.xlu2 %1622 }
 0x190   : > { %8439 = vst [vmem:[#allocation74_spill] sm:$0xff] %v5213_v39  ;;  %v1756_v57 = vsel %vm965_vm3, %v4954_v0, %v5213_v39  ;;  %v1754_v0 = vsel %vm965_vm3, %v4980_v62, %v5215_v56  ;;  %v359_v62 = vadd.s32 384, %v4293_v50 }
 0x191   : > { %8440 = vst [vmem:[#allocation75_spill] sm:$0xff] %v5215_v56  ;;  %3517 = vmatpush.msk.msrb.mxu3 %vm5187_vm2, %v1756_v57 }
 0x192   : > { %v5223_v4 = vpop.permute.xlu0 %1332 }
 0x193   : > { %8441 = vst [vmem:[#allocation76_spill] sm:$0xff] %v5223_v4  ;;  %v1489_v2 = vsel %vm562_vm1, %v1317_v1, %v5223_v4  ;;  %3519 = vmatpush.msk.msrb.mxu3 %vm5187_vm2, %v1755_v55 }
 0x194   : > { %3507 = vmatpush.msk.msra.mxu2 %vm5132_vm0, %v1489_v2 }
 0x195   : > { %3521 = vmatpush.msk.msrb.mxu3 %vm5187_vm2, %v1754_v0  ;;  %v360_v0 = vadd.s32 512, %v4293_v50 }
 0x197   : > { %v5242_v57 = vpop.permute.xlu1 %1432  ;;  %v5244_v11 = vpop.permute.xlu2 %1428 }
 0x198   : > { %8442 = vst [vmem:[#allocation77_spill] sm:$0xff] %v5242_v57  ;;  %v1499_v54 = vsel %vm562_vm1, %v5242_v57, %v1321_v14  ;;  %v5264_v14 = vand.u32 127, %v359_v62 }
 0x199   : > { %8443 = vst [vmem:[#allocation78_spill] sm:$0xff] %v5244_v11  ;;  %3455 = vmatpush.msk.msra.mxu0 %vm5099_vm15, %v1499_v54  ;;  %v5266_v54 = vand.u32 127, %v360_v0 }
 0x19a   : > { %v553_v55 = vpop.permute.xlu0 %552  ;;  %8447 = vst [vmem:[#allocation82_spill] sm:$0xff] %v5264_v14  ;;  %vm574_vm4 = vcmp.lt.s32.totalorder %v5264_v14, 1  ;;  %vm977_vm14 = vcmp.ge.s32.totalorder %v5264_v14, 127  ;;  %vm8271_vm6 = vcmp.lt.s32.totalorder %v5264_v14, 74 }
 0x19b   : > { %8448 = vst [vmem:[#allocation83_spill] sm:$0xff] %v5266_v54  ;;  %v567_v56 = vsel %vm562_vm1, %v4633_v26, %v553_v55  ;;  %vm575_vm5 = vcmp.lt.s32.totalorder %v5266_v54, 1  ;;  %vm978_vm12 = vcmp.ge.s32.totalorder %v5266_v54, 127  ;;  %vm464_vm7 = vcmp.lt.s32.totalorder %v5266_v54, 74 }
 0x19c   : > { %v582_v26 = vsel %vm574_vm4, 0.0, %v567_v56 }
 0x19f   : > { %v5251_v2 = vpop.permute.xlu1 %554  ;;  %v5253_v5 = vpop.permute.xlu2 %959 }
 0x1a0   : > { %8444 = vst [vmem:[#allocation79_spill] sm:$0xff] %v5251_v2 }
 0x1a1   : > { %8445 = vst [vmem:[#allocation80_spill] sm:$0xff] %v5253_v5 }
 0x1a2   : > { %v5257_v61 = vpop.permute.xlu0 %1330 }
 0x1a3   : > { %8446 = vst [vmem:[#allocation81_spill] sm:$0xff] %v5257_v61  ;;  %v1488_v4 = vsel %vm562_vm1, %v1315_v22, %v5257_v61 }
 0x1a4   : > { %3509 = vmatpush.msk.msra.mxu2 %vm5132_vm0, %v1488_v4  ;;  %v566_v4 = vsel %vm562_vm1, %v553_v55, %v5251_v2  ;;  %v5301_v55 = vperm.slane %v582_v26, 0 }
 0x1a5   : > { %v583_v0 = vsel %vm575_vm5, 0.0, %v566_v4 }
 0x1a6   : > { %v686_v26 = vmul.f32 %v5301_v55, %v4287_v45 }
 0x1a7   : > { %v5268_v57 = vpop.permute.xlu1 %1430  ;;  %v5277_v61 = vpop.permute.xlu2 %1426 }
 0x1a8   : > { %8449 = vst [vmem:[#allocation84_spill] sm:$0xff] %v5268_v57  ;;  %v1498_v33 = vsel %vm562_vm1, %v5268_v57, %v1319_v10  ;;  %v1497_v10 = vsel %vm562_vm1, %v5244_v11, %v1317_v1  ;;  %v5305_v1 = vperm.slane %v583_v0, 0 }
 0x1a9   : > { %8450 = vst [vmem:[#allocation85_spill] sm:$0xff] %v5277_v61  ;;  %3457 = vmatpush.msk.msra.mxu0 %vm5099_vm15, %v1498_v33  ;;  %v1496_v33 = vsel %vm562_vm1, %v5277_v61, %v1315_v22 }
 0x1aa   : > { %v5285_v62 = vpop.permute.xlu0 %1312  ;;  %v687_v61 = vmul.f32 %v5305_v1, %v4287_v45  ;;  %v871_v45 = vmul.f32 %v4349_v15, %v8389_v38 }
 0x1ab   : > { %3459 = vmatpush.msk.msra.mxu0 %vm5099_vm15, %v1497_v10  ;;  %v694_v10 = vmul.f32 %v5301_v55, %v4283_v44 }
 0x1ad   : > { %3461 = vmatpush.msk.msra.mxu0 %vm5099_vm15, %v1496_v33  ;;  %v695_v33 = vmul.f32 %v5305_v1, %v4283_v44  ;;  %v5342_v44 = vmul.f32 %v4323_v63, %v8389_v38 }
 0x1af   : > { %v5303_v57 = vpop.permute.xlu1 %1328 }
 0x1b0   : > { %8451 = vst [vmem:[#allocation86_spill] sm:$0xff] %v5303_v57  ;;  %v1487_v56 = vsel %vm562_vm1, %v5285_v62, %v5303_v57  ;;  %v759_v57 = vadd.f32 %v695_v33, %v4296_v52 }
 0x1b1   : > { %3511 = vmatpush.msk.msra.mxu2 %vm5132_vm0, %v1487_v56  ;;  %v758_v56 = vadd.f32 %v694_v10, %v4296_v52 }
 0x1b2   : > { %v5313_v22 = vpop.permute.xlu0 %1620 }
 0x1b3   : > { %8452 = vst [vmem:[#allocation87_spill] sm:$0xff] %v5313_v22  ;;  %v1753_v4 = vsel %vm965_vm3, %v5064_v49, %v5313_v22  ;;  %v750_v49 = vadd.f32 %v686_v26, %v4315_v59  ;;  %v751_v22 = vadd.f32 %v687_v61, %v4315_v59  ;;  %v5379_v61 = vmul.f32 %v8400_v9, %v8389_v38 }
 0x1b4   : > { %3523 = vmatpush.msk.msrb.mxu3 %vm5187_vm2, %v1753_v4 }
 0x1b7   : > { %v958_v0 = vpop.permute.xlu1 %957 }
 0x1b8   : > { %v968_v11 = vsel %vm965_vm3, %v958_v0, %v5253_v5  ;;  %v969_v4 = vsel %vm965_vm3, %v4635_v58, %v958_v0  ;;  %v863_v5 = vmul.f32 %v4343_v12, %v8389_v38  ;;  %v872_v0 = vmul.f32 %v4349_v15, %v4902_v42 }
 0x1b9   : > { %v985_v10 = vsel %vm977_vm14, 0.0, %v969_v4  ;;  %v986_v26 = vsel %vm978_vm12, 0.0, %v968_v11  ;;  %v5362_v4 = vmul.f32 %v4323_v63, %v4902_v42  ;;  %v935_v11 = vadd.f32 %v871_v45, %v758_v56 }
 0x1ba   : > { %v5352_v2 = vperm.slane %v985_v10, 0  ;;  %v5354_v58 = vperm.slane %v986_v26, 0  ;;  %v5356_v33 = vpop.permute.xlu0 %1310  ;;  %v927_v52 = vadd.f32 %v863_v5, %v750_v49  ;;  %v936_v60 = vadd.f32 %v872_v0, %v759_v57 }
 0x1bb   : > { %v847_v45 = vmul.f32 %v8388_v40, %v8389_v38  ;;  %v928_v63 = vadd.f32 %v864_v21, %v751_v22  ;;  %v647_v12 = vmul.f32 %v5305_v1, %v4491_v29  ;;  %v670_v22 = vmul.f32 %v5301_v55, %v8384_v37 }
 0x1bc   : > { %v1097_v10 = vmul.f32 %v5352_v2, %v4298_v53  ;;  %v1089_v26 = vmul.f32 %v5352_v2, %v4399_v46  ;;  %v1098_v15 = vmul.f32 %v5354_v58, %v4298_v53  ;;  %v1090_v57 = vmul.f32 %v5354_v58, %v4399_v46 }
 0x1bd   : > { %v678_v53 = vmul.f32 %v5301_v55, %v4291_v48  ;;  %v1050_v51 = vmul.f32 %v5354_v58, %v8463_v6 }
 0x1be   : > { %v5381_v5 = vadd.f32 %v1097_v10, %v935_v11  ;;  %v5383_v56 = vadd.f32 %v1089_v26, %v927_v52  ;;  %v5385_v49 = vadd.f32 %v1098_v15, %v936_v60  ;;  %v639_v11 = vmul.f32 %v5305_v1, %v4497_v35 }
 0x1bf   : > { %v5389_v0 = vpop.permute.xlu1 %1326  ;;  %v679_v10 = vmul.f32 %v5305_v1, %v4291_v48  ;;  %v662_v26 = vmul.f32 %v5301_v55, %v8394_v34  ;;  %v5432_v59 = vadd.f32 %v1090_v57, %v928_v63  ;;  %v816_v57 = vmul.f32 %v4587_v19, %v4902_v42 }
 0x1c0   : > { %8453 = vst [vmem:[#allocation88_spill] sm:$0xff] %v5385_v49  ;;  %v1486_v52 = vsel %vm562_vm1, %v5356_v33, %v5389_v0  ;;  %v1225_v15 = vmax.f32 %v5381_v5, 0.0  ;;  %v5414_v5 = vpop.permute.xlu2 %1616  ;;  %v8458_v48 = vmax.f32 %v5385_v49, 0.0  ;;  %v8461_v49 = vld [vmem:[#allocation36_spill] sm:$0xff]  ;;  %v703_v63 = vadd.f32 %v639_v11, %v4523_v13  ;;  %v8462_v11 = vld [vmem:[#allocation30_spill] sm:$0xff] }
 0x1c1   : > { %8454 = vst [vmem:[#allocation89_spill] sm:$0xff] %v5389_v0  ;;  %3513 = vmatpush.msk.msra.mxu2 %vm5132_vm0, %v1486_v52  ;;  %v654_v0 = vmul.f32 %v5301_v55, %v4471_v18  ;;  %v8457_v52 = vmax.f32 %v5383_v56, 0.0  ;;  %v824_v39 = vmul.f32 %v8461_v49, %v4902_v42  ;;  %vm5688_vm0 = vmneg %vm976_vm10 }
 0x1c2   : > { %8455 = vst [vmem:[#allocation90_spill] sm:$0xff] %v5414_v5  ;;  %v5416_v60 = vpop.permute.xlu0 %1618  ;;  %v1305_v7 = vsel %vm8271_vm6, %v1225_v15, 0.0  ;;  %v5430_v46 = vsel %vm464_vm7, %v8458_v48, 0.0  ;;  %v742_v48 = vadd.f32 %v678_v53, %v4367_v30  ;;  %v671_v53 = vmul.f32 %v5305_v1, %v8384_v37  ;;  %vm5732_vm10 = vmneg %vm573_vm9 }
 0x1c3   : > { %8456 = vst [vmem:[#allocation91_spill] sm:$0xff] %v5416_v60  ;;  %v5424_v21 = vsel %vm8271_vm6, %v8457_v52, 0.0  ;;  %1644 = vrot.lane.b32.xlu2 %v1305_v7, %s8331_s26  ;;  %v1752_v8 = vsel %vm965_vm3, %v5087_v27, %v5416_v60  ;;  %v8460_v52 = vld [vmem:[#allocation31_spill] sm:$0xff]  ;;  %1660 = vrot.lane.b32.xlu0 %v5430_v46, %s8331_s26  ;;  %v734_v27 = vadd.f32 %v670_v22, %v8387_v25  ;;  %v8465_v22 = vld [vmem:[#allocation25_spill] sm:$0xff] }
 0x1c4   : > { %8459 = vst [vmem:[#allocation92_spill] sm:$0xff] %v5430_v46  ;;  %1642 = vrot.lane.b32.xlu1 %v5424_v21, %s8331_s26  ;;  %v711_v43 = vadd.f32 %v647_v12, %v8460_v52  ;;  %3525 = vmatpush.msk.msrb.mxu3 %vm5187_vm2, %v1752_v8  ;;  %v1751_v12 = vsel %vm965_vm3, %v5033_v31, %v5414_v5  ;;  %v8466_v5 = vld [vmem:[#allocation39_spill] sm:$0xff] }
 0x1c5   : > { %v743_v60 = vadd.f32 %v679_v10, %v4367_v30  ;;  %v646_v46 = vmul.f32 %v5301_v55, %v4491_v29  ;;  %v726_v8 = vadd.f32 %v662_v26, %v8398_v28  ;;  %v718_v16 = vadd.f32 %v654_v0, %v8462_v11 }
 0x1c6   : > { %3527 = vmatpush.msk.msrb.mxu3 %vm5187_vm2, %v1751_v12  ;;  %v1081_v10 = vmul.f32 %v5352_v2, %v8465_v22  ;;  %v1082_v29 = vmul.f32 %v5354_v58, %v8465_v22  ;;  %v888_v30 = vadd.f32 %v824_v39, %v711_v43  ;;  %v1042_v12 = vmul.f32 %v5354_v58, %v8466_v5  ;;  %v8467_v22 = vld [vmem:[#allocation24_spill] sm:$0xff] }
 0x1c7   : > { %v5467_v31 = vpop.permute.xlu1 %1424  ;;  %v919_v26 = vadd.f32 %v5342_v44, %v742_v48  ;;  %v880_v24 = vadd.f32 %v816_v57, %v703_v63  ;;  %v911_v47 = vadd.f32 %v847_v45, %v734_v27  ;;  %v1073_v43 = vmul.f32 %v5352_v2, %v8467_v22  ;;  %v8475_v27 = vld [vmem:[#allocation33_spill] sm:$0xff] }
 0x1c8   : > { %8464 = vst [vmem:[#allocation31_spill] sm:$0xff] %v5467_v31  ;;  %v1495_v0 = vsel %vm562_vm1, %v5467_v31, %v5285_v62  ;;  %v920_v39 = vadd.f32 %v5362_v4, %v743_v60  ;;  %v5487_v36 = vadd.f32 %v1050_v51, %v888_v30  ;;  %v8470_v62 = vmax.f32 %v5432_v59, 0.0  ;;  %v8473_v60 = vld [vmem:[#allocation48_spill] sm:$0xff] }
 0x1c9   : > { %3463 = vmatpush.msk.msra.mxu0 %vm5099_vm15, %v1495_v0  ;;  %v1065_v48 = vmul.f32 %v5352_v2, %v8401_v32  ;;  %v638_v45 = vmul.f32 %v5301_v55, %v4497_v35  ;;  %v5501_v63 = vadd.f32 %v1042_v12, %v880_v24  ;;  %v1145_v51 = vadd.f32 %v1081_v10, %v919_v26  ;;  %v8474_v24 = vld [vmem:[#allocation28_spill] sm:$0xff] }
 0x1ca   : > { %8468 = vst [vmem:[#allocation36_spill] sm:$0xff] %v5487_v36  ;;  %v5489_v17 = vpop.permute.xlu0 %1422  ;;  %v5495_v44 = vsel %vm464_vm7, %v8470_v62, 0.0  ;;  %v5510_v4 = vadd.f32 %v1082_v29, %v920_v39  ;;  %v831_v55 = vmul.f32 %v8474_v24, %v8389_v38  ;;  %v848_v57 = vmul.f32 %v8388_v40, %v4902_v42 }
 0x1cb   : > { %8469 = vst [vmem:[#allocation30_spill] sm:$0xff] %v5489_v17  ;;  %1658 = vrot.lane.b32.xlu2 %v5495_v44, %s8331_s26  ;;  %v1494_v30 = vsel %vm562_vm1, %v5489_v17, %v5356_v33  ;;  %1356 = vrot.lane.b32.xlu0 %v8473_v60, %s4037_s12  ;;  %v1137_v33 = vadd.f32 %v1073_v43, %v911_v47  ;;  %v8476_v39 = vmax.f32 %v5383_v56, 0.0  ;;  %v361_v31 = vadd.s32 640, %v4293_v50 }
 0x1cc   : > { %8471 = vst [vmem:[#allocation40_spill] sm:$0xff] %v5495_v44  ;;  %1372 = vrot.lane.b32.xlu1 %v1305_v7, %s4037_s12  ;;  %3465 = vmatpush.msk.msra.mxu0 %vm5099_vm15, %v1494_v30  ;;  %v735_v7 = vadd.f32 %v671_v53, %v8387_v25  ;;  %v903_v29 = vadd.f32 %v5379_v61, %v726_v8  ;;  %v1209_v61 = vmax.f32 %v1145_v51, 0.0  ;;  %vm1918_vm15 = vcmask 523264  }
 0x1cd   : > { %8472 = vst [vmem:[#allocation39_spill] sm:$0xff] %v5501_v63  ;;  %v1057_v10 = vmul.f32 %v5352_v2, %v8475_v27  ;;  %v710_v3 = vadd.f32 %v646_v46, %v8460_v52  ;;  %v895_v12 = vadd.f32 %v831_v55, %v718_v16  ;;  %v823_v0 = vmul.f32 %v8461_v49, %v8389_v38 }
 0x1ce   : > { %3586 = vmatpush.msk.msrb.mxu0 %vm8271_vm6, %v1225_v15  ;;  %v702_v53 = vadd.f32 %v638_v45, %v4523_v13  ;;  %v1074_v26 = vmul.f32 %v5354_v58, %v8467_v22  ;;  %v8249_v15 = vmax.f32 %v5510_v4, 0.0  ;;  %v1129_v46 = vadd.f32 %v1065_v48, %v903_v29 }
 0x1cf   : > { %v5536_v47 = vpop.permute.xlu1 %1614  ;;  %v1049_v16 = vmul.f32 %v5352_v2, %v8463_v6  ;;  %v815_v56 = vmul.f32 %v4587_v19, %v8389_v38  ;;  %v912_v43 = vadd.f32 %v848_v57, %v735_v7  ;;  %v1201_v62 = vmax.f32 %v1137_v33, 0.0  ;;  %v8477_v38 = vld [vmem:[#allocation53_spill] sm:$0xff] }
 0x1d0   : > { %3587 = vmatpush.msk.msrb.mxu0 %vm8271_vm6, %v8476_v39  ;;  %v1750_v8 = vsel %vm965_vm3, %v5122_v41, %v5536_v47  ;;  %v1121_v48 = vadd.f32 %v1057_v10, %v895_v12  ;;  %v887_v45 = vadd.f32 %v823_v0, %v710_v3  ;;  %v1041_v30 = vmul.f32 %v5352_v2, %v8466_v5 }
 0x1d1   : > { %3529 = vmatpush.msk.msrb.mxu3 %vm5187_vm2, %v1750_v8  ;;  %v879_v51 = vadd.f32 %v815_v56, %v702_v53  ;;  %v5553_v60 = vadd.f32 %v1074_v26, %v912_v43  ;;  %v1289_v41 = vsel %vm8271_vm6, %v1209_v61, 0.0  ;;  %v5565_v23 = vsel %vm464_vm7, %v8249_v15, 0.0  ;;  %v8481_v8 = vld [vmem:[#allocation34_spill] sm:$0xff]  ;;  %vm5702_vm2 = vmneg %vm977_vm14 }
 0x1d2   : > { %3588 = vmatpush.msk.msrb.mxu0 %vm8271_vm6, %v1209_v61  ;;  %8478 = vst [vmem:[#allocation24_spill] sm:$0xff] %v5565_v23  ;;  %v1193_v55 = vmax.f32 %v1129_v46, 0.0  ;;  %v1113_v2 = vadd.f32 %v1049_v16, %v887_v45  ;;  %v1185_v7 = vmax.f32 %v1121_v48, 0.0  ;;  %v663_v3 = vmul.f32 %v5305_v1, %v8394_v34  ;;  %vm5738_vm14 = vmneg %vm574_vm4 }
 0x1d3   : > { %1640 = vrot.lane.b32.xlu2 %v1289_v41, %s8331_s26  ;;  %1656 = vrot.lane.b32.xlu0 %v5565_v23, %s8331_s26  ;;  %v1105_v57 = vadd.f32 %v1041_v30, %v879_v51  ;;  %v8248_v33 = vmax.f32 %v5553_v60, 0.0  ;;  %v1281_v0 = vsel %vm8271_vm6, %v1201_v62, 0.0  ;;  %v840_v26 = vmul.f32 %v8400_v9, %v4902_v42  ;;  %v8484_v51 = vld [vmem:[#allocation55_spill] sm:$0xff]  ;;  %v8543_v23 = vld [vmem:[#allocation81_spill] sm:$0xff] }
 0x1d4   : > { %3589 = vmatpush.msk.msrb.mxu0 %vm8271_vm6, %v1201_v62  ;;  %1354 = vrot.lane.b32.xlu1 %v8477_v38, %s4037_s12  ;;  %v1177_v29 = vmax.f32 %v1113_v2, 0.0  ;;  %v727_v53 = vadd.f32 %v663_v3, %v8398_v28  ;;  %v1066_v39 = vmul.f32 %v5354_v58, %v8401_v32  ;;  %v655_v61 = vmul.f32 %v5305_v1, %v4471_v18 }
 0x1d5   : > { %v1169_v10 = vmax.f32 %v1105_v57, 0.0  ;;  %v5583_v12 = vsel %vm464_vm7, %v8248_v33, 0.0  ;;  %v1273_v16 = vsel %vm8271_vm6, %v1193_v55, 0.0  ;;  %v832_v43 = vmul.f32 %v8474_v24, %v4902_v42 }
 0x1d6   : > { %3590 = vmatpush.msk.msrb.mxu0 %vm8271_vm6, %v1193_v55  ;;  %8479 = vst [vmem:[#allocation48_spill] sm:$0xff] %v5583_v12  ;;  %v904_v46 = vadd.f32 %v840_v26, %v727_v53  ;;  %v719_v56 = vadd.f32 %v655_v61, %v8462_v11  ;;  %v1058_v1 = vmul.f32 %v5354_v58, %v8475_v27  ;;  %v1257_v38 = vsel %vm8271_vm6, %v1177_v29, 0.0  ;;  %v5651_v55 = vld [vmem:[%s8085_s3 + $0x48] sm:$0xff]  ;;  %v8492_v26 = vld [vmem:[#allocation63_spill] sm:$0xff] }
 0x1d7   : > { %8487 = vst [vmem:[#allocation55_spill] sm:$0xff] %v5651_v55  ;;  %v8245_v2 = vmax.f32 %v5487_v36, 0.0  ;;  %3486 = vmatmul.msk.f32.vlgmr.msra.gmra.mxu3 %vm1918_vm15, %v5651_v55  ;;  %v8244_v3 = vmax.f32 %v5501_v63, 0.0  ;;  %v1249_v53 = vsel %vm8271_vm6, %v1169_v10, 0.0  ;;  %v8544_v63 = vld [vmem:[#allocation14_spill] sm:$0xff]  ;;  %v8546_v36 = vld [vmem:[#allocation80_spill] sm:$0xff] }
 0x1d8   : > { %3591 = vmatpush.msk.msrb.mxu0 %vm8271_vm6, %v1185_v7  ;;  %v896_v48 = vadd.f32 %v832_v43, %v719_v56 }
 0x1d9   : > { %v5662_v57 = vsel %vm464_vm7, %v8245_v2, 0.0 }
 0x1da   : > { %3592 = vmatpush.msk.msrb.mxu0 %vm8271_vm6, %v1177_v29  ;;  %v5615_v45 = vadd.f32 %v1058_v1, %v896_v48  ;;  %v8490_v29 = vld [vmem:[#allocation6_spill] sm:$0xff] }
 0x1db   : > { %1370 = vrot.lane.b32.xlu2 %v5424_v21, %s4037_s12  ;;  %1638 = vrot.lane.b32.xlu0 %v1281_v0, %s8331_s26  ;;  %v5604_v21 = vadd.f32 %v1066_v39, %v904_v46  ;;  %v8493_v39 = vld [vmem:[#allocation60_spill] sm:$0xff] }
 0x1dc   : > { %3593 = vmatpush.msk.msrb.mxu0 %vm8271_vm6, %v1169_v10  ;;  %1654 = vrot.lane.b32.xlu1 %v5583_v12, %s8331_s26  ;;  %8482 = vst [vmem:[#allocation33_spill] sm:$0xff] %v5615_v45  ;;  %v8246_v42 = vmax.f32 %v5615_v45, 0.0 }
 0x1dd   : > { %8480 = vst [vmem:[#allocation28_spill] sm:$0xff] %v5604_v21  ;;  %v8247_v62 = vmax.f32 %v5604_v21, 0.0  ;;  %v8551_v21 = vld [vmem:[#allocation10_spill] sm:$0xff] }
 0x1de   : > { %v5634_v58 = vsel %vm464_vm7, %v8246_v42, 0.0 }
 0x1df   : > { %v5623_v30 = vsel %vm464_vm7, %v8247_v62, 0.0  ;;  %8485 = vst [vmem:[#allocation34_spill] sm:$0xff] %v5634_v58  ;;  %v8514_v62 = vld [vmem:[#allocation70_spill] sm:$0xff] }
 0x1e0   : > { %8483 = vst [vmem:[#allocation53_spill] sm:$0xff] %v5623_v30 }
 0x1e3   : > { %1352 = vrot.lane.b32.xlu2 %v8481_v8, %s4037_s12  ;;  %1368 = vrot.lane.b32.xlu0 %v1289_v41, %s4037_s12  ;;  %v8486_v41 = vld [vmem:[#allocation38_spill] sm:$0xff] }
 0x1e4   : > { %1636 = vrot.lane.b32.xlu1 %v1273_v16, %s8331_s26  ;;  %8489 = vst [vmem:[#allocation38_spill] sm:$0xff] %v5662_v57 }
 0x1eb   : > { %556 = vrot.lane.b32.xlu0 %v8484_v51, %s4037_s12  ;;  %1652 = vrot.lane.b32.xlu2 %v5623_v30, %s8331_s26 }
 0x1ec   : > { %1350 = vrot.lane.b32.xlu1 %v4940_v20, %s4037_s12  ;;  %v1265_v20 = vsel %vm8271_vm6, %v1185_v7, 0.0  ;;  %v8488_v7 = vld [vmem:[#allocation58_spill] sm:$0xff] }
 0x1f3   : > { %1634 = vrot.lane.b32.xlu0 %v1265_v20, %s8331_s26  ;;  %1366 = vrot.lane.b32.xlu2 %v1281_v0, %s4037_s12  ;;  %v5673_v0 = vsel %vm464_vm7, %v8244_v3, 0.0 }
 0x1f4   : > { %1650 = vrot.lane.b32.xlu1 %v5634_v58, %s8331_s26  ;;  %8491 = vst [vmem:[#allocation58_spill] sm:$0xff] %v5673_v0 }
 0x1fb   : > { %1364 = vrot.lane.b32.xlu0 %v1273_v16, %s4037_s12  ;;  %1348 = vrot.lane.b32.xlu2 %v8486_v41, %s4037_s12  ;;  %v8497_v16 = vld [vmem:[#allocation72_spill] sm:$0xff] }
 0x1fc   : > { %1632 = vrot.lane.b32.xlu1 %v1257_v38, %s8331_s26 }
 0x203   : > { %961 = vrot.lane.b32.xlu0 %v8490_v29, %s8331_s26  ;;  %1648 = vrot.lane.b32.xlu2 %v5662_v57, %s8331_s26 }
 0x204   : > { %1346 = vrot.lane.b32.xlu1 %v8488_v7, %s4037_s12 }
 0x20b   : > { %1630 = vrot.lane.b32.xlu0 %v1249_v53, %s8331_s26  ;;  %1362 = vrot.lane.b32.xlu2 %v1265_v20, %s4037_s12  ;;  %v8501_v20 = vld [vmem:[#allocation74_spill] sm:$0xff] }
 0x20c   : > { %1646 = vrot.lane.b32.xlu1 %v5673_v0, %s8331_s26 }
 0x213   : > { %1360 = vrot.lane.b32.xlu0 %v1257_v38, %s4037_s12  ;;  %1344 = vrot.lane.b32.xlu2 %v8493_v39, %s4037_s12 }
 0x214   : > { %1342 = vrot.lane.b32.xlu1 %v8492_v26, %s4037_s12  ;;  %v8504_v26 = vld [vmem:[#allocation71_spill] sm:$0xff] }
 0x21b   : > { %1358 = vrot.lane.b32.xlu2 %v1249_v53, %s4037_s12 }
 0x21d   : > { %v1645_v10 = vpop.permute.xlu2 %1644 }
 0x21e   : > { %v1749_v8 = vsel %vm965_vm3, %v8497_v16, %v1645_v10 }
 0x21f   : > { %3563 = vmatpush.msk.msra.mxu3 %vm5688_vm0, %v1749_v8  ;;  %v833_v8 = vmul.f32 %v8474_v24, %v8484_v51 }
 0x225   : > { %v5698_v56 = vpop.permute.xlu2 %1658 }
 0x226   : > { %8498 = vst [vmem:[#allocation6_spill] sm:$0xff] %v5698_v56 }
 0x22d   : > { %v1641_v43 = vpop.permute.xlu2 %1640 }
 0x22e   : > { %v1747_v39 = vsel %vm965_vm3, %v8504_v26, %v1641_v43 }
 0x235   : > { %v5709_v41 = vpop.permute.xlu2 %1370  ;;  %v5711_v7 = vpop.permute.xlu0 %1660 }
 0x236   : > { %v1643_v48 = vpop.permute.xlu1 %1642  ;;  %8502 = vst [vmem:[#allocation63_spill] sm:$0xff] %v5709_v41  ;;  %v1741_v53 = vsel %vm965_vm3, %v1645_v10, %v5711_v7  ;;  %v8563_v10 = vld [vmem:[#allocation29_spill] sm:$0xff] }
 0x237   : > { %v1748_v38 = vsel %vm965_vm3, %v8501_v20, %v1643_v48  ;;  %8503 = vst [vmem:[#allocation60_spill] sm:$0xff] %v5711_v7  ;;  %3611 = vmatpush.msk.msrb.mxu2 %vm5702_vm2, %v1741_v53  ;;  %v1740_v16 = vsel %vm965_vm3, %v1643_v48, %v5698_v56  ;;  %v8510_v48 = vld [vmem:[#allocation69_spill] sm:$0xff]  ;;  %v8531_v56 = vld [vmem:[#allocation43_spill] sm:$0xff] }
 0x238   : > { %3565 = vmatpush.msk.msra.mxu3 %vm5688_vm0, %v1748_v38 }
 0x239   : > { %3613 = vmatpush.msk.msrb.mxu2 %vm5702_vm2, %v1740_v16  ;;  %v5757_v16 = vld [vmem:[%s8085_s3 + $0x58] sm:$0xff] }
 0x23a   : > { %3567 = vmatpush.msk.msra.mxu3 %vm5688_vm0, %v1747_v39 }
 0x23b   : > { %3487 = vmatmul.msk.f32.gmra.mxu3 %vm1918_vm15, %v5757_v16 }
 0x23d   : > { %v1353_v38 = vpop.permute.xlu2 %1352  ;;  %v1357_v53 = vpop.permute.xlu0 %1356 }
 0x23e   : > { %v5742_v20 = vpop.permute.xlu1 %1372  ;;  %v1485_v26 = vsel %vm562_vm1, %v8510_v48, %v1357_v53 }
 0x23f   : > { %8509 = vst [vmem:[#allocation72_spill] sm:$0xff] %v5742_v20  ;;  %v1477_v39 = vsel %vm562_vm1, %v1357_v53, %v5742_v20  ;;  %3547 = vmatpush.msk.msrb.mxu1 %vm5732_vm10, %v1485_v26  ;;  %v8513_v53 = vld [vmem:[#allocation64_spill] sm:$0xff] }
 0x240   : > { %3595 = vmatpush.msk.msrb.mxu0 %vm5738_vm14, %v1477_v39 }
 0x245   : > { %v5761_v48 = vpop.permute.xlu2 %1652  ;;  %v5763_v2 = vpop.permute.xlu0 %1656 }
 0x246   : > { %v1355_v3 = vpop.permute.xlu1 %1354  ;;  %8511 = vst [vmem:[#allocation74_spill] sm:$0xff] %v5761_v48  ;;  %v1739_v42 = vsel %vm965_vm3, %v1641_v43, %v5763_v2 }
 0x247   : > { %8512 = vst [vmem:[#allocation71_spill] sm:$0xff] %v5763_v2  ;;  %v1484_v26 = vsel %vm562_vm1, %v8513_v53, %v1355_v3  ;;  %v1476_v39 = vsel %vm562_vm1, %v1355_v3, %v5709_v41  ;;  %3615 = vmatpush.msk.msrb.mxu2 %vm5702_vm2, %v1739_v42  ;;  %v1483_v53 = vsel %vm562_vm1, %v8514_v62, %v1353_v38  ;;  %v5786_v3 = vld [vmem:[%s8085_s3 + $0x68] sm:$0xff]  ;;  %v8530_v41 = vld [vmem:[#allocation91_spill] sm:$0xff] }
 0x248   : > { %3549 = vmatpush.msk.msrb.mxu1 %vm5732_vm10, %v1484_v26  ;;  %3597 = vmatpush.msk.msrb.mxu0 %vm5738_vm14, %v1476_v39  ;;  %v8517_v39 = vld [vmem:[#allocation75_spill] sm:$0xff] }
 0x249   : > { %3488 = vmatmul.msk.f32.gmra.mxu3 %vm1918_vm15, %v5786_v3 }
 0x24a   : > { %3551 = vmatpush.msk.msrb.mxu1 %vm5732_vm10, %v1483_v53  ;;  %v5809_v53 = vld [vmem:[%s8085_s3 + $0x78] sm:$0xff] }
 0x24b   : > { %8518 = vst [vmem:[#allocation70_spill] sm:$0xff] %v5809_v53 }
 0x24d   : > { %v5794_v43 = vpop.permute.xlu2 %1366  ;;  %v1639_v42 = vpop.permute.xlu0 %1638 }
 0x24e   : > { %v5792_v26 = vpop.permute.xlu1 %1654  ;;  %8516 = vst [vmem:[#allocation64_spill] sm:$0xff] %v5794_v43  ;;  %v1746_v62 = vsel %vm965_vm3, %v8517_v39, %v1639_v42  ;;  %v8519_v39 = vld [vmem:[#allocation87_spill] sm:$0xff] }
 0x24f   : > { %8515 = vst [vmem:[#allocation69_spill] sm:$0xff] %v5792_v26  ;;  %v1738_v33 = vsel %vm965_vm3, %v1639_v42, %v5792_v26  ;;  %3569 = vmatpush.msk.msra.mxu3 %vm5688_vm0, %v1746_v62 }
 0x250   : > { %3617 = vmatpush.msk.msrb.mxu2 %vm5702_vm2, %v1738_v33 }
 0x251   : > { %3489 = vmatmul.msk.f32.gmra.mxu3 %vm1918_vm15, %v5809_v53 }
 0x255   : > { %v5816_v42 = vpop.permute.xlu0 %1368  ;;  %v1349_v33 = vpop.permute.xlu2 %1348 }
 0x256   : > { %v1637_v15 = vpop.permute.xlu1 %1636  ;;  %8520 = vst [vmem:[#allocation75_spill] sm:$0xff] %v5816_v42  ;;  %v1475_v14 = vsel %vm562_vm1, %v1353_v38, %v5816_v42  ;;  %v8522_v38 = vld [vmem:[#allocation68_spill] sm:$0xff] }
 0x257   : > { %v1745_v61 = vsel %vm965_vm3, %v8519_v39, %v1637_v15  ;;  %v1737_v62 = vsel %vm965_vm3, %v1637_v15, %v5761_v48  ;;  %3599 = vmatpush.msk.msrb.mxu0 %vm5738_vm14, %v1475_v14  ;;  %v5833_v39 = vld [vmem:[%s8085_s3] sm:$0xff]  ;;  %v5838_v15 = vld [vmem:[%s8085_s3 + $0x8] sm:$0xff] }
 0x258   : > { %3571 = vmatpush.msk.msra.mxu3 %vm5688_vm0, %v1745_v61  ;;  %3619 = vmatpush.msk.msrb.mxu2 %vm5702_vm2, %v1737_v62  ;;  %8521 = vst [vmem:[#allocation87_spill] sm:$0xff] %v5838_v15  ;;  %v8523_v42 = vld [vmem:[#allocation76_spill] sm:$0xff] }
 0x259   : > { %2041 = vmatmul.f32.vlgmr.msra.gmra.mxu2 %v5833_v39  ;;  %3530 = vmatmul.msk.f32.vlgmr.msrb.gmra.mxu3 %vm1918_vm15, %v5838_v15  ;;  %v1481_v48 = vsel %vm562_vm1, %v8523_v42, %v1349_v33 }
 0x25a   : > { %1959 = vmatmul.f32.vlgmr.msra.gmra.mxu0 %v5833_v39  ;;  %3482 = vmatmul.msk.f32.vlgmr.msra.gmra.mxu1 %vm1918_vm15, %v5838_v15 }
 0x25d   : > { %v557_v61 = vpop.permute.xlu0 %556  ;;  %v5860_v26 = vpop.permute.xlu2 %1648 }
 0x25e   : > { %v1351_v14 = vpop.permute.xlu1 %1350  ;;  %8524 = vst [vmem:[#allocation68_spill] sm:$0xff] %v5860_v26 }
 0x25f   : > { %v1482_v62 = vsel %vm562_vm1, %v8522_v38, %v1351_v14  ;;  %v1474_v17 = vsel %vm562_vm1, %v1351_v14, %v5794_v43  ;;  %v362_v38 = vadd.s32 768, %v4293_v50  ;;  %v5865_v14 = vand.u32 127, %v361_v31  ;;  %v8529_v43 = vld [vmem:[#allocation79_spill] sm:$0xff] }
 0x260   : > { %3553 = vmatpush.msk.msrb.mxu1 %vm5732_vm10, %v1482_v62  ;;  %3601 = vmatpush.msk.msrb.mxu0 %vm5738_vm14, %v1474_v17  ;;  %v5870_v62 = vld [vmem:[%s8085_s3 + $0x10] sm:$0xff]  ;;  %v5875_v17 = vld [vmem:[%s8085_s3 + $0x18] sm:$0xff]  ;;  %v565_v2 = vsel %vm562_vm1, %v8529_v43, %v557_v61  ;;  %v564_v43 = vsel %vm562_vm1, %v557_v61, %v8531_v56 }
 0x261   : > { %8525 = vst [vmem:[#allocation76_spill] sm:$0xff] %v5865_v14  ;;  %2044 = vmatmul.f32.gmra.mxu2 %v5870_v62  ;;  %3531 = vmatmul.msk.f32.gmra.mxu3 %vm1918_vm15, %v5875_v17  ;;  %v5880_v42 = vand.u32 127, %v362_v38  ;;  %vm576_vm9 = vcmp.lt.s32.totalorder %v5865_v14, 1  ;;  %v8535_v61 = vld [vmem:[#allocation90_spill] sm:$0xff]  ;;  %vm979_vm6 = vcmp.ge.s32.totalorder %v5865_v14, 127  ;;  %vm465_vm8 = vcmp.lt.s32.totalorder %v5865_v14, 74 }
 0x262   : > { %3555 = vmatpush.msk.msrb.mxu1 %vm5732_vm10, %v1481_v48  ;;  %8526 = vst [vmem:[#allocation93_spill] sm:$0xff] %v5875_v17  ;;  %1962 = vmatmul.f32.gmra.mxu0 %v5870_v62  ;;  %v584_v7 = vsel %vm576_vm9, 0.0, %v565_v2 }
 0x263   : > { %8527 = vst [vmem:[#allocation94_spill] sm:$0xff] %v5880_v42  ;;  %3483 = vmatmul.msk.f32.gmra.mxu1 %vm1918_vm15, %v5875_v17  ;;  %vm8272_vm4 = vcmp.lt.s32.totalorder %v5880_v42, 1  ;;  %v5924_v2 = vperm.slane %v584_v7, 0  ;;  %vm466_vm13 = vcmp.lt.s32.totalorder %v5880_v42, 74 }
 0x265   : > { %v1635_v31 = vpop.permute.xlu0 %1634 }
 0x266   : > { %v5882_v48 = vpop.permute.xlu1 %1650  ;;  %v1744_v20 = vsel %vm965_vm3, %v8530_v41, %v1635_v31  ;;  %v5907_v41 = vpop.permute.xlu2 %1362 }
 0x267   : > { %8528 = vst [vmem:[#allocation95_spill] sm:$0xff] %v5882_v48  ;;  %v1736_v38 = vsel %vm965_vm3, %v1635_v31, %v5882_v48  ;;  %3573 = vmatpush.msk.msra.mxu3 %vm5688_vm0, %v1744_v20  ;;  %v5912_v31 = vld [vmem:[%s8085_s3 + $0x20] sm:$0xff]  ;;  %v5917_v20 = vld [vmem:[%s8085_s3 + $0x28] sm:$0xff] }
 0x268   : > { %3621 = vmatpush.msk.msrb.mxu2 %vm5702_vm2, %v1736_v38  ;;  %8532 = vst [vmem:[#allocation79_spill] sm:$0xff] %v5907_v41  ;;  %v585_v38 = vsel %vm8272_vm4, 0.0, %v564_v43  ;;  %vm980_vm4 = vcmp.ge.s32.totalorder %v5880_v42, 127 }
 0x269   : > { %8533 = vst [vmem:[#allocation91_spill] sm:$0xff] %v5912_v31  ;;  %2047 = vmatmul.f32.gmra.mxu2 %v5912_v31  ;;  %3532 = vmatmul.msk.f32.gmra.mxu3 %vm1918_vm15, %v5917_v20  ;;  %v5937_v57 = vperm.slane %v585_v38, 0 }
 0x26a   : > { %8534 = vst [vmem:[#allocation43_spill] sm:$0xff] %v5917_v20  ;;  %1965 = vmatmul.f32.gmra.mxu0 %v5912_v31 }
 0x26b   : > { %3484 = vmatmul.msk.f32.gmra.mxu1 %vm1918_vm15, %v5917_v20  ;;  %v641_v1 = vmul.f32 %v5937_v57, %v4497_v35 }
 0x26d   : > { %v5930_v0 = vpop.permute.xlu0 %1364 }
 0x26e   : > { %v1633_v56 = vpop.permute.xlu1 %1632  ;;  %8536 = vst [vmem:[#allocation90_spill] sm:$0xff] %v5930_v0  ;;  %v1473_v7 = vsel %vm562_vm1, %v1349_v33, %v5930_v0  ;;  %v5959_v33 = vld [vmem:[%s8085_s3 + $0x30] sm:$0xff] }
 0x26f   : > { %v1743_v48 = vsel %vm965_vm3, %v8535_v61, %v1633_v56  ;;  %v1735_v43 = vsel %vm965_vm3, %v1633_v56, %v5860_v26  ;;  %3603 = vmatpush.msk.msrb.mxu0 %vm5738_vm14, %v1473_v7  ;;  %v8537_v61 = vld [vmem:[#allocation8_spill] sm:$0xff]  ;;  %v8538_v26 = vld [vmem:[#allocation9_spill] sm:$0xff]  ;;  %v5966_v7 = vpop.permute.xlu2 %1344 }
 0x270   : > { %3575 = vmatpush.msk.msra.mxu3 %vm5688_vm0, %v1743_v48  ;;  %3623 = vmatpush.msk.msrb.mxu2 %vm5702_vm2, %v1735_v43  ;;  %v696_v56 = vmul.f32 %v5924_v2, %v8537_v61  ;;  %v688_v38 = vmul.f32 %v5924_v2, %v8538_v26  ;;  %v697_v58 = vmul.f32 %v5937_v57, %v8537_v61  ;;  %v8539_v48 = vld [vmem:[#allocation17_spill] sm:$0xff]  ;;  %v5964_v43 = vld [vmem:[%s8085_s3 + $0x38] sm:$0xff] }
 0x271   : > { %v873_v30 = vmul.f32 %v8539_v48, %v8484_v51  ;;  %8540 = vst [vmem:[#allocation8_spill] sm:$0xff] %v5959_v33  ;;  %v8542_v61 = vld [vmem:[#allocation11_spill] sm:$0xff]  ;;  %v689_v12 = vmul.f32 %v5937_v57, %v8538_v26  ;;  %2050 = vmatmul.f32.gmra.mxu2 %v5959_v33  ;;  %3533 = vmatmul.msk.f32.gmra.mxu3 %vm1918_vm15, %v5964_v43  ;;  %v8545_v26 = vld [vmem:[#allocation44_spill] sm:$0xff] }
 0x272   : > { %8541 = vst [vmem:[#allocation9_spill] sm:$0xff] %v5964_v43  ;;  %v760_v20 = vadd.f32 %v696_v56, %v8542_v61  ;;  %v752_v53 = vadd.f32 %v688_v38, %v8544_v63  ;;  %1968 = vmatmul.f32.gmra.mxu0 %v5959_v33  ;;  %v8550_v33 = vld [vmem:[#allocation23_spill] sm:$0xff] }
 0x273   : > { %3485 = vmatmul.msk.f32.gmra.mxu1 %vm1918_vm15, %v5964_v43 }
 0x275   : > { %v962_v17 = vpop.permute.xlu0 %961 }
 0x276   : > { %v1347_v0 = vpop.permute.xlu1 %1346  ;;  %v966_v56 = vsel %vm965_vm3, %v962_v17, %v8545_v26  ;;  %v967_v45 = vsel %vm965_vm3, %v8546_v36, %v962_v17  ;;  %v8547_v26 = vld [vmem:[#allocation86_spill] sm:$0xff]  ;;  %v8548_v36 = vld [vmem:[#allocation16_spill] sm:$0xff] }
 0x277   : > { %v1480_v15 = vsel %vm562_vm1, %v8543_v23, %v1347_v0  ;;  %v1472_v31 = vsel %vm562_vm1, %v1347_v0, %v5907_v41  ;;  %v761_v23 = vadd.f32 %v697_v58, %v8542_v61  ;;  %v987_v0 = vsel %vm979_vm6, 0.0, %v967_v45 }
 0x278   : > { %3557 = vmatpush.msk.msrb.mxu1 %vm5732_vm10, %v1480_v15  ;;  %3605 = vmatpush.msk.msrb.mxu0 %vm5738_vm14, %v1472_v31  ;;  %v988_v38 = vsel %vm980_vm4, 0.0, %v966_v56  ;;  %v1479_v41 = vsel %vm562_vm1, %v8547_v26, %v5966_v7  ;;  %v865_v17 = vmul.f32 %v8548_v36, %v8484_v51  ;;  %v6007_v15 = vperm.slane %v987_v0, 0  ;;  %v8549_v56 = vld [vmem:[#allocation12_spill] sm:$0xff] }
 0x279   : > { %v6009_v43 = vperm.slane %v988_v38, 0  ;;  %v874_v45 = vmul.f32 %v8539_v48, %v8490_v29  ;;  %v937_v58 = vadd.f32 %v873_v30, %v760_v20  ;;  %v753_v61 = vadd.f32 %v689_v12, %v8544_v63  ;;  %v6031_v63 = vld [vmem:[%s8085_s3 + $0x40] sm:$0xff]  ;;  %3534 = vmatmul.msk.f32.gmra.mxu3 %vm1918_vm15, %v5651_v55 }
 0x27a   : > { %3559 = vmatpush.msk.msrb.mxu1 %vm5732_vm10, %v1479_v41  ;;  %v929_v31 = vadd.f32 %v865_v17, %v752_v53  ;;  %v1099_v26 = vmul.f32 %v6007_v15, %v8549_v56  ;;  %v1091_v44 = vmul.f32 %v6007_v15, %v8550_v33  ;;  %v866_v41 = vmul.f32 %v8548_v36, %v8490_v29 }
 0x27b   : > { %v938_v0 = vadd.f32 %v874_v45, %v761_v23  ;;  %v1100_v38 = vmul.f32 %v6009_v43, %v8549_v56  ;;  %v680_v48 = vmul.f32 %v5924_v2, %v8551_v21  ;;  %v672_v30 = vmul.f32 %v5924_v2, %v8384_v37  ;;  %8552 = vst [vmem:[#allocation17_spill] sm:$0xff] %v6031_v63 }
 0x27c   : > { %v6035_v53 = vadd.f32 %v1099_v26, %v937_v58  ;;  %v6037_v20 = vadd.f32 %v1091_v44, %v929_v31  ;;  %v1092_v36 = vmul.f32 %v6009_v43, %v8550_v33  ;;  %2053 = vmatmul.f32.gmra.mxu2 %v6031_v63  ;;  %v930_v45 = vadd.f32 %v866_v41, %v753_v61  ;;  %v8555_v61 = vld [vmem:[#allocation20_spill] sm:$0xff] }
 0x27d   : > { %v6039_v23 = vadd.f32 %v1100_v38, %v938_v0  ;;  %v1631_v17 = vpop.permute.xlu0 %1630  ;;  %v681_v56 = vmul.f32 %v5937_v57, %v8551_v21  ;;  %1971 = vmatmul.f32.gmra.mxu0 %v6031_v63  ;;  %v736_v26 = vadd.f32 %v672_v30, %v8387_v25  ;;  %v8558_v30 = vld [vmem:[#allocation15_spill] sm:$0xff]  ;;  %v8560_v63 = vld [vmem:[#allocation25_spill] sm:$0xff] }
 0x27e   : > { %v6033_v12 = vpop.permute.xlu1 %1646  ;;  %v1742_v44 = vsel %vm965_vm3, %v5536_v47, %v1631_v17  ;;  %v8299_v58 = vmax.f32 %v6035_v53, 0.0  ;;  %v8298_v31 = vmax.f32 %v6037_v20, 0.0  ;;  %v744_v47 = vadd.f32 %v680_v48, %v8555_v61 }
 0x27f   : > { %8553 = vst [vmem:[#allocation11_spill] sm:$0xff] %v6033_v12  ;;  %v1734_v33 = vsel %vm965_vm3, %v1631_v17, %v6033_v12  ;;  %3577 = vmatpush.msk.msra.mxu3 %vm5688_vm0, %v1742_v44  ;;  %v8297_v21 = vmax.f32 %v6039_v23, 0.0  ;;  %v6076_v38 = vadd.f32 %v1092_v36, %v930_v45  ;;  %v745_v48 = vadd.f32 %v681_v56, %v8555_v61  ;;  %v6105_v56 = vld [vmem:[%s8085_s3 + $0x50] sm:$0xff]  ;;  %vm6464_vm0 = vmneg %vm978_vm12 }
 0x280   : > { %8554 = vst [vmem:[#allocation81_spill] sm:$0xff] %v6039_v23  ;;  %3625 = vmatpush.msk.msrb.mxu2 %vm5702_vm2, %v1734_v33  ;;  %v1307_v0 = vsel %vm465_vm8, %v8299_v58, 0.0  ;;  %v6074_v46 = vsel %vm465_vm8, %v8298_v31, 0.0  ;;  %v857_v36 = vmul.f32 %v8558_v30, %v8484_v51  ;;  %v849_v17 = vmul.f32 %v8388_v40, %v8484_v51  ;;  %vm6472_vm2 = vmneg %vm979_vm6 }
 0x281   : > { %8556 = vst [vmem:[#allocation14_spill] sm:$0xff] %v6074_v46  ;;  %1676 = vrot.lane.b32.xlu0 %v1307_v0, %s8331_s26  ;;  %1674 = vrot.lane.b32.xlu2 %v6074_v46, %s8331_s26  ;;  %v6087_v41 = vsel %vm466_vm13, %v8297_v21, 0.0  ;;  %v664_v45 = vmul.f32 %v5924_v2, %v8394_v34  ;;  %v858_v44 = vmul.f32 %v8558_v30, %v8490_v29  ;;  %v8316_v31 = vmax.f32 %v6076_v38, 0.0  ;;  %vm6500_vm6 = vmneg %vm575_vm5 }
 0x282   : > { %8557 = vst [vmem:[#allocation44_spill] sm:$0xff] %v6087_v41  ;;  %1692 = vrot.lane.b32.xlu1 %v6087_v41, %s8331_s26  ;;  %v841_v33 = vmul.f32 %v8400_v9, %v8484_v51  ;;  %v818_v61 = vmul.f32 %v4587_v19, %v8490_v29  ;;  %v921_v58 = vadd.f32 %v857_v36, %v744_v47  ;;  %v8559_v41 = vld [vmem:[#allocation89_spill] sm:$0xff]  ;;  %v6145_v36 = vpop.permute.xlu2 %1358  ;;  %vm6510_vm12 = vmneg %vm576_vm9 }
 0x283   : > { %v913_v23 = vadd.f32 %v849_v17, %v736_v26  ;;  %v705_v30 = vadd.f32 %v641_v1, %v4523_v13  ;;  %v1083_v9 = vmul.f32 %v6007_v15, %v8560_v63  ;;  %v922_v46 = vadd.f32 %v858_v44, %v745_v48  ;;  %3535 = vmatmul.msk.f32.gmra.mxu3 %vm1918_vm15, %v5757_v16  ;;  %vm6712_vm5 = vmneg %vm980_vm4 }
 0x284   : > { %2056 = vmatmul.f32.gmra.mxu2 %v6105_v56  ;;  %v656_v34 = vmul.f32 %v5924_v2, %v4471_v18  ;;  %v1084_v26 = vmul.f32 %v6009_v43, %v8560_v63  ;;  %v728_v1 = vadd.f32 %v664_v45, %v8398_v28  ;;  %v640_v63 = vmul.f32 %v5924_v2, %v4497_v35 }
 0x285   : > { %v6112_v12 = vpop.permute.xlu0 %1360  ;;  %1974 = vmatmul.f32.gmra.mxu0 %v6105_v56  ;;  %v6151_v17 = vsel %vm466_vm13, %v8316_v31, 0.0  ;;  %v673_v45 = vmul.f32 %v5937_v57, %v8384_v37  ;;  %v882_v44 = vadd.f32 %v818_v61, %v705_v30  ;;  %v8564_v37 = vld [vmem:[#allocation92_spill] sm:$0xff] }
 0x286   : > { %v1343_v21 = vpop.permute.xlu1 %1342  ;;  %v1471_v47 = vsel %vm562_vm1, %v5966_v7, %v6112_v12  ;;  %v648_v7 = vmul.f32 %v5924_v2, %v8563_v10  ;;  %v1147_v2 = vadd.f32 %v1083_v9, %v921_v58  ;;  %v6169_v61 = vadd.f32 %v1084_v26, %v922_v46 }
 0x287   : > { %v1478_v55 = vsel %vm562_vm1, %v8559_v41, %v1343_v21  ;;  %3607 = vmatpush.msk.msrb.mxu0 %vm5738_vm14, %v1471_v47  ;;  %v8561_v41 = vld [vmem:[#allocation88_spill] sm:$0xff]  ;;  %v1044_v47 = vmul.f32 %v6009_v43, %v8466_v5  ;;  %v1470_v35 = vsel %vm562_vm1, %v1343_v21, %v6145_v36  ;;  %v850_v58 = vmul.f32 %v8388_v40, %v8490_v29 }
 0x288   : > { %3561 = vmatpush.msk.msrb.mxu1 %vm5732_vm10, %v1478_v55  ;;  %v8562_v48 = vmax.f32 %v8561_v41, 0.0  ;;  %v1075_v55 = vmul.f32 %v6007_v15, %v8467_v22  ;;  %v720_v41 = vadd.f32 %v656_v34, %v8462_v11  ;;  %v8566_v34 = vmax.f32 %v6035_v53, 0.0  ;;  %v6190_v21 = vld [vmem:[%s8085_s3 + $0x60] sm:$0xff]  ;;  %vm6759_vm10 = vmneg %vm981_vm11 }
 0x289   : > { %2123 = vmatmul.f32.vlgmr.msrb.gmra.mxu1 %v5833_v39  ;;  %1404 = vrot.lane.b32.xlu2 %v1307_v0, %s4037_s12  ;;  %v1067_v0 = vmul.f32 %v6007_v15, %v8401_v32  ;;  %v6173_v30 = vadd.f32 %v1044_v47, %v882_v44  ;;  %v1059_v46 = vmul.f32 %v6007_v15, %v8475_v27  ;;  %v8568_v40 = vmax.f32 %v6037_v20, 0.0 }
 0x28a   : > { %3634 = vmatpush.msk.msra.mxu1 %vm464_vm7, %v8562_v48  ;;  %1690 = vrot.lane.b32.xlu0 %v6151_v17, %s8331_s26  ;;  %v8565_v48 = vmax.f32 %v5432_v59, 0.0  ;;  %v1139_v9 = vadd.f32 %v1075_v55, %v913_v23  ;;  %v905_v59 = vadd.f32 %v841_v33, %v728_v1  ;;  %v712_v53 = vadd.f32 %v648_v7, %v8460_v52 }
 0x28b   : > { %1388 = vrot.lane.b32.xlu1 %v8564_v37, %s4037_s12  ;;  %3609 = vmatpush.msk.msrb.mxu0 %vm5738_vm14, %v1470_v35  ;;  %v737_v26 = vadd.f32 %v673_v45, %v8387_v25  ;;  %v8567_v23 = vmax.f32 %v5510_v4, 0.0  ;;  %v1211_v33 = vmax.f32 %v1147_v2, 0.0  ;;  %v897_v1 = vadd.f32 %v833_v8, %v720_v41  ;;  %v8572_v37 = vld [vmem:[#allocation40_spill] sm:$0xff]  ;;  %v6259_v8 = vld [vmem:[%s8085_s3 + $0x70] sm:$0xff] }
 0x28c   : > { %3635 = vmatpush.msk.msra.mxu1 %vm464_vm7, %v8565_v48  ;;  %2059 = vmatmul.f32.gmra.mxu2 %v6190_v21  ;;  %v825_v55 = vmul.f32 %v8461_v49, %v8484_v51  ;;  %v704_v7 = vadd.f32 %v640_v63, %v4523_v13  ;;  %v8315_v25 = vmax.f32 %v6169_v61, 0.0  ;;  %v1131_v45 = vadd.f32 %v1067_v0, %v905_v59 }
 0x28d   : > { %3682 = vmatpush.msk.msra.mxu0 %vm465_vm8, %v8566_v34  ;;  %v1051_v4 = vmul.f32 %v6007_v15, %v8463_v6  ;;  %v1076_v44 = vmul.f32 %v6009_v43, %v8467_v22  ;;  %3536 = vmatmul.msk.f32.gmra.mxu3 %vm1918_vm15, %v5786_v3  ;;  %v8569_v20 = vmax.f32 %v5553_v60, 0.0  ;;  %v1203_v13 = vmax.f32 %v1139_v9, 0.0  ;;  %v8570_v60 = vld [vmem:[#allocation28_spill] sm:$0xff]  ;;  %v8573_v34 = vld [vmem:[#allocation33_spill] sm:$0xff] }
 0x28e   : > { %3636 = vmatpush.msk.msra.mxu1 %vm464_vm7, %v8567_v23  ;;  %1977 = vmatmul.f32.gmra.mxu0 %v6190_v21  ;;  %v817_v63 = vmul.f32 %v4587_v19, %v8484_v51  ;;  %v6224_v47 = vadd.f32 %v1059_v46, %v897_v1  ;;  %v889_v22 = vadd.f32 %v825_v55, %v712_v53  ;;  %v8571_v41 = vmax.f32 %v8570_v60, 0.0  ;;  %v8575_v46 = vld [vmem:[#allocation36_spill] sm:$0xff]  ;;  %v8580_v55 = vld [vmem:[#allocation18_spill] sm:$0xff] }
 0x28f   : > { %3683 = vmatpush.msk.msra.mxu0 %vm465_vm8, %v8568_v40  ;;  %v1043_v35 = vmul.f32 %v6007_v15, %v8466_v5  ;;  %v914_v2 = vadd.f32 %v850_v58, %v737_v26  ;;  %v1291_v19 = vsel %vm465_vm8, %v1211_v33, 0.0  ;;  %v6244_v5 = vsel %vm466_vm13, %v8315_v25, 0.0  ;;  %v8577_v40 = vld [vmem:[#allocation70_spill] sm:$0xff] }
 0x290   : > { %3637 = vmatpush.msk.msra.mxu1 %vm464_vm7, %v8569_v20  ;;  %v881_v51 = vadd.f32 %v817_v63, %v704_v7  ;;  %v1195_v15 = vmax.f32 %v1131_v45, 0.0  ;;  %v6246_v0 = vadd.f32 %v1051_v4, %v889_v22  ;;  %v8574_v9 = vmax.f32 %v8573_v34, 0.0  ;;  %v8581_v4 = vld [vmem:[#allocation91_spill] sm:$0xff] }
 0x291   : > { %3684 = vmatpush.msk.msra.mxu0 %vm465_vm8, %v1211_v33  ;;  %2126 = vmatmul.f32.gmra.mxu1 %v5870_v62  ;;  %v6248_v48 = vadd.f32 %v1076_v44, %v914_v2  ;;  %v1187_v58 = vmax.f32 %v6224_v47, 0.0  ;;  %v8576_v53 = vmax.f32 %v8575_v46, 0.0  ;;  %v8578_v33 = vld [vmem:[#allocation39_spill] sm:$0xff]  ;;  %v665_v7 = vmul.f32 %v5937_v57, %v8580_v55  ;;  %v8582_v44 = vld [vmem:[#allocation14_spill] sm:$0xff] }
 0x292   : > { %3638 = vmatpush.msk.msra.mxu1 %vm464_vm7, %v8571_v41  ;;  %1386 = vrot.lane.b32.xlu2 %v8572_v37, %s4037_s12  ;;  %v6264_v59 = vadd.f32 %v1043_v35, %v881_v51  ;;  %v1179_v26 = vmax.f32 %v6246_v0, 0.0  ;;  %v8579_v1 = vmax.f32 %v8578_v33, 0.0  ;;  %v1283_v20 = vsel %vm465_vm8, %v1203_v13, 0.0  ;;  %v8583_v22 = vld [vmem:[#allocation87_spill] sm:$0xff]  ;;  %v8585_v51 = vld [vmem:[#allocation8_spill] sm:$0xff]  ;;  %v8594_v0 = vld [vmem:[#allocation34_spill] sm:$0xff] }
 0x293   : > { %3685 = vmatpush.msk.msra.mxu0 %vm465_vm8, %v1203_v13  ;;  %1672 = vrot.lane.b32.xlu0 %v1291_v19, %s8331_s26  ;;  %v8314_v23 = vmax.f32 %v6248_v48, 0.0  ;;  %v729_v47 = vadd.f32 %v665_v7, %v8398_v28  ;;  %v8584_v35 = vld [vmem:[#allocation27_spill] sm:$0xff]  ;;  %v1068_v13 = vmul.f32 %v6009_v43, %v8401_v32  ;;  %v657_v41 = vmul.f32 %v5937_v57, %v4471_v18  ;;  %v8586_v37 = vld [vmem:[#allocation24_spill] sm:$0xff] }
 0x294   : > { %1688 = vrot.lane.b32.xlu1 %v6244_v5, %s8331_s26  ;;  %3639 = vmatpush.msk.msra.mxu1 %vm464_vm7, %v8574_v9  ;;  %v1171_v45 = vmax.f32 %v6264_v59, 0.0  ;;  %v842_v2 = vmul.f32 %v8584_v35, %v8490_v29  ;;  %v1275_v34 = vsel %vm465_vm8, %v1195_v15, 0.0  ;;  %v8587_v9 = vld [vmem:[#allocation93_spill] sm:$0xff]  ;;  %v834_v46 = vmul.f32 %v8474_v24, %v8490_v29  ;;  %v8593_v35 = vld [vmem:[#allocation55_spill] sm:$0xff] }
 0x295   : > { %3686 = vmatpush.msk.msra.mxu0 %vm465_vm8, %v1195_v15  ;;  %2062 = vmatmul.f32.gmra.mxu2 %v6259_v8  ;;  %v6302_v63 = vsel %vm466_vm13, %v8314_v23, 0.0  ;;  %v721_v32 = vadd.f32 %v657_v41, %v8462_v11  ;;  %v649_v11 = vmul.f32 %v5937_v57, %v8563_v10  ;;  %v8588_v15 = vld [vmem:[#allocation17_spill] sm:$0xff]  ;;  %v8590_v10 = vld [vmem:[#allocation43_spill] sm:$0xff]  ;;  %v826_v55 = vmul.f32 %v8461_v49, %v8490_v29 }
 0x296   : > { %3640 = vmatpush.msk.msra.mxu1 %vm464_vm7, %v8576_v53  ;;  %3537 = vmatmul.msk.f32.gmra.mxu3 %vm1918_vm15, %v8577_v40  ;;  %v906_v60 = vadd.f32 %v842_v2, %v729_v47  ;;  %v1060_v53 = vmul.f32 %v6009_v43, %v8475_v27  ;;  %v8589_v27 = vld [vmem:[#allocation48_spill] sm:$0xff]  ;;  %v1052_v7 = vmul.f32 %v6009_v43, %v8463_v6  ;;  %v8591_v6 = vld [vmem:[#allocation53_spill] sm:$0xff]  ;;  %v8310_v2 = vmax.f32 %v6173_v30, 0.0  ;;  %v8600_v41 = vld [vmem:[#allocation35_spill] sm:$0xff] }
 0x297   : > { %3687 = vmatpush.msk.msra.mxu0 %vm465_vm8, %v1187_v58  ;;  %v713_v57 = vadd.f32 %v649_v11, %v8460_v52  ;;  %v1267_v52 = vsel %vm465_vm8, %v1187_v58, 0.0  ;;  %v8592_v43 = vld [vmem:[#allocation9_spill] sm:$0xff]  ;;  %v1259_v58 = vsel %vm465_vm8, %v1179_v26, 0.0 }
 0x298   : > { %3641 = vmatpush.msk.msra.mxu1 %vm464_vm7, %v8579_v1  ;;  %1980 = vmatmul.f32.gmra.mxu0 %v6259_v8  ;;  %v6320_v28 = vadd.f32 %v1068_v13, %v906_v60  ;;  %v1252_v59 = vsel %vm466_vm13, %v8310_v2, 0.0  ;;  %v8597_v13 = vld [vmem:[#allocation46_spill] sm:$0xff]  ;;  %v8599_v60 = vld [vmem:[#allocation44_spill] sm:$0xff] }
 0x299   : > { %3688 = vmatpush.msk.msra.mxu0 %vm465_vm8, %v1179_v26  ;;  %2129 = vmatmul.f32.gmra.mxu1 %v8581_v4  ;;  %v1251_v26 = vsel %vm465_vm8, %v1171_v45, 0.0  ;;  %v8628_v2 = vld [vmem:[#allocation68_spill] sm:$0xff] }
 0x29a   : > { %1686 = vrot.lane.b32.xlu2 %v6302_v63, %s8331_s26  ;;  %v8313_v18 = vmax.f32 %v6320_v28, 0.0 }
 0x29b   : > { %3689 = vmatpush.msk.msra.mxu0 %vm465_vm8, %v1171_v45  ;;  %1402 = vrot.lane.b32.xlu0 %v8582_v44, %s4037_s12  ;;  %v890_v44 = vadd.f32 %v826_v55, %v713_v57  ;;  %v8595_v45 = vld [vmem:[#allocation38_spill] sm:$0xff] }
 0x29c   : > { %1670 = vrot.lane.b32.xlu1 %v1283_v20, %s8331_s26  ;;  %v6346_v33 = vsel %vm466_vm13, %v8313_v18, 0.0  ;;  %v8632_v18 = vld [vmem:[#allocation79_spill] sm:$0xff] }
 0x29d   : > { %3626 = vmatmul.msk.f32.vlgmr.msrb.gmra.mxu2 %vm1918_vm15, %v8583_v22  ;;  %v6374_v29 = vadd.f32 %v1052_v7, %v890_v44  ;;  %v8610_v7 = vld [vmem:[#allocation6_spill] sm:$0xff] }
 0x29e   : > { %3578 = vmatmul.msk.f32.vlgmr.msra.gmra.mxu3 %vm1918_vm15, %v8583_v22 }
 0x2a0   : > { %2205 = vmatmul.f32.vlgmr.msrb.gmra.mxu0 %v5833_v39 }
 0x2a1   : > { %2132 = vmatmul.f32.gmra.mxu1 %v8585_v51 }
 0x2a2   : > { %1668 = vrot.lane.b32.xlu2 %v1275_v34, %s8331_s26 }
 0x2a3   : > { %1384 = vrot.lane.b32.xlu0 %v8586_v37, %s4037_s12  ;;  %v8601_v37 = vld [vmem:[#allocation26_spill] sm:$0xff] }
 0x2a4   : > { %1400 = vrot.lane.b32.xlu1 %v1291_v19, %s4037_s12  ;;  %v898_v19 = vadd.f32 %v834_v46, %v721_v32  ;;  %v8603_v32 = vld [vmem:[#allocation57_spill] sm:$0xff] }
 0x2a5   : > { %3627 = vmatmul.msk.f32.gmra.mxu2 %vm1918_vm15, %v8587_v9 }
 0x2a6   : > { %3579 = vmatmul.msk.f32.gmra.mxu3 %vm1918_vm15, %v8587_v9  ;;  %v6350_v24 = vadd.f32 %v1060_v53, %v898_v19  ;;  %v6460_v53 = vpop.f32.mrf.mxu3 }
 0x2a8   : > { %2208 = vmatmul.f32.gmra.mxu0 %v5870_v62  ;;  %v8312_v1 = vmax.f32 %v6350_v24, 0.0 }
 0x2a9   : > { %2135 = vmatmul.f32.gmra.mxu1 %v8588_v15 }
 0x2aa   : > { %1398 = vrot.lane.b32.xlu2 %v1283_v20, %s4037_s12  ;;  %v1268_v49 = vsel %vm466_vm13, %v8312_v1, 0.0  ;;  %v8311_v20 = vmax.f32 %v6374_v29, 0.0  ;;  %v8631_v1 = vld [vmem:[#allocation11_spill] sm:$0xff] }
 0x2ab   : > { %1684 = vrot.lane.b32.xlu0 %v6346_v33, %s8331_s26 }
 0x2ac   : > { %1382 = vrot.lane.b32.xlu1 %v8589_v27, %s4037_s12  ;;  %v1260_v47 = vsel %vm466_vm13, %v8311_v20, 0.0  ;;  %v8609_v27 = vld [vmem:[#allocation60_spill] sm:$0xff] }
 0x2ad   : > { %3628 = vmatmul.msk.f32.gmra.mxu2 %vm1918_vm15, %v8590_v10 }
 0x2ae   : > { %3580 = vmatmul.msk.f32.gmra.mxu3 %vm1918_vm15, %v8590_v10 }
 0x2b0   : > { %2211 = vmatmul.f32.gmra.mxu0 %v8581_v4 }
 0x2b1   : > { %2138 = vmatmul.f32.gmra.mxu1 %v6105_v56 }
 0x2b2   : > { %1380 = vrot.lane.b32.xlu2 %v8591_v6, %s4037_s12  ;;  %v8614_v6 = vld [vmem:[#allocation61_spill] sm:$0xff] }
 0x2b3   : > { %1666 = vrot.lane.b32.xlu0 %v1267_v52, %s8331_s26 }
 0x2b4   : > { %1682 = vrot.lane.b32.xlu1 %v1268_v49, %s8331_s26 }
 0x2b5   : > { %3629 = vmatmul.msk.f32.gmra.mxu2 %vm1918_vm15, %v8592_v43 }
 0x2b6   : > { %3581 = vmatmul.msk.f32.gmra.mxu3 %vm1918_vm15, %v8592_v43 }
 0x2b8   : > { %2214 = vmatmul.f32.gmra.mxu0 %v8585_v51 }
 0x2b9   : > { %2141 = vmatmul.f32.gmra.mxu1 %v6190_v21 }
 0x2ba   : > { %1680 = vrot.lane.b32.xlu2 %v1260_v47, %s8331_s26 }
 0x2bb   : > { %1396 = vrot.lane.b32.xlu0 %v1275_v34, %s4037_s12  ;;  %v8602_v34 = vld [vmem:[#allocation21_spill] sm:$0xff] }
 0x2bc   : > { %1664 = vrot.lane.b32.xlu1 %v1259_v58, %s8331_s26 }
 0x2bd   : > { %3630 = vmatmul.msk.f32.gmra.mxu2 %vm1918_vm15, %v8593_v35 }
 0x2be   : > { %3582 = vmatmul.msk.f32.gmra.mxu3 %vm1918_vm15, %v8593_v35 }
 0x2c0   : > { %2217 = vmatmul.f32.gmra.mxu0 %v8588_v15 }
 0x2c1   : > { %2144 = vmatmul.f32.gmra.mxu1 %v6259_v8 }
 0x2c2   : > { %1662 = vrot.lane.b32.xlu2 %v1251_v26, %s8331_s26 }
 0x2c3   : > { %1378 = vrot.lane.b32.xlu0 %v8594_v0, %s4037_s12 }
 0x2c4   : > { %1394 = vrot.lane.b32.xlu1 %v1267_v52, %s4037_s12 }
 0x2c5   : > { %3631 = vmatmul.msk.f32.gmra.mxu2 %vm1918_vm15, %v5757_v16 }
 0x2c6   : > { %3583 = vmatmul.msk.f32.gmra.mxu3 %vm1918_vm15, %v5757_v16  ;;  %v8596_v16 = vld [vmem:[#allocation58_spill] sm:$0xff] }
 0x2c8   : > { %2220 = vmatmul.f32.gmra.mxu0 %v6105_v56 }
 0x2ca   : > { %1392 = vrot.lane.b32.xlu2 %v1259_v58, %s4037_s12 }
 0x2cb   : > { %1678 = vrot.lane.b32.xlu0 %v1252_v59, %s8331_s26 }
 0x2cc   : > { %1376 = vrot.lane.b32.xlu1 %v8595_v45, %s4037_s12 }
 0x2cd   : > { %3632 = vmatmul.msk.f32.gmra.mxu2 %vm1918_vm15, %v5786_v3 }
 0x2ce   : > { %3584 = vmatmul.msk.f32.gmra.mxu3 %vm1918_vm15, %v5786_v3  ;;  %v8598_v3 = vld [vmem:[#allocation52_spill] sm:$0xff] }
 0x2d0   : > { %2223 = vmatmul.f32.gmra.mxu0 %v6190_v21 }
 0x2d2   : > { %1708 = vrot.lane.b32.xlu2 %v8597_v13, %s8331_s26 }
 0x2d3   : > { %1374 = vrot.lane.b32.xlu0 %v8596_v16, %s4037_s12  ;;  %v8617_v16 = vld [vmem:[#allocation72_spill] sm:$0xff] }
 0x2d4   : > { %1390 = vrot.lane.b32.xlu1 %v1251_v26, %s4037_s12 }
 0x2d5   : > { %3633 = vmatmul.msk.f32.gmra.mxu2 %vm1918_vm15, %v8577_v40 }
 0x2d6   : > { %3585 = vmatmul.msk.f32.gmra.mxu3 %vm1918_vm15, %v8577_v40 }
 0x2d8   : > { %2226 = vmatmul.f32.gmra.mxu0 %v6259_v8 }
 0x2da   : > { %1704 = vrot.lane.b32.xlu2 %v8600_v41, %s8331_s26  ;;  %v1871_v41 = vld [vmem:[%s8086_s4 + $0x8] sm:$0xff] }
 0x2db   : > { %1706 = vrot.lane.b32.xlu0 %v8598_v3, %s8331_s26  ;;  %v1675_v51 = vpop.permute.xlu2 %1674 }
 0x2dc   : > { %1420 = vrot.lane.b32.xlu1 %v8599_v60, %s4037_s12  ;;  %v1732_v44 = vsel %vm965_vm3, %v8610_v7, %v1675_v51  ;;  %v1870_v60 = vld [vmem:[%s8086_s4] sm:$0xff] }
 0x2dd   : > { %v1874_v7 = vld [vmem:[%s8086_s4 + $0x20] sm:$0xff] }
 0x2e2   : > { %1416 = vrot.lane.b32.xlu2 %v6244_v5, %s4037_s12 }
 0x2e3   : > { %1418 = vrot.lane.b32.xlu0 %v6151_v17, %s4037_s12  ;;  %v6452_v40 = vpop.permute.xlu2 %1404 }
 0x2e4   : > { %1702 = vrot.lane.b32.xlu1 %v8601_v37, %s8331_s26 }
 0x2ea   : > { %1698 = vrot.lane.b32.xlu2 %v8603_v32, %s8331_s26 }
 0x2eb   : > { %1700 = vrot.lane.b32.xlu0 %v8602_v34, %s8331_s26 }
 0x2ec   : > { %1414 = vrot.lane.b32.xlu1 %v6302_v63, %s4037_s12  ;;  %v1387_v46 = vpop.permute.xlu2 %1386  ;;  %v8608_v63 = vld [vmem:[#allocation59_spill] sm:$0xff] }
 0x2f2   : > { %1410 = vrot.lane.b32.xlu2 %v1268_v49, %s4037_s12  ;;  %v6504_v49 = vpop.f32.mrf.mxu3 }
 0x2f3   : > { %1412 = vrot.lane.b32.xlu0 %v6346_v33, %s4037_s12  ;;  %v1677_v19 = vpop.permute.xlu0 %1676  ;;  %8613 = vst [vmem:[#allocation80_spill] sm:$0xff] %v6504_v49 }
 0x2f4   : > { %1696 = vrot.lane.b32.xlu1 %v8608_v63, %s8331_s26  ;;  %v6479_v11 = vpop.permute.xlu1 %1692  ;;  %v1733_v57 = vsel %vm965_vm3, %v8609_v27, %v1677_v19  ;;  %v6484_v55 = vpop.permute.xlu2 %1686 }
 0x2f5   : > { %v1725_v33 = vsel %vm965_vm3, %v1677_v19, %v6479_v11  ;;  %3659 = vmatpush.msk.msrb.mxu3 %vm6464_vm0, %v1733_v57  ;;  %v8620_v19 = vld [vmem:[#allocation71_spill] sm:$0xff] }
 0x2f6   : > { %3707 = vmatpush.msk.msra.mxu2 %vm6472_vm2, %v1725_v33  ;;  %v1873_v33 = vld [vmem:[%s8086_s4 + $0x18] sm:$0xff] }
 0x2f7   : > { %3661 = vmatpush.msk.msrb.mxu3 %vm6464_vm0, %v1732_v44  ;;  %v1875_v44 = vld [vmem:[%s8086_s4 + $0x28] sm:$0xff] }
 0x2fa   : > { %1406 = vrot.lane.b32.xlu2 %v1252_v59, %s4037_s12  ;;  %v6547_v37 = vpop.f32.mrf.mxu3 }
 0x2fb   : > { %1694 = vrot.lane.b32.xlu0 %v8614_v6, %s8331_s26  ;;  %8619 = vst [vmem:[#allocation86_spill] sm:$0xff] %v6547_v37  ;;  %s3900_s26 = sshll.u32 %s4115_s17, 2 }
 0x2fc   : > { %1408 = vrot.lane.b32.xlu1 %v1260_v47, %s4037_s12  ;;  %v6516_v35 = vpop.permute.xlu0 %1690  ;;  %v1669_v3 = vpop.permute.xlu2 %1668  ;;  %v8618_v47 = vld [vmem:[#allocation63_spill] sm:$0xff]  ;;  %s3423_s12 = sshll.u32 %s348_s30, 2  ;;  %s3355_s21 = scalar_lea.hbm %s8092_s10, %s3900_s26 }
 0x2fd   : > { %v1389_v0 = vpop.permute.xlu1 %1388  ;;  %v1724_v26 = vsel %vm965_vm3, %v1675_v51, %v6516_v35  ;;  %v1468_v59 = vsel %vm562_vm1, %v8618_v47, %v1387_v46  ;;  %v1872_v51 = vld [vmem:[%s8086_s4 + $0x10] sm:$0xff]  ;;  %s350_s25 = scalar_lea.vmem [#allocation2], %s3423_s12  ;;  %s3359_s18 = sshll.u32 %s3355_s21, 4  ;;  %s3360_s18 = int_to_ptr.hbm [resolvable:$true] %s3359_s18 }
 0x2fe   : > { %v1461_v45 = vsel %vm562_vm1, %v1389_v0, %v6452_v40  ;;  %v1469_v13 = vsel %vm562_vm1, %v8617_v16, %v1389_v0  ;;  %3709 = vmatpush.msk.msra.mxu2 %vm6472_vm2, %v1724_v26  ;;  %s3357_s27 = sshll.u32 %s350_s25, 4  ;;  %s3986_s29 = sshra.s32 %s3360_s18, 4  ;;  %s3358_s27 = int_to_ptr.vmem [resolvable:$true] %s3357_s27  ;;  %s3987_s29 = int_to_ptr.hbm [resolvable:$true] %s3986_s29 }
 0x2ff   : > { %3643 = vmatpush.msk.msra.mxu1 %vm6500_vm6, %v1469_v13  ;;  %3691 = vmatpush.msk.msra.mxu0 %vm6510_vm12, %v1461_v45  ;;  %v8621_v13 = vld [vmem:[#allocation69_spill] sm:$0xff]  ;;  %s3988_s0 = scalar_lea.hbm %s3987_s29, 4  ;;  %s3992_s12 = scalar_lea.hbm %s8092_s10, 8 }
 0x300   : > { %p3989_p11 = scmp.ne.s32.totalorder %s3987_s29, %s3988_s0  ;;  %p3993_p0 = scmp.lt.s32.totalorder %s3987_s29, %s8092_s10 }
 0x301   : > { %3645 = vmatpush.msk.msra.mxu1 %vm6500_vm6, %v1468_v59  ;;  %p3994_p1 = scmp.lt.s32.totalorder %s3992_s12, %s3988_s0 }
 0x302   : > { %1890 = vperm.xlu2 %3954, %v1872_v51   ;;  %v6587_v59 = vpop.f32.mrf.mxu3  ;;  %v1877_v51 = vld [vmem:[%s8086_s4 + $0x38] sm:$0xff]  ;;  %p3990_p12 = pnand %p3989_p11, %p4132_p5 }
 0x303   : > { %1880 = vperm.xlu0 %3955, %v1870_v60   ;;  %8622 = vst [vmem:[#allocation16_spill] sm:$0xff] %v6587_v59  ;;  %v8623_v60 = vld [vmem:[#allocation74_spill] sm:$0xff]  ;;  %p3995_p2 = por %p3994_p1, %p3993_p0 }
 0x304   : > { %1885 = vperm.xlu1 %3953, %v1871_v41   ;;  %v6551_v63 = vpop.permute.xlu2 %1398  ;;  %v1729_v41 = vsel %vm965_vm3, %v8623_v60, %v1669_v3  ;;  %p3991_p13 = pneg %p3990_p12 }
 0x305   : > { %v1673_v34 = vpop.permute.xlu0 %1672 }
 0x306   : > { %v6549_v32 = vpop.permute.xlu1 %1688  ;;  %v1731_v27 = vsel %vm965_vm3, %v8620_v19, %v1673_v34  ;;  %p3996_p3 = pnand %p3995_p2, %p3991_p13 }
 0x307   : > { %v1723_v57 = vsel %vm965_vm3, %v1673_v34, %v6549_v32  ;;  %3663 = vmatpush.msk.msrb.mxu3 %vm6464_vm0, %v1731_v27  ;;  %v3198_v34 = vld [vmem:[%s8088_s6 + $0x38] sm:$0xff] }
 0x308   : > { %3711 = vmatpush.msk.msra.mxu2 %vm6472_vm2, %v1723_v57 }
 0x30a   : > { %1905 = vperm.xlu2 %3954, %v1875_v44  }
 0x30b   : > { %1895 = vperm.xlu0 %3955, %v1873_v33   ;;  %v8624_v33 = vld [vmem:[#allocation75_spill] sm:$0xff] }
 0x30c   : > { %1900 = vperm.xlu1 %3953, %v1874_v7   ;;  %v6574_v26 = vpop.permute.xlu2 %1380 }
 0x30d   : > { %v6572_v6 = vpop.permute.xlu0 %1402 }
 0x30e   : > { %v1671_v0 = vpop.permute.xlu1 %1670  ;;  %v1460_v45 = vsel %vm562_vm1, %v1387_v46, %v6572_v6  ;;  %v1876_v46 = vld [vmem:[%s8086_s4 + $0x30] sm:$0xff] }
 0x30f   : > { %v1722_v16 = vsel %vm965_vm3, %v1671_v0, %v6484_v55  ;;  %v1730_v47 = vsel %vm965_vm3, %v8621_v13, %v1671_v0  ;;  %3693 = vmatpush.msk.msra.mxu0 %vm6510_vm12, %v1460_v45  ;;  %v3197_v0 = vld [vmem:[%s8088_s6 + $0x30] sm:$0xff]  ;;  %v3196_v45 = vld [vmem:[%s8088_s6 + $0x28] sm:$0xff]  ;;  %v6630_v13 = vpop.f32.mrf.mxu3 }
 0x310   : > { %3665 = vmatpush.msk.msrb.mxu3 %vm6464_vm0, %v1730_v47  ;;  %3713 = vmatpush.msk.msra.mxu2 %vm6472_vm2, %v1722_v16  ;;  %v3195_v16 = vld [vmem:[%s8088_s6 + $0x20] sm:$0xff] }
 0x312   : > { %3667 = vmatpush.msk.msrb.mxu3 %vm6464_vm0, %v1729_v41  ;;  %3236 = vperm.xlu2 %3954, %v3198_v34   ;;  %v8625_v34 = vld [vmem:[#allocation64_spill] sm:$0xff] }
 0x313   : > { %1910 = vperm.xlu0 %3955, %v1876_v46  }
 0x314   : > { %1915 = vperm.xlu1 %3953, %v1877_v51   ;;  %v6609_v57 = vpop.permute.xlu2 %1680 }
 0x315   : > { %v1385_v19 = vpop.permute.xlu0 %1384 }
 0x316   : > { %v6607_v27 = vpop.permute.xlu1 %1400  ;;  %v1467_v7 = vsel %vm562_vm1, %v8624_v33, %v1385_v19  ;;  %v8626_v33 = vld [vmem:[#allocation90_spill] sm:$0xff] }
 0x317   : > { %v1459_v44 = vsel %vm562_vm1, %v1385_v19, %v6607_v27  ;;  %3647 = vmatpush.msk.msra.mxu1 %vm6500_vm6, %v1467_v7  ;;  %v1465_v7 = vsel %vm562_vm1, %v8626_v33, %v6574_v26 }
 0x318   : > { %3695 = vmatpush.msk.msra.mxu0 %vm6510_vm12, %v1459_v44  ;;  %v3193_v44 = vld [vmem:[%s8088_s6 + $0x10] sm:$0xff] }
 0x31a   : > { %3221 = vperm.xlu2 %3954, %v3195_v16  }
 0x31b   : > { %3231 = vperm.xlu0 %3955, %v3197_v0   ;;  %v3192_v0 = vld [vmem:[%s8088_s6 + $0x8] sm:$0xff] }
 0x31c   : > { %3226 = vperm.xlu1 %3953, %v3196_v45   ;;  %v1663_v60 = vpop.permute.xlu2 %1662  ;;  %v6664_v45 = vpop.f32.mrf.mxu3 }
 0x31d   : > { %v6632_v47 = vpop.permute.xlu0 %1684 }
 0x31e   : > { %v1383_v46 = vpop.permute.xlu1 %1382  ;;  %v1721_v41 = vsel %vm965_vm3, %v1669_v3, %v6632_v47  ;;  %v3194_v3 = vld [vmem:[%s8088_s6 + $0x18] sm:$0xff] }
 0x31f   : > { %v1458_v51 = vsel %vm562_vm1, %v1383_v46, %v6551_v63  ;;  %v1466_v19 = vsel %vm562_vm1, %v8625_v34, %v1383_v46  ;;  %3715 = vmatpush.msk.msra.mxu2 %vm6472_vm2, %v1721_v41 }
 0x320   : > { %3649 = vmatpush.msk.msra.mxu1 %vm6500_vm6, %v1466_v19  ;;  %3697 = vmatpush.msk.msra.mxu0 %vm6510_vm12, %v1458_v51  ;;  %v8627_v51 = vld [vmem:[#allocation95_spill] sm:$0xff]  ;;  %v6673_v19 = vpop.f32.mrf.mxu2 }
 0x322   : > { %3651 = vmatpush.msk.msra.mxu1 %vm6500_vm6, %v1465_v7  ;;  %3206 = vperm.xlu2 %3954, %v3192_v0   ;;  %v3313_v7 = vld [vmem:[%s8090_s8] sm:$0xf] }
 0x323   : > { %3216 = vperm.xlu0 %3955, %v3194_v3   ;;  %v3191_v3 = vld [vmem:[%s8088_s6] sm:$0xff] }
 0x324   : > { %3211 = vperm.xlu1 %3953, %v3193_v44   ;;  %v6668_v41 = vpop.permute.xlu2 %1392  ;;  %v6688_v44 = vpop.f32.mrf.mxu0 }
 0x325   : > { %v1667_v16 = vpop.permute.xlu0 %1666 }
 0x326   : > { %v6666_v46 = vpop.permute.xlu1 %1682  ;;  %v1728_v34 = vsel %vm965_vm3, %v8627_v51, %v1667_v16 }
 0x327   : > { %v1720_v33 = vsel %vm965_vm3, %v1667_v16, %v6666_v46  ;;  %3669 = vmatpush.msk.msrb.mxu3 %vm6464_vm0, %v1728_v34  ;;  %v6692_v16 = vpop.f32.mrf.mxu3 }
 0x328   : > { %3717 = vmatpush.msk.msra.mxu2 %vm6472_vm2, %v1720_v33 }
 0x32b   : > { %3201 = vperm.xlu0 %3955, %v3191_v3  }
 0x32c   : > { %3316 = vperm.xlu1 %3953, %v3313_v7   ;;  %v1709_v3 = vpop.permute.xlu2 %1708  ;;  %v6716_v7 = vpop.f32.mrf.mxu2 }
 0x32d   : > { %v6690_v0 = vpop.permute.xlu0 %1396 }
 0x32e   : > { %v1665_v51 = vpop.permute.xlu1 %1664  ;;  %v1457_v34 = vsel %vm562_vm1, %v6574_v26, %v6690_v0  ;;  %v3962_v26 = vld [vmem:[%s8085_s3 + $0x8] sm:$0xff] }
 0x32f   : > { %v1719_v33 = vsel %vm965_vm3, %v1665_v51, %v6609_v57  ;;  %v1727_v20 = vsel %vm965_vm3, %v8628_v2, %v1665_v51  ;;  %3699 = vmatpush.msk.msra.mxu0 %vm6510_vm12, %v1457_v34  ;;  %v1726_v2 = vsel %vm965_vm3, %v8631_v1, %v1663_v60  ;;  %v6728_v51 = vpop.f32.mrf.mxu0 }
 0x330   : > { %3671 = vmatpush.msk.msrb.mxu3 %vm6464_vm0, %v1727_v20  ;;  %3719 = vmatpush.msk.msra.mxu2 %vm6472_vm2, %v1719_v33  ;;  %v1717_v20 = vsel %vm965_vm3, %v6479_v11, %v1709_v3  ;;  %v6742_v11 = vpop.f32.mrf.mxu3 }
 0x332   : > { %3673 = vmatpush.msk.msrb.mxu3 %vm6464_vm0, %v1726_v2 }
 0x333   : > { %3674 = vmatmul.msk.f32.vlgmr.msrb.gmra.mxu3 %vm1918_vm15, %v8583_v22 }
 0x334   : > { %3755 = vmatpush.msk.msra.mxu3 %vm6712_vm5, %v1717_v20  ;;  %v6746_v2 = vpop.f32.mrf.mxu2 }
 0x335   : > { %v1379_v34 = vpop.permute.xlu0 %1378 }
 0x336   : > { %v6732_v33 = vpop.permute.xlu1 %1394  ;;  %v1464_v1 = vsel %vm562_vm1, %v8632_v18, %v1379_v34 }
 0x337   : > { %v1456_v17 = vsel %vm562_vm1, %v1379_v34, %v6732_v33  ;;  %3653 = vmatpush.msk.msra.mxu1 %vm6500_vm6, %v1464_v1  ;;  %v6752_v18 = vpop.f32.mrf.mxu0  ;;  %v8633_v1 = vld [vmem:[#allocation41_spill] sm:$0xff] }
 0x338   : > { %3701 = vmatpush.msk.msra.mxu0 %vm6510_vm12, %v1456_v17  ;;  %v6780_v59 = vpop.f32.mrf.mxu3  ;;  %vm8641_vm11 = vcmp.lt.s32.totalorder %v8633_v1, 74 }
 0x339   : > { %vm8645_vm14 = vmmov %vm8641_vm11 }
 0x33a   : > { %vm8649_vm9 = vmmov %vm8641_vm11 }
 0x33b   : > { %3675 = vmatmul.msk.f32.gmra.mxu3 %vm1918_vm15, %v8587_v9  ;;  %vm8654_vm4 = vmmov %vm8649_vm9 }
 0x33c   : > { %vm8659_vm0 = vmmov %vm8654_vm4 }
 0x33d   : > { %v6750_v20 = vpop.permute.xlu0 %1678 }
 0x33e   : > { %v1377_v23 = vpop.permute.xlu1 %1376  ;;  %v1718_v34 = vsel %vm965_vm3, %v1663_v60, %v6750_v20  ;;  %v8636_v60 = vld [vmem:[#allocation19_spill] sm:$0xff] }
 0x33f   : > { %v1455_v17 = vsel %vm562_vm1, %v1377_v23, %v6668_v41  ;;  %v1463_v31 = vsel %vm562_vm1, %v6112_v12, %v1377_v23  ;;  %3721 = vmatpush.msk.msra.mxu2 %vm6472_vm2, %v1718_v34  ;;  %v1773_v54 = vsel %vm965_vm3, %v1709_v3, %v8636_v60  ;;  %v6786_v12 = vpop.f32.mrf.mxu2  ;;  %v1705_v23 = vpop.permute.xlu2 %1704  ;;  %vm8663_vm2 = vmmov %vm8659_vm0 }
 0x340   : > { %3655 = vmatpush.msk.msra.mxu1 %vm6500_vm6, %v1463_v31  ;;  %3703 = vmatpush.msk.msra.mxu0 %vm6510_vm12, %v1455_v17  ;;  %v8639_v17 = vld [vmem:[#allocation45_spill] sm:$0xff]  ;;  %v6816_v58 = vpop.f32.mrf.mxu3 }
 0x341   : > { %3722 = vmatmul.msk.f32.vlgmr.msra.gmra.mxu2 %vm1918_vm15, %v8583_v22  ;;  %v8640_v52 = vmax.f32 %v8639_v17, 0.0  ;;  %v8650_v17 = vld [vmem:[#allocation37_spill] sm:$0xff] }
 0x342   : > { %3803 = vmatpush.msk.msrb.mxu2 %vm6759_vm10, %v1773_v54  ;;  %v6798_v54 = vpop.f32.mrf.mxu0 }
 0x343   : > { %3676 = vmatmul.msk.f32.gmra.mxu3 %vm1918_vm15, %v8590_v10 }
 0x345   : > { %v1375_v31 = vpop.permute.xlu0 %1374 }
 0x346   : > { %v6788_v5 = vpop.permute.xlu1 %1390  ;;  %v1462_v3 = vsel %vm562_vm1, %v6145_v36, %v1375_v31  ;;  %v8637_v36 = vld [vmem:[#allocation81_spill] sm:$0xff] }
 0x347   : > { %v1454_v22 = vsel %vm562_vm1, %v1375_v31, %v6788_v5  ;;  %3657 = vmatpush.msk.msra.mxu1 %vm6500_vm6, %v1462_v3  ;;  %v8638_v34 = vmax.f32 %v8637_v36, 0.0  ;;  %v8646_v3 = vmax.f32 %v6169_v61, 0.0  ;;  %v1417_v61 = vpop.permute.xlu2 %1416  ;;  %vm8666_vm6 = vcmp.lt.s32.totalorder %v8633_v1, 1  ;;  %v2740_v1 = vld [vmem:[%s8091_s9 + $0x68] sm:$0xff] }
 0x348   : > { %3705 = vmatpush.msk.msra.mxu0 %vm6510_vm12, %v1454_v22  ;;  %2287 = vmatmul.f32.vlgmr.msra.gmra.mxu1 %v5833_v39  ;;  %v8647_v22 = vld [vmem:[#allocation54_spill] sm:$0xff]  ;;  %vm6909_vm12 = vmneg %vm8666_vm6 }
 0x349   : > { %2369 = vmatmul.f32.vlgmr.msra.gmra.mxu0 %v5833_v39  ;;  %3723 = vmatmul.msk.f32.gmra.mxu2 %vm1918_vm15, %v8587_v9  ;;  %v8642_v39 = vmax.f32 %v6076_v38, 0.0  ;;  %v8643_v9 = vld [vmem:[#allocation49_spill] sm:$0xff]  ;;  %v8648_v36 = vmax.f32 %v8647_v22, 0.0 }
 0x34a   : > { %3730 = vmatpush.msk.msrb.mxu1 %vm466_vm13, %v8638_v34  ;;  %3778 = vmatpush.msk.msrb.mxu0 %vm8641_vm11, %v8640_v52  ;;  %v8644_v60 = vmax.f32 %v8643_v9, 0.0  ;;  %v8651_v9 = vmax.f32 %v6248_v48, 0.0  ;;  %v1715_v48 = vsel %vm965_vm3, %v6549_v32, %v1705_v23  ;;  %v8655_v22 = vld [vmem:[#allocation5_spill] sm:$0xff]  ;;  %v6891_v32 = vpop.f32.mrf.mxu3  ;;  %vm8671_vm11 = vmmov %vm8659_vm0 }
 0x34b   : > { %3677 = vmatmul.msk.f32.gmra.mxu3 %vm1918_vm15, %v8592_v43 }
 0x34c   : > { %3731 = vmatpush.msk.msrb.mxu1 %vm466_vm13, %v8642_v39  ;;  %3779 = vmatpush.msk.msrb.mxu0 %vm8645_vm14, %v8644_v60  ;;  %v6840_v39 = vpop.f32.mrf.mxu2  ;;  %v8652_v60 = vld [vmem:[#allocation22_spill] sm:$0xff]  ;;  %vm8672_vm14 = vcmp.lt.s32.totalorder %v5880_v42, 1 }
 0x34d   : > { %v1707_v31 = vpop.permute.xlu0 %1706  ;;  %v2745_v42 = vld [vmem:[%s8091_s9 + $0x90] sm:$0xff] }
 0x34e   : > { %3732 = vmatpush.msk.msrb.mxu1 %vm466_vm13, %v8646_v3  ;;  %3780 = vmatpush.msk.msrb.mxu0 %vm8649_vm9, %v8648_v36  ;;  %v1421_v38 = vpop.permute.xlu1 %1420  ;;  %v1716_v34 = vsel %vm965_vm3, %v6516_v35, %v1707_v31  ;;  %v1772_v52 = vsel %vm965_vm3, %v1707_v31, %v8650_v17  ;;  %v8653_v3 = vmax.f32 %v8652_v60, 0.0  ;;  %v6852_v35 = vpop.f32.mrf.mxu1  ;;  %v1771_v36 = vsel %vm965_vm3, %v1705_v23, %v8655_v22  ;;  %v8657_v17 = vld [vmem:[#allocation7_spill] sm:$0xff]  ;;  %vm6921_vm9 = vmneg %vm8672_vm14 }
 0x34f   : > { %3757 = vmatpush.msk.msra.mxu3 %vm6712_vm5, %v1716_v34  ;;  %3805 = vmatpush.msk.msrb.mxu2 %vm6759_vm10, %v1772_v52  ;;  %v6857_v31 = vpop.f32.mrf.mxu0  ;;  %v8656_v34 = vmax.f32 %v6320_v28, 0.0  ;;  %v8658_v52 = vmax.f32 %v8657_v17, 0.0  ;;  %v8660_v28 = vmax.f32 %v6350_v24, 0.0  ;;  %v8661_v23 = vld [vmem:[#allocation47_spill] sm:$0xff] }
 0x350   : > { %3733 = vmatpush.msk.msrb.mxu1 %vm466_vm13, %v8651_v9  ;;  %3781 = vmatpush.msk.msrb.mxu0 %vm8654_vm4, %v8653_v3  ;;  %v8662_v9 = vmax.f32 %v8661_v23, 0.0  ;;  %v8664_v3 = vmax.f32 %v6374_v29, 0.0  ;;  %v8676_v23 = vld [vmem:[#allocation51_spill] sm:$0xff]  ;;  %vm8678_vm4 = vmmov %vm8659_vm0 }
 0x351   : > { %2290 = vmatmul.f32.gmra.mxu1 %v5870_v62  ;;  %2372 = vmatmul.f32.gmra.mxu0 %v5870_v62  ;;  %v6883_v62 = vld [vmem:[%s8085_s3 + $0x48] sm:$0xff] }
 0x352   : > { %3724 = vmatmul.msk.f32.gmra.mxu2 %vm1918_vm15, %v8590_v10  ;;  %3734 = vmatpush.msk.msrb.mxu1 %vm466_vm13, %v8656_v34  ;;  %v8669_v34 = vld [vmem:[#allocation50_spill] sm:$0xff] }
 0x353   : > { %3782 = vmatpush.msk.msrb.mxu0 %vm8659_vm0, %v8658_v52  ;;  %3759 = vmatpush.msk.msra.mxu3 %vm6712_vm5, %v1715_v48  ;;  %v8665_v48 = vld [vmem:[#allocation32_spill] sm:$0xff]  ;;  %v8670_v17 = vmax.f32 %v8669_v34, 0.0  ;;  %v8675_v52 = vmax.f32 %v6173_v30, 0.0  ;;  %vm8706_vm0 = vcmp.lt.s32.totalorder %v4293_v50, 74 }
 0x354   : > { %3807 = vmatpush.msk.msrb.mxu2 %vm6759_vm10, %v1771_v36  ;;  %3678 = vmatmul.msk.f32.gmra.mxu3 %vm1918_vm15, %v6883_v62  ;;  %v2756_v36 = vld [vmem:[%s8091_s9 + $0xe8] sm:$0xff] }
 0x355   : > { %3735 = vmatpush.msk.msrb.mxu1 %vm466_vm13, %v8660_v28  ;;  %v1419_v10 = vpop.permute.xlu0 %1418  ;;  %3783 = vmatpush.msk.msrb.mxu0 %vm8663_vm2, %v8662_v9  ;;  %v1699_v28 = vpop.permute.xlu2 %1698  ;;  %v8677_v9 = vmax.f32 %v8676_v23, 0.0  ;;  %v8682_v23 = vld [vmem:[#allocation62_spill] sm:$0xff] }
 0x356   : > { %v1703_v60 = vpop.permute.xlu1 %1702 }
 0x357   : > { %3736 = vmatpush.msk.msrb.mxu1 %vm466_vm13, %v8664_v3  ;;  %v1714_v24 = vsel %vm965_vm3, %v6484_v55, %v1703_v60  ;;  %v1770_v22 = vsel %vm965_vm3, %v1703_v60, %v8665_v48  ;;  %3784 = vmatpush.msk.msrb.mxu0 %vm8671_vm11, %v8670_v17  ;;  %v6925_v55 = vpop.f32.mrf.mxu2  ;;  %v6938_v60 = vpop.f32.mrf.mxu1  ;;  %v8679_v3 = vld [vmem:[#allocation66_spill] sm:$0xff]  ;;  %v6949_v48 = vld [vmem:[%s8085_s3 + $0x20] sm:$0xff]  ;;  %v8681_v17 = vld [vmem:[#allocation77_spill] sm:$0xff] }
 0x358   : > { %3761 = vmatpush.msk.msra.mxu3 %vm6712_vm5, %v1714_v24  ;;  %3809 = vmatpush.msk.msrb.mxu2 %vm6759_vm10, %v1770_v22  ;;  %v1445_v30 = vsel %vm562_vm1, %v1421_v38, %v8679_v3  ;;  %v1453_v24 = vsel %vm562_vm1, %v6452_v40, %v1421_v38  ;;  %v8680_v22 = vld [vmem:[#allocation73_spill] sm:$0xff]  ;;  %v1452_v38 = vsel %vm562_vm1, %v6572_v6, %v1419_v10  ;;  %vm8711_vm11 = vmmov %vm8706_vm0 }
 0x359   : > { %3737 = vmatpush.msk.msrb.mxu1 %vm466_vm13, %v8675_v52  ;;  %3785 = vmatpush.msk.msrb.mxu0 %vm8678_vm4, %v8677_v9  ;;  %v1444_v40 = vsel %vm562_vm1, %v1419_v10, %v8680_v22  ;;  %v1443_v52 = vsel %vm562_vm1, %v1417_v61, %v8681_v17  ;;  %v1451_v3 = vsel %vm562_vm1, %v6607_v27, %v1417_v61  ;;  %v8684_v61 = vld [vmem:[#allocation56_spill] sm:$0xff] }
 0x35a   : > { %2293 = vmatmul.f32.gmra.mxu1 %v8581_v4  ;;  %2375 = vmatmul.f32.gmra.mxu0 %v6949_v48  ;;  %v6954_v4 = vpop.f32.mrf.mxu0  ;;  %v1712_v27 = vsel %vm965_vm3, %v6666_v46, %v1699_v28  ;;  %v7024_v46 = vld [vmem:[%s8085_s3 + $0x30] sm:$0xff] }
 0x35b   : > { %3725 = vmatmul.msk.f32.gmra.mxu2 %vm1918_vm15, %v8592_v43  ;;  %3739 = vmatpush.msk.msrb.mxu1 %vm6921_vm9, %v1453_v24  ;;  %v6969_v43 = vld [vmem:[%s8085_s3 + $0x58] sm:$0xff] }
 0x35c   : > { %3787 = vmatpush.msk.msrb.mxu0 %vm6909_vm12, %v1445_v30  ;;  %3679 = vmatmul.msk.f32.gmra.mxu3 %vm1918_vm15, %v6969_v43  ;;  %v8683_v30 = vld [vmem:[#allocation84_spill] sm:$0xff] }
 0x35d   : > { %v1701_v34 = vpop.permute.xlu0 %1700  ;;  %3741 = vmatpush.msk.msrb.mxu1 %vm6921_vm9, %v1452_v38 }
 0x35e   : > { %3789 = vmatpush.msk.msrb.mxu0 %vm6909_vm12, %v1444_v40  ;;  %v1415_v6 = vpop.permute.xlu1 %1414  ;;  %v1713_v10 = vsel %vm965_vm3, %v6632_v47, %v1701_v34  ;;  %v1769_v9 = vsel %vm965_vm3, %v1701_v34, %v8682_v23  ;;  %v6999_v47 = vpop.f32.mrf.mxu3  ;;  %v1768_v40 = vsel %vm965_vm3, %v1699_v28, %v8684_v61  ;;  %v7035_v34 = vld [vmem:[%s8085_s3 + $0x68] sm:$0xff]  ;;  %v7082_v61 = vld [vmem:[%s8085_s3 + $0x78] sm:$0xff] }
 0x35f   : > { %v1442_v24 = vsel %vm562_vm1, %v1415_v6, %v8683_v30  ;;  %v1450_v22 = vsel %vm562_vm1, %v6551_v63, %v1415_v6  ;;  %3763 = vmatpush.msk.msra.mxu3 %vm6712_vm5, %v1713_v10  ;;  %3811 = vmatpush.msk.msrb.mxu2 %vm6759_vm10, %v1769_v9  ;;  %v7019_v63 = vpop.f32.mrf.mxu2  ;;  %v1411_v28 = vpop.permute.xlu2 %1410  ;;  %v8686_v10 = vld [vmem:[#allocation78_spill] sm:$0xff]  ;;  %v8687_v30 = vld [vmem:[#allocation65_spill] sm:$0xff] }
 0x360   : > { %3743 = vmatpush.msk.msrb.mxu1 %vm6921_vm9, %v1451_v3  ;;  %3791 = vmatpush.msk.msrb.mxu0 %vm6909_vm12, %v1443_v52  ;;  %v7030_v38 = vpop.f32.mrf.mxu1 }
 0x361   : > { %3765 = vmatpush.msk.msra.mxu3 %vm6712_vm5, %v1712_v27  ;;  %3813 = vmatpush.msk.msrb.mxu2 %vm6759_vm10, %v1768_v40 }
 0x362   : > { %3745 = vmatpush.msk.msrb.mxu1 %vm6921_vm9, %v1450_v22  ;;  %3793 = vmatpush.msk.msrb.mxu0 %vm6909_vm12, %v1442_v24  ;;  %v7039_v52 = vpop.f32.mrf.mxu0  ;;  %v1448_v22 = vsel %vm562_vm1, %v6732_v33, %v1411_v28 }
 0x363   : > { %2296 = vmatmul.f32.gmra.mxu1 %v7024_v46  ;;  %2378 = vmatmul.f32.gmra.mxu0 %v7024_v46  ;;  %8685 = vst [vmem:[#allocation12_spill] sm:$0xff] %v7039_v52 }
 0x364   : > { %3726 = vmatmul.msk.f32.gmra.mxu2 %vm1918_vm15, %v6883_v62  ;;  %3680 = vmatmul.msk.f32.gmra.mxu3 %vm1918_vm15, %v7035_v34 }
 0x365   : > { %v1413_v17 = vpop.permute.xlu0 %1412 }
 0x366   : > { %v1697_v6 = vpop.permute.xlu1 %1696  ;;  %v1441_v23 = vsel %vm562_vm1, %v1413_v17, %v8686_v10  ;;  %v1449_v9 = vsel %vm562_vm1, %v6690_v0, %v1413_v17  ;;  %v8688_v0 = vld [vmem:[#allocation85_spill] sm:$0xff]  ;;  %v7069_v27 = vpop.f32.mrf.mxu3 }
 0x367   : > { %v1711_v3 = vsel %vm965_vm3, %v6609_v57, %v1697_v6  ;;  %v1767_v24 = vsel %vm965_vm3, %v1697_v6, %v8687_v30  ;;  %3747 = vmatpush.msk.msrb.mxu1 %vm6921_vm9, %v1449_v9  ;;  %3795 = vmatpush.msk.msrb.mxu0 %vm6909_vm12, %v1441_v23  ;;  %v1440_v57 = vsel %vm562_vm1, %v1411_v28, %v8688_v0  ;;  %v7077_v33 = vpop.f32.mrf.mxu2  ;;  %v1407_v28 = vpop.permute.xlu2 %1406  ;;  %v8689_v6 = vld [vmem:[#allocation67_spill] sm:$0xff] }
 0x368   : > { %3767 = vmatpush.msk.msra.mxu3 %vm6712_vm5, %v1711_v3  ;;  %3815 = vmatpush.msk.msrb.mxu2 %vm6759_vm10, %v1767_v24  ;;  %v7092_v23 = vpop.f32.mrf.mxu1  ;;  %v8690_v9 = vld [vmem:[#allocation31_spill] sm:$0xff]  ;;  %v8692_v24 = vld [vmem:[#allocation30_spill] sm:$0xff] }
 0x369   : > { %3749 = vmatpush.msk.msrb.mxu1 %vm6921_vm9, %v1448_v22  ;;  %3797 = vmatpush.msk.msrb.mxu0 %vm6909_vm12, %v1440_v57  ;;  %v1438_v22 = vsel %vm562_vm1, %v1407_v28, %v8692_v24  ;;  %v2790_v24 = vld [vmem:[%s8091_s9 + $0x1f8] sm:$0xff] }
 0x36b   : > { %2299 = vmatmul.f32.gmra.mxu1 %v8588_v15  ;;  %2381 = vmatmul.f32.gmra.mxu0 %v8588_v15 }
 0x36c   : > { %3727 = vmatmul.msk.f32.gmra.mxu2 %vm1918_vm15, %v6969_v43  ;;  %3681 = vmatmul.msk.f32.gmra.mxu3 %vm1918_vm15, %v7082_v61 }
 0x36d   : > { %v1695_v40 = vpop.permute.xlu0 %1694 }
 0x36e   : > { %v1409_v17 = vpop.permute.xlu1 %1408  ;;  %v1710_v15 = vsel %vm965_vm3, %v6750_v20, %v1695_v40  ;;  %v1766_v10 = vsel %vm965_vm3, %v1695_v40, %v8689_v6  ;;  %v7104_v20 = vpop.f32.mrf.mxu0  ;;  %v2755_v40 = vld [vmem:[%s8091_s9 + $0xe0] sm:$0xff]  ;;  %v2752_v6 = vld [vmem:[%s8091_s9 + $0xc8] sm:$0xff] }
 0x36f   : > { %v1439_v3 = vsel %vm562_vm1, %v1409_v17, %v8690_v9  ;;  %v1447_v30 = vsel %vm562_vm1, %v6668_v41, %v1409_v17  ;;  %3769 = vmatpush.msk.msra.mxu3 %vm6712_vm5, %v1710_v15  ;;  %3817 = vmatpush.msk.msrb.mxu2 %vm6759_vm10, %v1766_v10  ;;  %8691 = vst [vmem:[#allocation23_spill] sm:$0xff] %v7104_v20  ;;  %v7122_v25 = vpop.f32.mrf.mxu3  ;;  %v7139_v29 = vpop.f32.mrf.mxu2  ;;  %v2754_v17 = vld [vmem:[%s8091_s9 + $0xd8] sm:$0xff]  ;;  %v2737_v20 = vld [vmem:[%s8091_s9 + $0x50] sm:$0xff] }
 0x370   : > { %3751 = vmatpush.msk.msrb.mxu1 %vm6921_vm9, %v1447_v30  ;;  %3799 = vmatpush.msk.msrb.mxu0 %vm6909_vm12, %v1439_v3  ;;  %v1446_v41 = vsel %vm562_vm1, %v6788_v5, %v1407_v28  ;;  %v2758_v5 = vld [vmem:[%s8091_s9 + $0xf8] sm:$0xff]  ;;  %v7141_v0 = vpop.f32.mrf.mxu1  ;;  %v2751_v30 = vld [vmem:[%s8091_s9 + $0xc0] sm:$0xff] }
 0x371   : > { %2896 = vmatpush.msrb.mxu3 %v2758_v5  ;;  %v3963_v28 = vld [vmem:[%s8085_s3 + $0x18] sm:$0xff]  ;;  %2978 = vmatpush.msra.mxu2 %v2790_v24  ;;  %v2749_v5 = vld [vmem:[%s8091_s9 + $0xb0] sm:$0xff] }
 0x372   : > { %3753 = vmatpush.msk.msrb.mxu1 %vm6921_vm9, %v1446_v41  ;;  %3801 = vmatpush.msk.msrb.mxu0 %vm6909_vm12, %v1438_v22  ;;  %v3964_v22 = vld [vmem:[%s8085_s3 + $0x28] sm:$0xff]  ;;  %v2789_v41 = vld [vmem:[%s8091_s9 + $0x1f0] sm:$0xff]  ;;  %v2774_v24 = vld [vmem:[%s8091_s9 + $0x178] sm:$0xff] }
 0x373   : > { %2302 = vmatmul.f32.gmra.mxu1 %v6105_v56  ;;  %2384 = vmatmul.f32.gmra.mxu0 %v6105_v56  ;;  %v2757_v56 = vld [vmem:[%s8091_s9 + $0xf0] sm:$0xff] }
 0x374   : > { %3728 = vmatmul.msk.f32.gmra.mxu2 %vm1918_vm15, %v7035_v34  ;;  %3770 = vmatmul.msk.f32.vlgmr.msra.gmra.mxu3 %vm1918_vm15, %v3962_v26 }
 0x375   : > { %2897 = vmatpush.msrb.mxu3 %v2757_v56  ;;  %2979 = vmatpush.msra.mxu2 %v2789_v41  ;;  %v3966_v41 = vld [vmem:[%s8085_s3 + $0x38] sm:$0xff] }
 0x376   : > { %v7143_v57 = vpop.f32.mrf.mxu0  ;;  %2937 = vmatpush.msra.mxu0 %v2774_v24  ;;  %v2784_v24 = vld [vmem:[%s8091_s9 + $0x1c8] sm:$0xff] }
 0x377   : > { %2898 = vmatpush.msrb.mxu3 %v2756_v36  ;;  %v7159_v15 = vpop.f32.mrf.mxu3  ;;  %v7167_v10 = vpop.f32.mrf.mxu2  ;;  %v2748_v36 = vld [vmem:[%s8091_s9 + $0xa8] sm:$0xff] }
 0x378   : > { %v7169_v9 = vpop.f32.mrf.mxu1 }
 0x379   : > { %2899 = vmatpush.msrb.mxu3 %v2755_v40  ;;  %v2787_v40 = vld [vmem:[%s8091_s9 + $0x1e0] sm:$0xff] }
 0x37b   : > { %2305 = vmatmul.f32.gmra.mxu1 %v6190_v21  ;;  %2387 = vmatmul.f32.gmra.mxu0 %v6190_v21  ;;  %v2753_v21 = vld [vmem:[%s8091_s9 + $0xd0] sm:$0xff] }
 0x37c   : > { %3729 = vmatmul.msk.f32.gmra.mxu2 %vm1918_vm15, %v7082_v61  ;;  %3771 = vmatmul.msk.f32.gmra.mxu3 %vm1918_vm15, %v3963_v28 }
 0x37d   : > { %2900 = vmatpush.msrb.mxu3 %v2754_v17  ;;  %v3965_v17 = vld [vmem:[%s8085_s3] sm:$0xff] }
 0x37e   : > { %v7173_v3 = vpop.f32.mrf.mxu0 }
 0x37f   : > { %2901 = vmatpush.msrb.mxu3 %v2753_v21  ;;  %v7198_v56 = vpop.f32.mrf.mxu3  ;;  %v7209_v21 = vpop.f32.mrf.mxu2 }
 0x381   : > { %2902 = vmatpush.msrb.mxu3 %v2752_v6  ;;  %v2742_v6 = vld [vmem:[%s8091_s9 + $0x78] sm:$0xff] }
 0x382   : > { %2855 = vmatpush.msra.mxu1 %v2742_v6  ;;  %v2772_v6 = vld [vmem:[%s8091_s9 + $0x168] sm:$0xff] }
 0x383   : > { %2308 = vmatmul.f32.gmra.mxu1 %v6259_v8  ;;  %2390 = vmatmul.f32.gmra.mxu0 %v6259_v8  ;;  %v2750_v8 = vld [vmem:[%s8091_s9 + $0xb8] sm:$0xff] }
 0x384   : > { %3818 = vmatmul.msk.f32.vlgmr.msrb.gmra.mxu2 %vm1918_vm15, %v3962_v26  ;;  %3772 = vmatmul.msk.f32.gmra.mxu3 %vm1918_vm15, %v3964_v22  ;;  %v2788_v26 = vld [vmem:[%s8091_s9 + $0x1e8] sm:$0xff] }
 0x385   : > { %2903 = vmatpush.msrb.mxu3 %v2751_v30  ;;  %2980 = vmatpush.msra.mxu2 %v2788_v26  ;;  %v2747_v30 = vld [vmem:[%s8091_s9 + $0xa0] sm:$0xff]  ;;  %v2741_v26 = vld [vmem:[%s8091_s9 + $0x70] sm:$0xff] }
 0x386   : > { %2856 = vmatpush.msra.mxu1 %v2741_v26  ;;  %v2739_v26 = vld [vmem:[%s8091_s9 + $0x60] sm:$0xff] }
 0x387   : > { %2904 = vmatpush.msrb.mxu3 %v2750_v8  ;;  %v7221_v8 = vpop.f32.mrf.mxu1  ;;  %2981 = vmatpush.msra.mxu2 %v2787_v40  ;;  %v2773_v40 = vld [vmem:[%s8091_s9 + $0x170] sm:$0xff] }
 0x388   : > { %2938 = vmatpush.msra.mxu0 %v2773_v40  ;;  %2857 = vmatpush.msra.mxu1 %v2740_v1  ;;  %v2783_v1 = vld [vmem:[%s8091_s9 + $0x1c0] sm:$0xff]  ;;  %v2738_v40 = vld [vmem:[%s8091_s9 + $0x58] sm:$0xff] }
 0x389   : > { %2905 = vmatpush.msrb.mxu3 %v2749_v5  ;;  %v2746_v5 = vld [vmem:[%s8091_s9 + $0x98] sm:$0xff] }
 0x38a   : > { %2939 = vmatpush.msra.mxu0 %v2772_v6  ;;  %2858 = vmatpush.msra.mxu1 %v2739_v26  ;;  %v2770_v6 = vld [vmem:[%s8091_s9 + $0x158] sm:$0xff]  ;;  %v2769_v26 = vld [vmem:[%s8091_s9 + $0x150] sm:$0xff] }
 0x38b   : > { %2451 = vmatmul.f32.vlgmr.msrb.gmra.mxu1 %v3965_v17  ;;  %2533 = vmatmul.f32.vlgmr.msrb.gmra.mxu0 %v3965_v17  ;;  %v2785_v17 = vld [vmem:[%s8091_s9 + $0x1d0] sm:$0xff] }
 0x38c   : > { %3819 = vmatmul.msk.f32.gmra.mxu2 %vm1918_vm15, %v3963_v28  ;;  %2906 = vmatpush.msrb.mxu3 %v2748_v36  ;;  %v2786_v28 = vld [vmem:[%s8091_s9 + $0x1d8] sm:$0xff]  ;;  %v7236_v36 = vpop.f32.mrf.mxu0 }
 0x38d   : > { %3773 = vmatmul.msk.f32.gmra.mxu3 %vm1918_vm15, %v3966_v41  ;;  %2982 = vmatpush.msra.mxu2 %v2786_v28  ;;  %v3967_v28 = vld [vmem:[%s8085_s3 + $0x10] sm:$0xff] }
 0x38e   : > { %2907 = vmatpush.msrb.mxu3 %v2747_v30  ;;  %v7253_v30 = vpop.f32.mrf.mxu3  ;;  %2859 = vmatpush.msra.mxu1 %v2738_v40 }
 0x38f   : > { %2983 = vmatpush.msra.mxu2 %v2785_v17  ;;  %v7282_v17 = vpop.f32.mrf.mxu2 }
 0x390   : > { %2908 = vmatpush.msrb.mxu3 %v2746_v5  ;;  %v2744_v5 = vld [vmem:[%s8091_s9 + $0x88] sm:$0xff]  ;;  %2860 = vmatpush.msra.mxu1 %v2737_v20 }
 0x391   : > { %2984 = vmatpush.msra.mxu2 %v2784_v24  ;;  %v2782_v24 = vld [vmem:[%s8091_s9 + $0x1b8] sm:$0xff]  ;;  %v2780_v20 = vld [vmem:[%s8091_s9 + $0x1a8] sm:$0xff] }
 0x392   : > { %2909 = vmatpush.msrb.mxu3 %v2745_v42  ;;  %v2771_v42 = vld [vmem:[%s8091_s9 + $0x160] sm:$0xff] }
 0x393   : > { %2454 = vmatmul.f32.gmra.mxu1 %v3967_v28  ;;  %2536 = vmatmul.f32.gmra.mxu0 %v3967_v28  ;;  %v7290_v28 = vpop.f32.mrf.mxu1 }
 0x394   : > { %3820 = vmatmul.msk.f32.gmra.mxu2 %vm1918_vm15, %v3964_v22  ;;  %v2743_v22 = vld [vmem:[%s8091_s9 + $0x80] sm:$0xff]  ;;  %2910 = vmatpush.msrb.mxu3 %v2744_v5  ;;  %v7295_v37 = vpop.f32.mrf.mxu0  ;;  %v2781_v5 = vld [vmem:[%s8091_s9 + $0x1b0] sm:$0xff] }
 0x395   : > { %3774 = vmatmul.msk.f32.gmra.mxu3 %vm1918_vm15, %v6883_v62  ;;  %2940 = vmatpush.msra.mxu0 %v2771_v42  ;;  %v2736_v42 = vld [vmem:[%s8091_s9 + $0x48] sm:$0xff] }
 0x396   : > { %2985 = vmatpush.msra.mxu2 %v2783_v1  ;;  %2911 = vmatpush.msrb.mxu3 %v2743_v22  ;;  %v2768_v1 = vld [vmem:[%s8091_s9 + $0x148] sm:$0xff]  ;;  %v7311_v40 = vpop.f32.mrf.mxu3  ;;  %v2767_v22 = vld [vmem:[%s8091_s9 + $0x140] sm:$0xff] }
 0x397   : > { %2941 = vmatpush.msra.mxu0 %v2770_v6  ;;  %8693 = vst [vmem:[#allocation10_spill] sm:$0xff] %v7311_v40  ;;  %2861 = vmatpush.msra.mxu1 %v2736_v42  ;;  %v2734_v6 = vld [vmem:[%s8091_s9 + $0x38] sm:$0xff]  ;;  %v2733_v42 = vld [vmem:[%s8091_s9 + $0x30] sm:$0xff] }
 0x398   : > { %2986 = vmatpush.msra.mxu2 %v2782_v24  ;;  %v2766_v24 = vld [vmem:[%s8091_s9 + $0x138] sm:$0xff] }
 0x399   : > { %2942 = vmatpush.msra.mxu0 %v2769_v26  ;;  %v7334_v26 = vpop.f32.mrf.mxu2 }
 0x39a   : > { %2987 = vmatpush.msra.mxu2 %v2781_v5 }
 0x39b   : > { %2457 = vmatmul.f32.gmra.mxu1 %v6949_v48  ;;  %2539 = vmatmul.f32.gmra.mxu0 %v6949_v48  ;;  %v2735_v48 = vld [vmem:[%s8091_s9 + $0x40] sm:$0xff]  ;;  %v7336_v5 = vpop.f32.mrf.mxu1 }
 0x39c   : > { %3821 = vmatmul.msk.f32.gmra.mxu2 %vm1918_vm15, %v3966_v41  ;;  %2943 = vmatpush.msra.mxu0 %v2768_v1  ;;  %v2779_v41 = vld [vmem:[%s8091_s9 + $0x1a0] sm:$0xff]  ;;  %v7341_v1 = vpop.f32.mrf.mxu0 }
 0x39d   : > { %3775 = vmatmul.msk.f32.gmra.mxu3 %vm1918_vm15, %v6969_v43  ;;  %2988 = vmatpush.msra.mxu2 %v2780_v20  ;;  %v2778_v20 = vld [vmem:[%s8091_s9 + $0x198] sm:$0xff] }
 0x39e   : > { %2862 = vmatpush.msra.mxu1 %v2735_v48  ;;  %2944 = vmatpush.msra.mxu0 %v2767_v22  ;;  %v2765_v48 = vld [vmem:[%s8091_s9 + $0x130] sm:$0xff]  ;;  %v2732_v22 = vld [vmem:[%s8091_s9 + $0x28] sm:$0xff] }
 0x39f   : > { %2989 = vmatpush.msra.mxu2 %v2779_v41  ;;  %v7354_v41 = vpop.f32.mrf.mxu3 }
 0x3a0   : > { %2863 = vmatpush.msra.mxu1 %v2734_v6  ;;  %2945 = vmatpush.msra.mxu0 %v2766_v24  ;;  %8694 = vst [vmem:[#allocation20_spill] sm:$0xff] %v7354_v41  ;;  %v2777_v6 = vld [vmem:[%s8091_s9 + $0x190] sm:$0xff]  ;;  %v2731_v24 = vld [vmem:[%s8091_s9 + $0x20] sm:$0xff]  ;;  %v7378_v41 = vpop.permute.xlu0 %1880 }
 0x3a1   : > { %2990 = vmatpush.msra.mxu2 %v2778_v20  ;;  %v2730_v20 = vld [vmem:[%s8091_s9 + $0x18] sm:$0xff]  ;;  %v2043_v52 = vadd.f32 %v6673_v19, %v7378_v41  ;;  %v2728_v19 = vld [vmem:[%s8091_s9 + $0x8] sm:$0xff] }
 0x3a2   : > { %2864 = vmatpush.msra.mxu1 %v2733_v42  ;;  %2946 = vmatpush.msra.mxu0 %v2765_v48  ;;  %v2763_v42 = vld [vmem:[%s8091_s9 + $0x120] sm:$0xff]  ;;  %v2762_v48 = vld [vmem:[%s8091_s9 + $0x118] sm:$0xff] }
 0x3a3   : > { %2460 = vmatmul.f32.gmra.mxu1 %v7024_v46  ;;  %2542 = vmatmul.f32.gmra.mxu0 %v7024_v46  ;;  %v2764_v46 = vld [vmem:[%s8091_s9 + $0x128] sm:$0xff]  ;;  %v7388_v14 = vpop.f32.mrf.mxu1  ;;  %v2084_v49 = vadd.f32 %v6630_v13, %v2043_v52  ;;  %v3969_v13 = vld [vmem:[%s8085_s3 + $0x50] sm:$0xff] }
 0x3a4   : > { %3822 = vmatmul.msk.f32.gmra.mxu2 %vm1918_vm15, %v6883_v62  ;;  %2865 = vmatpush.msra.mxu1 %v2732_v22  ;;  %v2776_v62 = vld [vmem:[%s8091_s9 + $0x188] sm:$0xff]  ;;  %v7383_v22 = vpop.f32.mrf.mxu2 }
 0x3a5   : > { %3776 = vmatmul.msk.f32.gmra.mxu3 %vm1918_vm15, %v7035_v34  ;;  %2991 = vmatpush.msra.mxu2 %v2777_v6  ;;  %v2775_v6 = vld [vmem:[%s8091_s9 + $0x180] sm:$0xff]  ;;  %v2600_v52 = vmax.f32 %v2084_v49, 0.0 }
 0x3a6   : > { %2947 = vmatpush.msra.mxu0 %v2764_v46  ;;  %2866 = vmatpush.msra.mxu1 %v2731_v24  ;;  %v3968_v46 = vld [vmem:[%s8085_s3 + $0x40] sm:$0xff]  ;;  %v2729_v24 = vld [vmem:[%s8091_s9 + $0x10] sm:$0xff] }
 0x3a7   : > { %2992 = vmatpush.msra.mxu2 %v2776_v62  ;;  %v2761_v62 = vld [vmem:[%s8091_s9 + $0x110] sm:$0xff] }
 0x3a8   : > { %2948 = vmatpush.msra.mxu0 %v2763_v42  ;;  %2867 = vmatpush.msra.mxu1 %v2730_v20  ;;  %v7401_v42 = vpop.f32.mrf.mxu0  ;;  %v2760_v20 = vld [vmem:[%s8091_s9 + $0x108] sm:$0xff] }
 0x3a9   : > { %2993 = vmatpush.msra.mxu2 %v2775_v6  ;;  %v7422_v6 = vpop.permute.xlu1 %1885 }
 0x3aa   : > { %2949 = vmatpush.msra.mxu0 %v2762_v48  ;;  %2868 = vmatpush.msra.mxu1 %v2729_v24  ;;  %v2759_v48 = vld [vmem:[%s8091_s9 + $0x100] sm:$0xff] }
 0x3ab   : > { %2463 = vmatmul.f32.gmra.mxu1 %v3968_v46  ;;  %2545 = vmatmul.f32.gmra.mxu0 %v3968_v46  ;;  %v7413_v46 = vpop.f32.mrf.mxu3  ;;  %v7426_v24 = vpop.f32.mrf.mxu1 }
 0x3ac   : > { %3823 = vmatmul.msk.f32.gmra.mxu2 %vm1918_vm15, %v6969_v43  ;;  %8695 = vst [vmem:[#allocation15_spill] sm:$0xff] %v7413_v46  ;;  %2950 = vmatpush.msra.mxu0 %v2761_v62  ;;  %v2727_v43 = vld [vmem:[%s8091_s9] sm:$0xff]  ;;  %v7424_v40 = vpop.f32.mrf.mxu2  ;;  %v2046_v62 = vadd.f32 %v6716_v7, %v7422_v6  ;;  %v2207_v7 = vadd.f32 %v7143_v57, %v7378_v41  ;;  %v2821_v57 = vld [vmem:[%s8091_s9 + $0x2f0] sm:$0xff] }
 0x3ad   : > { %3777 = vmatmul.msk.f32.gmra.mxu3 %vm1918_vm15, %v7082_v61  ;;  %2869 = vmatpush.msra.mxu1 %v2728_v19  ;;  %8696 = vst [vmem:[#allocation89_spill] sm:$0xff] %v7426_v24  ;;  %v8697_v19 = vld [vmem:[#allocation13_spill] sm:$0xff] }
 0x3ae   : > { %2951 = vmatpush.msra.mxu0 %v2760_v20  ;;  %vm8698_vm1 = vcmp.lt.s32.totalorder %v8697_v19, 74  ;;  %v2822_v20 = vld [vmem:[%s8091_s9 + $0x2f8] sm:$0xff]  ;;  %v2087_v49 = vadd.f32 %v6664_v45, %v2046_v62  ;;  %v2820_v62 = vld [vmem:[%s8091_s9 + $0x2e8] sm:$0xff] }
 0x3af   : > { %2870 = vmatpush.msra.mxu1 %v2727_v43  ;;  %3060 = vmatpush.msra.mxu3 %v2822_v20  ;;  %vm8701_vm3 = vmmov %vm8698_vm1  ;;  %v2844_v19 = vld [vmem:[%s8091_s9 + $0x3a8] sm:$0xff] }
 0x3b0   : > { %2952 = vmatpush.msra.mxu0 %v2759_v48  ;;  %v7433_v46 = vpop.f32.mrf.mxu0  ;;  %v7445_v48 = vpop.permute.xlu2 %1890  ;;  %vm8704_vm10 = vmmov %vm8698_vm1 }
 0x3b1   : > { %3061 = vmatpush.msra.mxu3 %v2821_v57  ;;  %vm8710_vm12 = vmmov %vm8698_vm1 }
 0x3b2   : > { %vm8714_vm4 = vmmov %vm8698_vm1 }
 0x3b3   : > { %2466 = vmatmul.f32.gmra.mxu1 %v3969_v13  ;;  %2548 = vmatmul.f32.gmra.mxu0 %v3969_v13  ;;  %v2608_v13 = vmax.f32 %v2087_v49, 0.0  ;;  %v7458_v45 = vpop.f32.mrf.mxu1  ;;  %v2248_v49 = vadd.f32 %v7139_v29, %v2207_v7  ;;  %v2818_v29 = vld [vmem:[%s8091_s9 + $0x2d8] sm:$0xff] }
 0x3b4   : > { %3824 = vmatmul.msk.f32.gmra.mxu2 %vm1918_vm15, %v7035_v34  ;;  %v3970_v34 = vld [vmem:[%s8085_s3 + $0x60] sm:$0xff]  ;;  %v7454_v24 = vpop.f32.mrf.mxu2  ;;  %8700 = vst [vmem:[#allocation88_spill] sm:$0xff] %v7458_v45  ;;  %3062 = vmatpush.msra.mxu3 %v2820_v62  ;;  %v2125_v45 = vadd.f32 %v7141_v0, %v7378_v41  ;;  %v8702_v0 = vld [vmem:[#allocation82_spill] sm:$0xff] }
 0x3b5   : > { %3834 = vmatmul.msk.f32.vlgmr.msrb.gmra.mxu3 %vm8698_vm1, %v2600_v52  ;;  %v2049_v52 = vadd.f32 %v6746_v2, %v7445_v48  ;;  %v2602_v7 = vmax.f32 %v2248_v49, 0.0  ;;  %vm8703_vm5 = vcmp.lt.s32.totalorder %v8702_v0, 74  ;;  %vm8715_vm1 = vmmov %vm8706_vm0 }
 0x3b6   : > { %v7442_v43 = vpop.f32.mrf.mxu3  ;;  %vm8709_vm6 = vmmov %vm8703_vm5 }
 0x3b7   : > { %8699 = vst [vmem:[#allocation25_spill] sm:$0xff] %v7442_v43  ;;  %v1961_v43 = vadd.f32 %v6688_v44, %v7378_v41  ;;  %vm8713_vm9 = vmmov %vm8703_vm5 }
 0x3b8   : > { %v7468_v20 = vpop.f32.mrf.mxu0 }
 0x3b9   : > { %v2002_v49 = vadd.f32 %v6852_v35, %v1961_v43  ;;  %v7515_v35 = vpop.permute.xlu1 %1900 }
 0x3bb   : > { %2469 = vmatmul.f32.gmra.mxu1 %v3970_v34  ;;  %2551 = vmatmul.f32.gmra.mxu0 %v3970_v34  ;;  %v2819_v34 = vld [vmem:[%s8091_s9 + $0x2e0] sm:$0xff] }
 0x3bc   : > { %3825 = vmatmul.msk.f32.gmra.mxu2 %vm1918_vm15, %v7082_v61  ;;  %v2090_v61 = vadd.f32 %v6692_v16, %v2049_v52  ;;  %v2210_v16 = vadd.f32 %v7173_v3, %v7422_v6  ;;  %3063 = vmatpush.msra.mxu3 %v2819_v34  ;;  %v3971_v52 = vld [vmem:[%s8085_s3 + $0x70] sm:$0xff]  ;;  %v2166_v34 = vadd.f32 %v7069_v27, %v2125_v45  ;;  %v2599_v27 = vmax.f32 %v2002_v49, 0.0 }
 0x3bd   : > { %3835 = vmatmul.msk.f32.gmra.mxu3 %vm8701_vm3, %v2608_v13  ;;  %v7477_v13 = vpop.permute.xlu0 %1895  ;;  %v1964_v45 = vadd.f32 %v6728_v51, %v7422_v6  ;;  %v2055_v51 = vadd.f32 %v6840_v39, %v7515_v35 }
 0x3be   : > { %v7470_v2 = vpop.f32.mrf.mxu3  ;;  %v2616_v57 = vmax.f32 %v2090_v61, 0.0  ;;  %v2052_v44 = vadd.f32 %v6786_v12, %v7477_v13  ;;  %3064 = vmatpush.msra.mxu3 %v2818_v29  ;;  %v2251_v12 = vadd.f32 %v7167_v10, %v2210_v16  ;;  %v2816_v29 = vld [vmem:[%s8091_s9 + $0x2c8] sm:$0xff]  ;;  %v2601_v43 = vmax.f32 %v2166_v34, 0.0  ;;  %v2815_v16 = vld [vmem:[%s8091_s9 + $0x2c0] sm:$0xff] }
 0x3bf   : > { %v2128_v10 = vadd.f32 %v7169_v9, %v7422_v6  ;;  %v2814_v9 = vld [vmem:[%s8091_s9 + $0x2b8] sm:$0xff] }
 0x3c3   : > { %2472 = vmatmul.f32.gmra.mxu1 %v3971_v52  ;;  %2554 = vmatmul.f32.gmra.mxu0 %v3971_v52 }
 0x3c4   : > { %3850 = vmatmul.msk.f32.vlgmr.msra.gmra.mxu2 %vm8703_vm5, %v2602_v7  ;;  %v7495_v62 = vpop.f32.mrf.mxu2  ;;  %v2817_v7 = vld [vmem:[%s8091_s9 + $0x2d0] sm:$0xff] }
 0x3c5   : > { %3836 = vmatmul.msk.f32.gmra.mxu3 %vm8704_vm10, %v2616_v57  ;;  %v7499_v3 = vpop.f32.mrf.mxu1  ;;  %v2093_v57 = vadd.f32 %v6742_v11, %v2052_v44  ;;  %v2213_v11 = vadd.f32 %v7236_v36, %v7445_v48  ;;  %v8707_v44 = vld [vmem:[#allocation42_spill] sm:$0xff]  ;;  %v2005_v36 = vadd.f32 %v6938_v60, %v1964_v45  ;;  %v2096_v60 = vadd.f32 %v6780_v59, %v2055_v51  ;;  %vm8717_vm10 = vmmov %vm8714_vm4 }
 0x3c6   : > { %v7503_v52 = vpop.f32.mrf.mxu3  ;;  %v7505_v61 = vpop.f32.mrf.mxu0  ;;  %3065 = vmatpush.msra.mxu3 %v2817_v7  ;;  %vm8708_vm2 = vcmp.lt.s32.totalorder %v8707_v44, 74  ;;  %v2131_v59 = vadd.f32 %v7221_v8, %v7445_v48  ;;  %v2216_v51 = vadd.f32 %v7295_v37, %v7477_v13 }
 0x3c7   : > { %8705 = vst [vmem:[#allocation29_spill] sm:$0xff] %v7503_v52  ;;  %v2610_v52 = vmax.f32 %v2251_v12, 0.0  ;;  %v2624_v49 = vmax.f32 %v2093_v57, 0.0  ;;  %v2169_v12 = vadd.f32 %v7122_v25, %v2128_v10  ;;  %v2806_v57 = vld [vmem:[%s8091_s9 + $0x278] sm:$0xff]  ;;  %v2812_v25 = vld [vmem:[%s8091_s9 + $0x2a8] sm:$0xff]  ;;  %v2607_v45 = vmax.f32 %v2005_v36, 0.0  ;;  %vm8712_vm14 = vmmov %vm8708_vm2 }
 0x3c8   : > { %3066 = vmatpush.msra.mxu3 %v2816_v29  ;;  %v2254_v29 = vadd.f32 %v7209_v21, %v2213_v11  ;;  %3019 = vmatpush.msrb.mxu1 %v2806_v57  ;;  %v2805_v21 = vld [vmem:[%s8091_s9 + $0x270] sm:$0xff]  ;;  %v2811_v11 = vld [vmem:[%s8091_s9 + $0x2a0] sm:$0xff]  ;;  %v2838_v57 = vld [vmem:[%s8091_s9 + $0x378] sm:$0xff] }
 0x3c9   : > { %v2609_v10 = vmax.f32 %v2169_v12, 0.0  ;;  %v2172_v12 = vadd.f32 %v7159_v15, %v2131_v59  ;;  %3101 = vmatpush.msrb.mxu0 %v2838_v57  ;;  %vm8716_vm3 = vmmov %vm8708_vm2  ;;  %v2851_v57 = vld [vmem:[%s8091_s9 + $0x3e0] sm:$0xff] }
 0x3ca   : > { %3067 = vmatpush.msra.mxu3 %v2815_v16  ;;  %v1967_v16 = vadd.f32 %v6752_v18, %v7445_v48  ;;  %3020 = vmatpush.msrb.mxu1 %v2805_v21  ;;  %v2632_v18 = vmax.f32 %v2096_v60, 0.0  ;;  %v7601_v60 = vpop.permute.xlu0 %1910  ;;  %v2808_v21 = vld [vmem:[%s8091_s9 + $0x288] sm:$0xff] }
 0x3cb   : > { %3826 = vmatmul.msk.f32.vlgmr.msra.gmra.mxu1 %vm8706_vm0, %v2599_v27  ;;  %3842 = vmatmul.msk.f32.vlgmr.msra.gmra.mxu0 %vm8708_vm2, %v2601_v43  ;;  %v7563_v43 = vpop.permute.xlu2 %1905 }
 0x3cc   : > { %3851 = vmatmul.msk.f32.gmra.mxu2 %vm8709_vm6, %v2610_v52  ;;  %v7537_v34 = vpop.f32.mrf.mxu2  ;;  %3068 = vmatpush.msra.mxu3 %v2814_v9  ;;  %v2813_v52 = vld [vmem:[%s8091_s9 + $0x2b0] sm:$0xff]  ;;  %v2058_v8 = vadd.f32 %v6925_v55, %v7563_v43  ;;  %v2810_v9 = vld [vmem:[%s8091_s9 + $0x298] sm:$0xff]  ;;  %v2008_v36 = vadd.f32 %v7030_v38, %v1967_v16  ;;  %v2804_v55 = vld [vmem:[%s8091_s9 + $0x268] sm:$0xff] }
 0x3cd   : > { %3837 = vmatmul.msk.f32.gmra.mxu3 %vm8710_vm12, %v2624_v49  ;;  %v2618_v49 = vmax.f32 %v2254_v29, 0.0  ;;  %v2257_v29 = vadd.f32 %v7282_v17, %v2216_v51  ;;  %3021 = vmatpush.msrb.mxu1 %v2804_v55  ;;  %v2854_v17 = vld [vmem:[%s8091_s9 + $0x3f8] sm:$0xff]  ;;  %v2853_v16 = vld [vmem:[%s8091_s9 + $0x3f0] sm:$0xff]  ;;  %v2134_v51 = vadd.f32 %v7290_v28, %v7477_v13  ;;  %v2061_v28 = vadd.f32 %v7019_v63, %v7601_v60  ;;  %v2835_v63 = vld [vmem:[%s8091_s9 + $0x360] sm:$0xff] }
 0x3ce   : > { %v7543_v7 = vpop.f32.mrf.mxu1  ;;  %v7545_v39 = vpop.f32.mrf.mxu3  ;;  %3069 = vmatpush.msra.mxu3 %v2813_v52  ;;  %v2809_v52 = vld [vmem:[%s8091_s9 + $0x290] sm:$0xff]  ;;  %v2099_v15 = vadd.f32 %v6816_v58, %v2058_v8  ;;  %3142 = vmatpush.msrb.mxu2 %v2854_v17  ;;  %v2615_v59 = vmax.f32 %v2008_v36, 0.0  ;;  %v2836_v36 = vld [vmem:[%s8091_s9 + $0x368] sm:$0xff]  ;;  %vm8718_vm6 = vmmov %vm8703_vm5 }
 0x3cf   : > { %v7554_v27 = vpop.f32.mrf.mxu0  ;;  %v2837_v58 = vld [vmem:[%s8091_s9 + $0x370] sm:$0xff]  ;;  %v2626_v8 = vmax.f32 %v2257_v29, 0.0  ;;  %vm8719_vm12 = vmmov %vm8714_vm4 }
 0x3d0   : > { %3070 = vmatpush.msra.mxu3 %v2812_v25  ;;  %v2803_v25 = vld [vmem:[%s8091_s9 + $0x260] sm:$0xff]  ;;  %3102 = vmatpush.msrb.mxu0 %v2837_v58  ;;  %v2801_v29 = vld [vmem:[%s8091_s9 + $0x250] sm:$0xff] }
 0x3d1   : > { %3022 = vmatpush.msrb.mxu1 %v2803_v25  ;;  %3143 = vmatpush.msrb.mxu2 %v2853_v16  ;;  %v2800_v25 = vld [vmem:[%s8091_s9 + $0x248] sm:$0xff] }
 0x3d2   : > { %3071 = vmatpush.msra.mxu3 %v2811_v11  ;;  %v2617_v11 = vmax.f32 %v2172_v12, 0.0  ;;  %v2852_v12 = vld [vmem:[%s8091_s9 + $0x3e8] sm:$0xff]  ;;  %3103 = vmatpush.msrb.mxu0 %v2836_v36  ;;  %v2833_v36 = vld [vmem:[%s8091_s9 + $0x350] sm:$0xff] }
 0x3d3   : > { %3827 = vmatmul.msk.f32.gmra.mxu1 %vm8711_vm11, %v2607_v45  ;;  %3843 = vmatmul.msk.f32.gmra.mxu0 %vm8712_vm14, %v2609_v10  ;;  %vm8720_vm11 = vmmov %vm8706_vm0 }
 0x3d4   : > { %3852 = vmatmul.msk.f32.gmra.mxu2 %vm8713_vm9, %v2618_v49  ;;  %3072 = vmatpush.msra.mxu3 %v2810_v9  ;;  %v1970_v49 = vadd.f32 %v6798_v54, %v7477_v13  ;;  %v2219_v9 = vadd.f32 %v7341_v1, %v7515_v35  ;;  %v2640_v54 = vmax.f32 %v2099_v15, 0.0  ;;  %v2807_v1 = vld [vmem:[%s8091_s9 + $0x280] sm:$0xff]  ;;  %vm8721_vm14 = vmmov %vm8708_vm2 }
 0x3d5   : > { %3838 = vmatmul.msk.f32.gmra.mxu3 %vm8714_vm4, %v2632_v18  ;;  %v7587_v37 = vpop.f32.mrf.mxu2  ;;  %v2802_v18 = vld [vmem:[%s8091_s9 + $0x258] sm:$0xff]  ;;  %3144 = vmatpush.msrb.mxu2 %v2852_v12  ;;  %v2848_v12 = vld [vmem:[%s8091_s9 + $0x3c8] sm:$0xff]  ;;  %vm8722_vm9 = vmmov %vm8703_vm5 }
 0x3d6   : > { %3073 = vmatpush.msra.mxu3 %v2809_v52  ;;  %3023 = vmatpush.msrb.mxu1 %v2802_v18  ;;  %v2011_v55 = vadd.f32 %v7092_v23, %v1970_v49  ;;  %v2175_v52 = vadd.f32 %v7198_v56, %v2134_v51  ;;  %v2260_v17 = vadd.f32 %v7334_v26, %v2219_v9  ;;  %v2834_v23 = vld [vmem:[%s8091_s9 + $0x358] sm:$0xff]  ;;  %v7673_v56 = vpop.permute.xlu1 %1915  ;;  %v2799_v18 = vld [vmem:[%s8091_s9 + $0x240] sm:$0xff] }
 0x3d7   : > { %v7603_v38 = vpop.f32.mrf.mxu1  ;;  %v7615_v45 = vpop.f32.mrf.mxu3  ;;  %3104 = vmatpush.msrb.mxu0 %v2835_v63  ;;  %v2850_v26 = vld [vmem:[%s8091_s9 + $0x3d8] sm:$0xff]  ;;  %3145 = vmatpush.msrb.mxu2 %v2851_v57  ;;  %v1973_v51 = vadd.f32 %v6857_v31, %v7515_v35  ;;  %v2796_v57 = vld [vmem:[%s8091_s9 + $0x228] sm:$0xff] }
 0x3d8   : > { %v7617_v10 = vpop.f32.mrf.mxu0  ;;  %3074 = vmatpush.msra.mxu3 %v2808_v21  ;;  %v2102_v21 = vadd.f32 %v6891_v32, %v2061_v28  ;;  %3024 = vmatpush.msrb.mxu1 %v2801_v29  ;;  %v2625_v49 = vmax.f32 %v2175_v52, 0.0  ;;  %v2137_v32 = vadd.f32 %v7336_v5, %v7515_v35  ;;  %v2634_v9 = vmax.f32 %v2260_v17, 0.0  ;;  %v2832_v28 = vld [vmem:[%s8091_s9 + $0x348] sm:$0xff]  ;;  %v2797_v29 = vld [vmem:[%s8091_s9 + $0x230] sm:$0xff]  ;;  %v2847_v52 = vld [vmem:[%s8091_s9 + $0x3c0] sm:$0xff] }
 0x3d9   : > { %3105 = vmatpush.msrb.mxu0 %v2834_v23  ;;  %3146 = vmatpush.msrb.mxu2 %v2850_v26  ;;  %v2064_v5 = vadd.f32 %v7077_v33, %v7673_v56  ;;  %v2014_v33 = vadd.f32 %v6460_v53, %v1973_v51  ;;  %v1976_v26 = vadd.f32 %v6954_v4, %v7563_v43 }
 0x3da   : > { %3075 = vmatpush.msra.mxu3 %v2807_v1  ;;  %3025 = vmatpush.msrb.mxu1 %v2800_v25  ;;  %v2648_v31 = vmax.f32 %v2102_v21, 0.0  ;;  %v2178_v1 = vadd.f32 %v7253_v30, %v2137_v32  ;;  %v2140_v25 = vadd.f32 %v7388_v14, %v7563_v43  ;;  %v2225_v51 = vadd.f32 %v7433_v46, %v7601_v60  ;;  %v2846_v14 = vld [vmem:[%s8091_s9 + $0x3b8] sm:$0xff]  ;;  %v2795_v46 = vld [vmem:[%s8091_s9 + $0x220] sm:$0xff] }
 0x3db   : > { %3828 = vmatmul.msk.f32.gmra.mxu1 %vm8715_vm1, %v2615_v59  ;;  %3844 = vmatmul.msk.f32.gmra.mxu0 %vm8716_vm3, %v2617_v11  ;;  %v2623_v11 = vmax.f32 %v2011_v55, 0.0  ;;  %v2831_v55 = vld [vmem:[%s8091_s9 + $0x340] sm:$0xff]  ;;  %v2105_v30 = vadd.f32 %v6999_v47, %v2064_v5  ;;  %v2631_v47 = vmax.f32 %v2014_v33, 0.0  ;;  %v2371_v32 = vadd.f32 %v7505_v61, %v7378_v41  ;;  %v2845_v61 = vld [vmem:[%s8091_s9 + $0x3b0] sm:$0xff]  ;;  %v2794_v5 = vld [vmem:[%s8091_s9 + $0x218] sm:$0xff] }
 0x3dc   : > { %3853 = vmatmul.msk.f32.gmra.mxu2 %vm8703_vm5, %v2626_v8  ;;  %v2222_v8 = vadd.f32 %v7401_v42, %v7563_v43  ;;  %v2849_v42 = vld [vmem:[%s8091_s9 + $0x3d0] sm:$0xff]  ;;  %3026 = vmatpush.msrb.mxu1 %v2799_v18  ;;  %v2633_v21 = vmax.f32 %v2178_v1, 0.0  ;;  %vm8727_vm1 = vmmov %vm8706_vm0 }
 0x3dd   : > { %3839 = vmatmul.msk.f32.gmra.mxu3 %vm8717_vm10, %v2640_v54  ;;  %v2798_v54 = vld [vmem:[%s8091_s9 + $0x238] sm:$0xff]  ;;  %3106 = vmatpush.msrb.mxu0 %v2833_v36  ;;  %v2656_v4 = vmax.f32 %v2105_v30, 0.0  ;;  %v2829_v18 = vld [vmem:[%s8091_s9 + $0x330] sm:$0xff]  ;;  %v8724_v36 = vld [vmem:[#allocation80_spill] sm:$0xff] }
 0x3de   : > { %v7664_v15 = vpop.f32.mrf.mxu2  ;;  %v2263_v63 = vadd.f32 %v7383_v22, %v2222_v8  ;;  %3147 = vmatpush.msrb.mxu2 %v2849_v42  ;;  %3027 = vmatpush.msrb.mxu1 %v2798_v54  ;;  %v8723_v8 = vld [vmem:[#allocation10_spill] sm:$0xff]  ;;  %v2828_v42 = vld [vmem:[%s8091_s9 + $0x328] sm:$0xff]  ;;  %v2266_v54 = vadd.f32 %v7424_v40, %v2225_v51  ;;  %v8725_v30 = vld [vmem:[#allocation12_spill] sm:$0xff]  ;;  %v2374_v51 = vadd.f32 %v7554_v27, %v7422_v6 }
 0x3df   : > { %v7681_v16 = vpop.f32.mrf.mxu3  ;;  %3107 = vmatpush.msrb.mxu0 %v2832_v28  ;;  %v2412_v28 = vadd.f32 %v7495_v62, %v2371_v32  ;;  %v2793_v1 = vld [vmem:[%s8091_s9 + $0x210] sm:$0xff]  ;;  %vm8728_vm3 = vmmov %vm8708_vm2  ;;  %v2842_v27 = vld [vmem:[%s8091_s9 + $0x398] sm:$0xff] }
 0x3e0   : > { %v7679_v58 = vpop.f32.mrf.mxu1  ;;  %v7683_v59 = vpop.f32.mrf.mxu0  ;;  %3148 = vmatpush.msrb.mxu2 %v2848_v12  ;;  %3028 = vmatpush.msrb.mxu1 %v2797_v29  ;;  %v2827_v12 = vld [vmem:[%s8091_s9 + $0x320] sm:$0xff]  ;;  %vm8734_vm10 = vmmov %vm8706_vm0 }
 0x3e1   : > { %3108 = vmatpush.msrb.mxu0 %v2831_v55 }
 0x3e2   : > { %3149 = vmatpush.msrb.mxu2 %v2847_v52  ;;  %3029 = vmatpush.msrb.mxu1 %v2796_v57  ;;  %v1979_v52 = vadd.f32 %v8725_v30, %v7601_v60  ;;  %v8726_v57 = vld [vmem:[#allocation89_spill] sm:$0xff]  ;;  %v2823_v30 = vld [vmem:[%s8091_s9 + $0x300] sm:$0xff] }
 0x3e3   : > { %3829 = vmatmul.msk.f32.gmra.mxu1 %vm8706_vm0, %v2623_v11  ;;  %3845 = vmatmul.msk.f32.gmra.mxu0 %vm8708_vm2, %v2625_v49  ;;  %v2830_v11 = vld [vmem:[%s8091_s9 + $0x338] sm:$0xff]  ;;  %v2642_v49 = vmax.f32 %v2263_v63, 0.0  ;;  %vm8735_vm0 = vmmov %vm8708_vm2 }
 0x3e4   : > { %3854 = vmatmul.msk.f32.gmra.mxu2 %vm8718_vm6, %v2634_v9  ;;  %3109 = vmatpush.msrb.mxu0 %v2830_v11  ;;  %v2181_v9 = vadd.f32 %v8723_v8, %v2140_v25  ;;  %v2143_v25 = vadd.f32 %v8726_v57, %v7601_v60  ;;  %v2843_v11 = vld [vmem:[%s8091_s9 + $0x3a0] sm:$0xff]  ;;  %v2825_v8 = vld [vmem:[%s8091_s9 + $0x310] sm:$0xff]  ;;  %v2840_v57 = vld [vmem:[%s8091_s9 + $0x388] sm:$0xff] }
 0x3e5   : > { %3840 = vmatmul.msk.f32.gmra.mxu3 %vm8719_vm12, %v2648_v31  ;;  %v2017_v31 = vadd.f32 %v8724_v36, %v1976_v26  ;;  %3150 = vmatpush.msrb.mxu2 %v2846_v14  ;;  %v2650_v26 = vmax.f32 %v2266_v54, 0.0  ;;  %v2791_v14 = vld [vmem:[%s8091_s9 + $0x200] sm:$0xff]  ;;  %v2841_v36 = vld [vmem:[%s8091_s9 + $0x390] sm:$0xff]  ;;  %vm8736_vm2 = vmmov %vm8703_vm5 }
 0x3e6   : > { %3030 = vmatpush.msrb.mxu1 %v2795_v46  ;;  %3110 = vmatpush.msrb.mxu0 %v2829_v18  ;;  %v2641_v63 = vmax.f32 %v2181_v9, 0.0  ;;  %v8731_v18 = vld [vmem:[#allocation20_spill] sm:$0xff]  ;;  %vm8739_vm6 = vmmov %vm8727_vm1 }
 0x3e7   : > { %v7728_v53 = vpop.f32.mrf.mxu2  ;;  %v7739_v17 = vpop.f32.mrf.mxu3  ;;  %3151 = vmatpush.msrb.mxu2 %v2845_v61  ;;  %v2639_v62 = vmax.f32 %v2017_v31, 0.0  ;;  %v2184_v61 = vadd.f32 %v8731_v18, %v2143_v25  ;;  %v2415_v31 = vadd.f32 %v7537_v34, %v2374_v51  ;;  %v8733_v34 = vld [vmem:[#allocation23_spill] sm:$0xff]  ;;  %vm8740_vm12 = vmmov %vm8735_vm0 }
 0x3e8   : > { %v7737_v22 = vpop.f32.mrf.mxu1  ;;  %v7743_v23 = vpop.f32.mrf.mxu0  ;;  %3031 = vmatpush.msrb.mxu1 %v2794_v5  ;;  %3111 = vmatpush.msrb.mxu0 %v2828_v42  ;;  %v2824_v42 = vld [vmem:[%s8091_s9 + $0x308] sm:$0xff] }
 0x3e9   : > { %3152 = vmatpush.msrb.mxu2 %v2844_v19  ;;  %v2612_v25 = vmax.f32 %v2415_v31, 0.0 }
 0x3ea   : > { %3032 = vmatpush.msrb.mxu1 %v2793_v1  ;;  %3112 = vmatpush.msrb.mxu0 %v2827_v12 }
 0x3eb   : > { %3830 = vmatmul.msk.f32.gmra.mxu1 %vm8720_vm11, %v2631_v47  ;;  %3846 = vmatmul.msk.f32.gmra.mxu0 %vm8721_vm14, %v2633_v21  ;;  %v2792_v47 = vld [vmem:[%s8091_s9 + $0x208] sm:$0xff]  ;;  %v2228_v21 = vadd.f32 %v7468_v20, %v7673_v56  ;;  %v2826_v20 = vld [vmem:[%s8091_s9 + $0x318] sm:$0xff] }
 0x3ec   : > { %3855 = vmatmul.msk.f32.gmra.mxu2 %vm8722_vm9, %v2642_v49  ;;  %v2604_v49 = vmax.f32 %v2412_v28, 0.0  ;;  %3033 = vmatpush.msrb.mxu1 %v2792_v47  ;;  %v2377_v47 = vadd.f32 %v7617_v10, %v7445_v48  ;;  %v8738_v10 = vld [vmem:[#allocation16_spill] sm:$0xff] }
 0x3ed   : > { %3841 = vmatmul.msk.f32.gmra.mxu3 %vm8714_vm4, %v2656_v4  ;;  %v8730_v4 = vld [vmem:[#allocation86_spill] sm:$0xff]  ;;  %3153 = vmatpush.msrb.mxu2 %v2843_v11  ;;  %v2269_v9 = vadd.f32 %v7454_v24, %v2228_v21  ;;  %v8732_v24 = vld [vmem:[#allocation88_spill] sm:$0xff] }
 0x3ee   : > { %v2020_v46 = vadd.f32 %v8730_v4, %v1979_v52  ;;  %3113 = vmatpush.msrb.mxu0 %v2826_v20  ;;  %3034 = vmatpush.msrb.mxu1 %v2791_v14  ;;  %v2146_v28 = vadd.f32 %v8732_v24, %v7673_v56  ;;  %v2839_v21 = vld [vmem:[%s8091_s9 + $0x380] sm:$0xff]  ;;  %v2418_v51 = vadd.f32 %v7587_v37, %v2377_v47  ;;  %v8741_v37 = vld [vmem:[#allocation25_spill] sm:$0xff] }
 0x3ef   : > { %v7787_v33 = vpop.f32.mrf.mxu2  ;;  %v7797_v29 = vpop.f32.mrf.mxu3  ;;  %3154 = vmatpush.msrb.mxu2 %v2842_v27  ;;  %v2658_v52 = vmax.f32 %v2269_v9, 0.0  ;;  %v2289_v4 = vadd.f32 %v7499_v3, %v7378_v41  ;;  %v8744_v47 = vld [vmem:[#allocation41_spill] sm:$0xff] }
 0x3f0   : > { %v7795_v40 = vpop.f32.mrf.mxu1  ;;  %v7799_v55 = vpop.f32.mrf.mxu0  ;;  %3114 = vmatpush.msrb.mxu0 %v2825_v8  ;;  %v2647_v12 = vmax.f32 %v2020_v46, 0.0  ;;  %v2380_v8 = vadd.f32 %v7683_v59, %v7477_v13  ;;  %v2292_v59 = vadd.f32 %v7543_v7, %v7422_v6  ;;  %vm8745_vm11 = vcmp.lt.s32.totalorder %v8744_v47, 74 }
 0x3f1   : > { %3155 = vmatpush.msrb.mxu2 %v2841_v36  ;;  %v2330_v9 = vadd.f32 %v8741_v37, %v2289_v4  ;;  %v8746_v4 = vld [vmem:[#allocation29_spill] sm:$0xff]  ;;  %vm8747_vm14 = vmmov %vm8745_vm11 }
 0x3f2   : > { %3115 = vmatpush.msrb.mxu0 %v2824_v42  ;;  %v2421_v3 = vadd.f32 %v7664_v15, %v2380_v8  ;;  %vm8748_vm9 = vmmov %vm8745_vm11 }
 0x3f3   : > { %3831 = vmatmul.msk.f32.gmra.mxu1 %vm8727_vm1, %v2639_v62  ;;  %3847 = vmatmul.msk.f32.gmra.mxu0 %vm8728_vm3, %v2641_v63  ;;  %v2649_v63 = vmax.f32 %v2184_v61, 0.0  ;;  %v1982_v62 = vadd.f32 %v8733_v34, %v7673_v56  ;;  %v2620_v61 = vmax.f32 %v2418_v51, 0.0  ;;  %v2603_v24 = vmax.f32 %v2330_v9, 0.0  ;;  %vm8749_vm4 = vmmov %vm8748_vm9 }
 0x3f4   : > { %3856 = vmatmul.msk.f32.gmra.mxu2 %vm8703_vm5, %v2650_v26  ;;  %3116 = vmatpush.msrb.mxu0 %v2823_v30  ;;  %v8737_v26 = vld [vmem:[#allocation15_spill] sm:$0xff]  ;;  %v2333_v30 = vadd.f32 %v7470_v2, %v2292_v59  ;;  %v2295_v2 = vadd.f32 %v7603_v38, %v7445_v48  ;;  %v2298_v9 = vadd.f32 %v7679_v58, %v7477_v13  ;;  %vm8750_vm1 = vmmov %vm8749_vm4 }
 0x3f5   : > { %3866 = vmatmul.msk.f32.vlgmr.msra.gmra.mxu3 %vm465_vm8, %v2604_v49  ;;  %v2187_v11 = vadd.f32 %v8737_v26, %v2146_v28  ;;  %v2023_v49 = vadd.f32 %v8738_v10, %v1982_v62  ;;  %3156 = vmatpush.msrb.mxu2 %v2840_v57  ;;  %vm8752_vm3 = vmmov %vm8750_vm1 }
 0x3f6   : > { %vm8753_vm5 = vmmov %vm8750_vm1 }
 0x3f7   : > { %v7842_v5 = vpop.f32.mrf.mxu2  ;;  %v2493_v19 = vpop.f32.mrf.mxu3  ;;  %3157 = vmatpush.msrb.mxu2 %v2839_v21  ;;  %v2657_v27 = vmax.f32 %v2187_v11, 0.0  ;;  %v2655_v18 = vmax.f32 %v2023_v49, 0.0  ;;  %v2611_v21 = vmax.f32 %v2333_v30, 0.0 }
 0x3f8   : > { %v7847_v54 = vpop.f32.mrf.mxu1  ;;  %v7851_v1 = vpop.f32.mrf.mxu0 }
 0x3fb   : > { %3832 = vmatmul.msk.f32.gmra.mxu1 %vm8734_vm10, %v2647_v12  ;;  %3848 = vmatmul.msk.f32.gmra.mxu0 %vm8735_vm0, %v2649_v63  ;;  %v2628_v12 = vmax.f32 %v2421_v3, 0.0  ;;  %v2383_v63 = vadd.f32 %v7743_v23, %v7515_v35 }
 0x3fc   : > { %3857 = vmatmul.msk.f32.gmra.mxu2 %vm8736_vm2, %v2658_v52 }
 0x3fd   : > { %3867 = vmatmul.msk.f32.gmra.mxu3 %vm465_vm8, %v2612_v25  ;;  %v2424_v57 = vadd.f32 %v7728_v53, %v2383_v63  ;;  %v2386_v53 = vadd.f32 %v7799_v55, %v7563_v43 }
 0x3ff   : > { %v7877_v20 = vpop.f32.mrf.mxu2  ;;  %v2496_v14 = vpop.f32.mrf.mxu3  ;;  %v2636_v49 = vmax.f32 %v2424_v57, 0.0  ;;  %v2427_v8 = vadd.f32 %v7787_v33, %v2386_v53  ;;  %v2389_v33 = vadd.f32 %v7851_v1, %v7601_v60 }
 0x400   : > { %v7879_v0 = vpop.f32.mrf.mxu1  ;;  %v7883_v46 = vpop.f32.mrf.mxu0 }
 0x403   : > { %3833 = vmatmul.msk.f32.gmra.mxu1 %vm8739_vm6, %v2655_v18  ;;  %3849 = vmatmul.msk.f32.gmra.mxu0 %vm8740_vm12, %v2657_v27  ;;  %v2336_v18 = vadd.f32 %v8746_v4, %v2295_v2 }
 0x405   : > { %3868 = vmatmul.msk.f32.gmra.mxu3 %vm465_vm8, %v2620_v61 }
 0x407   : > { %v2575_v36 = vpop.f32.mrf.mxu2  ;;  %v2499_v42 = vpop.f32.mrf.mxu3 }
 0x408   : > { %v2452_v31 = vpop.f32.mrf.mxu1  ;;  %v2534_v28 = vpop.f32.mrf.mxu0 }
 0x409   : > { %v2453_v50 = vadd.f32 %v2452_v31, %v7378_v41  ;;  %v2535_v44 = vadd.f32 %v2534_v28, %v7378_v41  ;;  %v2339_v28 = vadd.f32 %v7545_v39, %v2298_v9  ;;  %v2301_v39 = vadd.f32 %v7737_v22, %v7515_v35 }
 0x40b   : > { %v2494_v34 = vadd.f32 %v2493_v19, %v2453_v50  ;;  %3858 = vmatmul.msk.f32.vlgmr.msrb.gmra.mxu1 %vm464_vm7, %v2603_v24  ;;  %v2576_v15 = vadd.f32 %v2575_v36, %v2535_v44  ;;  %v2644_v24 = vmax.f32 %v2427_v8, 0.0 }
 0x40d   : > { %v2605_v52 = vmax.f32 %v2494_v34, 0.0  ;;  %3869 = vmatmul.msk.f32.gmra.mxu3 %vm465_vm8, %v2628_v12  ;;  %v2606_v7 = vmax.f32 %v2576_v15, 0.0  ;;  %v2430_v12 = vadd.f32 %v7842_v5, %v2389_v33  ;;  %v2392_v5 = vadd.f32 %v7883_v46, %v7673_v56 }
 0x40f   : > { %v2578_v25 = vpop.f32.mrf.mxu2  ;;  %3874 = vmatmul.msk.f32.vlgmr.msrb.gmra.mxu0 %vm466_vm13, %v2605_v52  ;;  %3882 = vmatmul.msk.f32.vlgmr.msrb.gmra.mxu2 %vm8745_vm11, %v2606_v7  ;;  %v2652_v52 = vmax.f32 %v2430_v12, 0.0 }
 0x410   : > { %v2455_v23 = vpop.f32.mrf.mxu1  ;;  %v2502_v19 = vpop.f32.mrf.mxu3 }
 0x411   : > { %v2456_v26 = vadd.f32 %v2455_v23, %v7422_v6  ;;  %v2537_v11 = vpop.f32.mrf.mxu0 }
 0x412   : > { %v2538_v10 = vadd.f32 %v2537_v11, %v7422_v6 }
 0x413   : > { %v2497_v51 = vadd.f32 %v2496_v14, %v2456_v26  ;;  %3859 = vmatmul.msk.f32.gmra.mxu1 %vm464_vm7, %v2611_v21  ;;  %v2619_v14 = vmax.f32 %v2336_v18, 0.0  ;;  %v2433_v21 = vadd.f32 %v7877_v20, %v2392_v5 }
 0x414   : > { %v2579_v27 = vadd.f32 %v2578_v25, %v2538_v10  ;;  %v2342_v25 = vadd.f32 %v7615_v45, %v2301_v39  ;;  %v2304_v45 = vadd.f32 %v7795_v40, %v7563_v43 }
 0x415   : > { %v2613_v61 = vmax.f32 %v2497_v51, 0.0  ;;  %3870 = vmatmul.msk.f32.gmra.mxu3 %vm465_vm8, %v2636_v49  ;;  %v2660_v49 = vmax.f32 %v2433_v21, 0.0 }
 0x416   : > { %v2614_v38 = vmax.f32 %v2579_v27, 0.0  ;;  %v2345_v51 = vadd.f32 %v7681_v16, %v2304_v45 }
 0x417   : > { %v2581_v37 = vpop.f32.mrf.mxu2  ;;  %3875 = vmatmul.msk.f32.gmra.mxu0 %vm466_vm13, %v2613_v61 }
 0x418   : > { %3883 = vmatmul.msk.f32.gmra.mxu2 %vm8747_vm14, %v2614_v38  ;;  %v2458_v6 = vpop.f32.mrf.mxu1  ;;  %v2505_v55 = vpop.f32.mrf.mxu3  ;;  %v2643_v61 = vmax.f32 %v2345_v51, 0.0  ;;  %v2307_v38 = vadd.f32 %v7847_v54, %v7601_v60 }
 0x419   : > { %v2459_v3 = vadd.f32 %v2458_v6, %v7445_v48  ;;  %v2540_v36 = vpop.f32.mrf.mxu0 }
 0x41a   : > { %v2541_v31 = vadd.f32 %v2540_v36, %v7445_v48 }
 0x41b   : > { %v2500_v59 = vadd.f32 %v2499_v42, %v2459_v3  ;;  %3860 = vmatmul.msk.f32.gmra.mxu1 %vm464_vm7, %v2619_v14  ;;  %v2627_v42 = vmax.f32 %v2339_v28, 0.0 }
 0x41c   : > { %v2582_v50 = vadd.f32 %v2581_v37, %v2541_v31 }
 0x41d   : > { %v2621_v44 = vmax.f32 %v2500_v59, 0.0  ;;  %3871 = vmatmul.msk.f32.gmra.mxu3 %vm465_vm8, %v2644_v24 }
 0x41e   : > { %v2622_v58 = vmax.f32 %v2582_v50, 0.0 }
 0x41f   : > { %v2584_v63 = vpop.f32.mrf.mxu2  ;;  %3876 = vmatmul.msk.f32.gmra.mxu0 %vm466_vm13, %v2621_v44 }
 0x420   : > { %3884 = vmatmul.msk.f32.gmra.mxu2 %vm8748_vm9, %v2622_v58  ;;  %v2461_v48 = vpop.f32.mrf.mxu1  ;;  %v2508_v1 = vpop.f32.mrf.mxu3 }
 0x421   : > { %v2462_v34 = vadd.f32 %v2461_v48, %v7477_v13  ;;  %v2543_v15 = vpop.f32.mrf.mxu0 }
 0x422   : > { %v2544_v30 = vadd.f32 %v2543_v15, %v7477_v13 }
 0x423   : > { %v2503_v7 = vadd.f32 %v2502_v19, %v2462_v34  ;;  %3861 = vmatmul.msk.f32.gmra.mxu1 %vm464_vm7, %v2627_v42  ;;  %v2635_v19 = vmax.f32 %v2342_v25, 0.0 }
 0x424   : > { %v2585_v57 = vadd.f32 %v2584_v63, %v2544_v30 }
 0x425   : > { %v2629_v23 = vmax.f32 %v2503_v7, 0.0  ;;  %3872 = vmatmul.msk.f32.gmra.mxu3 %vm465_vm8, %v2652_v52 }
 0x426   : > { %v2630_v22 = vmax.f32 %v2585_v57, 0.0 }
 0x427   : > { %v2587_v2 = vpop.f32.mrf.mxu2  ;;  %3877 = vmatmul.msk.f32.gmra.mxu0 %vm466_vm13, %v2629_v23 }
 0x428   : > { %3885 = vmatmul.msk.f32.gmra.mxu2 %vm8749_vm4, %v2630_v22  ;;  %v2464_v13 = vpop.f32.mrf.mxu1  ;;  %v2511_v46 = vpop.f32.mrf.mxu3 }
 0x429   : > { %v2465_v26 = vadd.f32 %v2464_v13, %v7515_v35  ;;  %v2546_v11 = vpop.f32.mrf.mxu0 }
 0x42a   : > { %v2547_v10 = vadd.f32 %v2546_v11, %v7515_v35 }
 0x42b   : > { %v2506_v20 = vadd.f32 %v2505_v55, %v2465_v26  ;;  %3862 = vmatmul.msk.f32.gmra.mxu1 %vm464_vm7, %v2635_v19  ;;  %v2348_v55 = vadd.f32 %v7739_v17, %v2307_v38 }
 0x42c   : > { %v2588_v53 = vadd.f32 %v2587_v2, %v2547_v10 }
 0x42d   : > { %v2637_v27 = vmax.f32 %v2506_v20, 0.0  ;;  %3873 = vmatmul.msk.f32.gmra.mxu3 %vm465_vm8, %v2660_v49  ;;  %vm8751_vm8 = vmmov %vm8750_vm1  ;;  %v2651_v31 = vmax.f32 %v2348_v55, 0.0 }
 0x42e   : > { %v2638_v4 = vmax.f32 %v2588_v53, 0.0 }
 0x42f   : > { %v2590_v18 = vpop.f32.mrf.mxu2  ;;  %3878 = vmatmul.msk.f32.gmra.mxu0 %vm466_vm13, %v2637_v27 }
 0x430   : > { %3886 = vmatmul.msk.f32.gmra.mxu2 %vm8750_vm1, %v2638_v4  ;;  %v2467_v35 = vpop.f32.mrf.mxu1  ;;  %v2514_v40 = vpop.f32.mrf.mxu3 }
 0x431   : > { %v2468_v16 = vadd.f32 %v2467_v35, %v7563_v43  ;;  %v2549_v8 = vpop.f32.mrf.mxu0 }
 0x432   : > { %v2550_v32 = vadd.f32 %v2549_v8, %v7563_v43  ;;  %v2310_v43 = vadd.f32 %v7879_v0, %v7673_v56 }
 0x433   : > { %v2509_v37 = vadd.f32 %v2508_v1, %v2468_v16  ;;  %3863 = vmatmul.msk.f32.gmra.mxu1 %vm464_vm7, %v2643_v61 }
 0x434   : > { %v2591_v6 = vadd.f32 %v2590_v18, %v2550_v32  ;;  %v2351_v28 = vadd.f32 %v7797_v29, %v2310_v43 }
 0x435   : > { %v2645_v14 = vmax.f32 %v2509_v37, 0.0 }
 0x436   : > { %v2646_v9 = vmax.f32 %v2591_v6, 0.0  ;;  %v2659_v48 = vmax.f32 %v2351_v28, 0.0 }
 0x437   : > { %v2593_v3 = vpop.f32.mrf.mxu2  ;;  %3879 = vmatmul.msk.f32.gmra.mxu0 %vm466_vm13, %v2645_v14 }
 0x438   : > { %3887 = vmatmul.msk.f32.gmra.mxu2 %vm8751_vm8, %v2646_v9  ;;  %v2470_v54 = vpop.f32.mrf.mxu1  ;;  %v2913_v36 = vpop.f32.mrf.mxu3 }
 0x439   : > { %v2471_v24 = vadd.f32 %v2470_v54, %v7601_v60  ;;  %v2552_v33 = vpop.f32.mrf.mxu0 }
 0x43a   : > { %v2553_v17 = vadd.f32 %v2552_v33, %v7601_v60 }
 0x43b   : > { %v2512_v59 = vadd.f32 %v2511_v46, %v2471_v24  ;;  %3864 = vmatmul.msk.f32.gmra.mxu1 %vm464_vm7, %v2651_v31 }
 0x43c   : > { %v2594_v50 = vadd.f32 %v2593_v3, %v2553_v17 }
 0x43d   : > { %v2653_v44 = vmax.f32 %v2512_v59, 0.0 }
 0x43e   : > { %v2654_v58 = vmax.f32 %v2594_v50, 0.0 }
 0x43f   : > { %v2596_v12 = vpop.f32.mrf.mxu2  ;;  %3880 = vmatmul.msk.f32.gmra.mxu0 %vm466_vm13, %v2653_v44 }
 0x440   : > { %3888 = vmatmul.msk.f32.gmra.mxu2 %vm8752_vm3, %v2654_v58  ;;  %v2473_v0 = vpop.f32.mrf.mxu1  ;;  %v2916_v63 = vpop.f32.mrf.mxu3 }
 0x441   : > { %v2474_v60 = vadd.f32 %v2473_v0, %v7673_v56  ;;  %v2555_v1 = vpop.f32.mrf.mxu0 }
 0x442   : > { %v2556_v42 = vadd.f32 %v2555_v1, %v7673_v56 }
 0x443   : > { %v2515_v39 = vadd.f32 %v2514_v40, %v2474_v60  ;;  %3865 = vmatmul.msk.f32.gmra.mxu1 %vm464_vm7, %v2659_v48  ;;  %vm3342_vm7 = vcmask 60416  }
 0x444   : > { %v2597_v29 = vadd.f32 %v2596_v12, %v2556_v42 }
 0x445   : > { %v2661_v34 = vmax.f32 %v2515_v39, 0.0 }
 0x446   : > { %v2662_v15 = vmax.f32 %v2597_v29, 0.0 }
 0x447   : > { %v2995_v30 = vpop.f32.mrf.mxu2  ;;  %3881 = vmatmul.msk.f32.gmra.mxu0 %vm466_vm13, %v2661_v34 }
 0x448   : > { %3889 = vmatmul.msk.f32.gmra.mxu2 %vm8753_vm5, %v2662_v15  ;;  %v2872_v52 = vpop.f32.mrf.mxu1  ;;  %v2919_v5 = vpop.f32.mrf.mxu3 }
 0x449   : > { %v2914_v7 = vadd.f32 %v2913_v36, %v2872_v52  ;;  %v2954_v57 = vpop.f32.mrf.mxu0 }
 0x44b   : > { %v2955_v25 = vadd.f32 %v2954_v57, %v2914_v7 }
 0x44d   : > { %v2996_v56 = vadd.f32 %v2995_v30, %v2955_v25 }
 0x44f   : > { %v2998_v23 = vpop.f32.mrf.mxu2 }
 0x450   : > { %v2875_v22 = vpop.f32.mrf.mxu1  ;;  %v2922_v62 = vpop.f32.mrf.mxu3 }
 0x451   : > { %v2917_v21 = vadd.f32 %v2916_v63, %v2875_v22  ;;  %v2957_v2 = vpop.f32.mrf.mxu0 }
 0x453   : > { %v2958_v13 = vadd.f32 %v2957_v2, %v2917_v21 }
 0x455   : > { %v8002_v46 = vadd.f32 %v2998_v23, %v2958_v13 }
 0x457   : > { %v3001_v19 = vpop.f32.mrf.mxu2 }
 0x458   : > { %v2878_v41 = vpop.f32.mrf.mxu1  ;;  %v2925_v45 = vpop.f32.mrf.mxu3 }
 0x459   : > { %v2920_v26 = vadd.f32 %v2919_v5, %v2878_v41  ;;  %v2960_v47 = vpop.f32.mrf.mxu0 }
 0x45b   : > { %v2961_v11 = vadd.f32 %v2960_v47, %v2920_v26 }
 0x45d   : > { %v8004_v10 = vadd.f32 %v3001_v19, %v2961_v11 }
 0x45f   : > { %v3004_v49 = vpop.f32.mrf.mxu2 }
 0x460   : > { %v2881_v20 = vpop.f32.mrf.mxu1  ;;  %v2928_v51 = vpop.f32.mrf.mxu3 }
 0x461   : > { %v2923_v53 = vadd.f32 %v2922_v62, %v2881_v20  ;;  %v2963_v27 = vpop.f32.mrf.mxu0 }
 0x463   : > { %v2964_v4 = vadd.f32 %v2963_v27, %v2923_v53 }
 0x465   : > { %v8006_v18 = vadd.f32 %v3004_v49, %v2964_v4 }
 0x467   : > { %v3007_v35 = vpop.f32.mrf.mxu2 }
 0x468   : > { %v2884_v40 = vpop.f32.mrf.mxu1  ;;  %v2931_v16 = vpop.f32.mrf.mxu3 }
 0x469   : > { %v2926_v61 = vadd.f32 %v2925_v45, %v2884_v40  ;;  %v2966_v38 = vpop.f32.mrf.mxu0 }
 0x46b   : > { %v2967_v8 = vadd.f32 %v2966_v38, %v2926_v61 }
 0x46d   : > { %v3008_v32 = vadd.f32 %v3007_v35, %v2967_v8 }
 0x46f   : > { %v3010_v14 = vpop.f32.mrf.mxu2 }
 0x470   : > { %v2887_v37 = vpop.f32.mrf.mxu1  ;;  %v2934_v3 = vpop.f32.mrf.mxu3 }
 0x471   : > { %v2929_v6 = vadd.f32 %v2928_v51, %v2887_v37  ;;  %v2969_v55 = vpop.f32.mrf.mxu0 }
 0x473   : > { %v2970_v9 = vadd.f32 %v2969_v55, %v2929_v6 }
 0x475   : > { %v3011_v54 = vadd.f32 %v3010_v14, %v2970_v9 }
 0x477   : > { %v3013_v33 = vpop.f32.mrf.mxu2 }
 0x478   : > { %v2890_v36 = vpop.f32.mrf.mxu1  ;;  %v3077_v59 = vpop.f32.mrf.mxu3 }
 0x479   : > { %v2932_v31 = vadd.f32 %v2931_v16, %v2890_v36  ;;  %v2972_v43 = vpop.f32.mrf.mxu0 }
 0x47b   : > { %v2973_v24 = vadd.f32 %v2972_v43, %v2932_v31 }
 0x47d   : > { %v3014_v17 = vadd.f32 %v3013_v33, %v2973_v24 }
 0x47f   : > { %v3016_v0 = vpop.f32.mrf.mxu2 }
 0x480   : > { %v2893_v50 = vpop.f32.mrf.mxu1  ;;  %v3080_v58 = vpop.f32.mrf.mxu3 }
 0x481   : > { %v2975_v28 = vpop.f32.mrf.mxu0  ;;  %v2935_v41 = vadd.f32 %v2934_v3, %v2893_v50 }
 0x483   : > { %v2976_v11 = vadd.f32 %v2975_v28, %v2935_v41 }
 0x485   : > { %v3017_v20 = vadd.f32 %v3016_v0, %v2976_v11 }
 0x488   : > { %v3036_v44 = vpop.f32.mrf.mxu1  ;;  %v3083_v42 = vpop.f32.mrf.mxu3 }
 0x489   : > { %v3037_v12 = vadd.f32 %v3036_v44, %v2996_v56 }
 0x48b   : > { %v3078_v63 = vadd.f32 %v3077_v59, %v3037_v12 }
 0x48c   : > { %v3118_v48 = vpop.f32.mrf.mxu0 }
 0x48d   : > { %v3119_v60 = vadd.f32 %v3118_v48, %v3078_v63  ;;  %v3185_v48 = vld [vmem:[%s8087_s5 + $0x10] sm:$0xff] }
 0x490   : > { %v3039_v1 = vpop.f32.mrf.mxu1  ;;  %v3086_v5 = vpop.f32.mrf.mxu3 }
 0x491   : > { %v3040_v43 = vadd.f32 %v3039_v1, %v8002_v46  ;;  %v3183_v46 = vld [vmem:[%s8087_s5] sm:$0xff] }
 0x492   : > { %v3159_v39 = vpop.f32.mrf.mxu2  ;;  %v3187_v1 = vld [vmem:[%s8087_s5 + $0x20] sm:$0xff] }
 0x493   : > { %v8008_v29 = vadd.f32 %v3159_v39, %v3119_v60  ;;  %v3081_v50 = vadd.f32 %v3080_v58, %v3040_v43  ;;  %v3184_v58 = vld [vmem:[%s8087_s5 + $0x8] sm:$0xff]  ;;  %v3186_v60 = vld [vmem:[%s8087_s5 + $0x18] sm:$0xff]  ;;  %v3189_v39 = vld [vmem:[%s8087_s5 + $0x30] sm:$0xff] }
 0x494   : > { %v3121_v34 = vpop.f32.mrf.mxu0 }
 0x498   : > { %v3042_v15 = vpop.f32.mrf.mxu1  ;;  %v3089_v23 = vpop.f32.mrf.mxu3 }
 0x499   : > { %v3043_v9 = vadd.f32 %v3042_v15, %v8004_v10  ;;  %v3122_v10 = vadd.f32 %v3121_v34, %v3081_v50 }
 0x49b   : > { %v3162_v30 = vpop.f32.mrf.mxu2 }
 0x49c   : > { %v3124_v52 = vpop.f32.mrf.mxu0  ;;  %v3163_v63 = vadd.f32 %v3162_v30, %v3122_v10 }
 0x4a0   : > { %v3045_v7 = vpop.f32.mrf.mxu1  ;;  %v3092_v2 = vpop.f32.mrf.mxu3 }
 0x4a1   : > { %v3046_v37 = vadd.f32 %v3045_v7, %v8006_v18 }
 0x4a3   : > { %v3165_v57 = vpop.f32.mrf.mxu2  ;;  %v3087_v24 = vadd.f32 %v3086_v5, %v3046_v37 }
 0x4a4   : > { %v3127_v25 = vpop.f32.mrf.mxu0 }
 0x4a5   : > { %v3128_v18 = vadd.f32 %v3127_v25, %v3087_v24  ;;  %v3232_v25 = vpop.permute.xlu0 %3231 }
 0x4a8   : > { %v3048_v22 = vpop.f32.mrf.mxu1  ;;  %v3095_v26 = vpop.f32.mrf.mxu3 }
 0x4a9   : > { %v3049_v16 = vadd.f32 %v3048_v22, %v3008_v32  ;;  %v3227_v22 = vpop.permute.xlu1 %3226 }
 0x4ab   : > { %v3168_v56 = vpop.f32.mrf.mxu2  ;;  %v3090_v3 = vadd.f32 %v3089_v23, %v3049_v16 }
 0x4ac   : > { %v3130_v62 = vpop.f32.mrf.mxu0  ;;  %v3169_v12 = vadd.f32 %v3168_v56, %v3128_v18 }
 0x4ad   : > { %v3131_v59 = vadd.f32 %v3130_v62, %v3090_v3 }
 0x4b0   : > { %v3051_v21 = vpop.f32.mrf.mxu1  ;;  %v3098_v35 = vpop.f32.mrf.mxu3 }
 0x4b1   : > { %v3052_v40 = vadd.f32 %v3051_v21, %v3011_v54  ;;  %v3084_v54 = vadd.f32 %v3083_v42, %v3043_v9  ;;  %v3188_v42 = vld [vmem:[%s8087_s5 + $0x28] sm:$0xff] }
 0x4b3   : > { %v3171_v13 = vpop.f32.mrf.mxu2  ;;  %v3093_v6 = vadd.f32 %v3092_v2, %v3052_v40  ;;  %v3125_v44 = vadd.f32 %v3124_v52, %v3084_v54 }
 0x4b4   : > { %v3133_v19 = vpop.f32.mrf.mxu0  ;;  %v3172_v28 = vadd.f32 %v3171_v13, %v3131_v59  ;;  %v3217_v13 = vpop.permute.xlu0 %3216 }
 0x4b5   : > { %v3134_v33 = vadd.f32 %v3133_v19, %v3093_v6  ;;  %v3166_v0 = vadd.f32 %v3165_v57, %v3125_v44  ;;  %v3237_v57 = vpop.permute.xlu2 %3236 }
 0x4b8   : > { %v3054_v45 = vpop.f32.mrf.mxu1 }
 0x4b9   : > { %v3055_v4 = vadd.f32 %v3054_v45, %v3014_v17 }
 0x4bb   : > { %v3174_v47 = vpop.f32.mrf.mxu2  ;;  %v3096_v8 = vadd.f32 %v3095_v26, %v3055_v4 }
 0x4bc   : > { %v3136_v49 = vpop.f32.mrf.mxu0  ;;  %v3175_v32 = vadd.f32 %v3174_v47, %v3134_v33 }
 0x4bd   : > { %v3137_v36 = vadd.f32 %v3136_v49, %v3096_v8  ;;  %v3222_v56 = vpop.permute.xlu2 %3221  ;;  %v3212_v49 = vpop.permute.xlu1 %3211  ;;  %v3312_v8 = vld [vmem:[%s8089_s7] sm:$0xf] }
 0x4c0   : > { %v3057_v53 = vpop.f32.mrf.mxu1 }
 0x4c1   : > { %v3058_v51 = vadd.f32 %v3057_v53, %v3017_v20 }
 0x4c3   : > { %v3177_v27 = vpop.f32.mrf.mxu2  ;;  %v3099_v61 = vadd.f32 %v3098_v35, %v3058_v51  ;;  %v3202_v35 = vpop.permute.xlu0 %3201 }
 0x4c4   : > { %v3139_v38 = vpop.f32.mrf.mxu0  ;;  %v3178_v17 = vadd.f32 %v3177_v27, %v3137_v36 }
 0x4c5   : > { %v3140_v55 = vadd.f32 %v3139_v38, %v3099_v61  ;;  %v3207_v51 = vpop.permute.xlu2 %3206  ;;  %v3317_v37 = vpop.permute.xlu1 %3316 }
 0x4cb   : > { %v3180_v14 = vpop.f32.mrf.mxu2 }
 0x4cc   : > { %v3181_v31 = vadd.f32 %v3180_v14, %v3140_v55 }
 0x4ce   : > { %3271 = vmatpush.msra.mxu1 %v3181_v31 }
 0x4d0   : > { %3272 = vmatpush.msra.mxu1 %v3178_v17 }
 0x4d2   : > { %3273 = vmatpush.msra.mxu1 %v3175_v32 }
 0x4d4   : > { %3274 = vmatpush.msra.mxu1 %v3172_v28 }
 0x4d6   : > { %3275 = vmatpush.msra.mxu1 %v3169_v12 }
 0x4d8   : > { %3276 = vmatpush.msra.mxu1 %v3166_v0 }
 0x4da   : > { %3277 = vmatpush.msra.mxu1 %v3163_v63 }
 0x4dc   : > { %3278 = vmatpush.msra.mxu1 %v8008_v29  ;;  %v3190_v29 = vld [vmem:[%s8087_s5 + $0x38] sm:$0xff] }
 0x4dd   : > { %3890 = vmatmul.msk.f32.vlgmr.msra.gmra.mxu1 %vm1918_vm15, %v3183_v46 }
 0x4e5   : > { %3891 = vmatmul.msk.f32.gmra.mxu1 %vm1918_vm15, %v3184_v58 }
 0x4ed   : > { %3892 = vmatmul.msk.f32.gmra.mxu1 %vm1918_vm15, %v3185_v48 }
 0x4f5   : > { %3893 = vmatmul.msk.f32.gmra.mxu1 %vm1918_vm15, %v3186_v60 }
 0x4fd   : > { %3894 = vmatmul.msk.f32.gmra.mxu1 %vm1918_vm15, %v3187_v1 }
 0x505   : > { %3895 = vmatmul.msk.f32.gmra.mxu1 %vm1918_vm15, %v3188_v42 }
 0x50d   : > { %3896 = vmatmul.msk.f32.gmra.mxu1 %vm1918_vm15, %v3189_v39 }
 0x515   : > { %3897 = vmatmul.msk.f32.gmra.mxu1 %vm1918_vm15, %v3190_v29 }
 0x55a   : > { %v3280_v34 = vpop.f32.mrf.mxu1 }
 0x55b   : > { %v3281_v40 = vadd.f32 %v3280_v34, %v3202_v35 }
 0x55d   : > { %v3304_v16 = vmax.f32 %v3281_v40, 0.0 }
 0x562   : > { %v3283_v15 = vpop.f32.mrf.mxu1 }
 0x563   : > { %v3284_v27 = vadd.f32 %v3283_v15, %v3207_v51 }
 0x565   : > { %v3305_v38 = vmax.f32 %v3284_v27, 0.0 }
 0x56a   : > { %v3286_v30 = vpop.f32.mrf.mxu1 }
 0x56b   : > { %v3287_v20 = vadd.f32 %v3286_v30, %v3212_v49 }
 0x56d   : > { %v3306_v61 = vmax.f32 %v3287_v20, 0.0 }
 0x572   : > { %v3289_v52 = vpop.f32.mrf.mxu1 }
 0x573   : > { %v3290_v47 = vadd.f32 %v3289_v52, %v3217_v13 }
 0x575   : > { %v3307_v4 = vmax.f32 %v3290_v47, 0.0 }
 0x57a   : > { %v3292_v5 = vpop.f32.mrf.mxu1 }
 0x57b   : > { %v3293_v45 = vadd.f32 %v3292_v5, %v3222_v56 }
 0x57d   : > { %v3308_v53 = vmax.f32 %v3293_v45, 0.0 }
 0x582   : > { %v3295_v7 = vpop.f32.mrf.mxu1 }
 0x583   : > { %v3296_v19 = vadd.f32 %v3295_v7, %v3227_v22 }
 0x585   : > { %v3309_v11 = vmax.f32 %v3296_v19, 0.0 }
 0x58a   : > { %v3298_v23 = vpop.f32.mrf.mxu1 }
 0x58b   : > { %v3299_v21 = vadd.f32 %v3298_v23, %v3232_v25 }
 0x58d   : > { %v3310_v26 = vmax.f32 %v3299_v21, 0.0 }
 0x592   : > { %v3301_v62 = vpop.f32.mrf.mxu1 }
 0x593   : > { %v3302_v2 = vadd.f32 %v3301_v62, %v3237_v57 }
 0x595   : > { %v3311_v41 = vmax.f32 %v3302_v2, 0.0 }
 0x597   : > { %3330 = vmatpush.msra.mxu0 %v3311_v41 }
 0x599   : > { %3331 = vmatpush.msra.mxu0 %v3310_v26 }
 0x59b   : > { %3332 = vmatpush.msra.mxu0 %v3309_v11 }
 0x59d   : > { %3333 = vmatpush.msra.mxu0 %v3308_v53 }
 0x59f   : > { %3334 = vmatpush.msra.mxu0 %v3307_v4 }
 0x5a1   : > { %3335 = vmatpush.msra.mxu0 %v3306_v61 }
 0x5a3   : > { %3336 = vmatpush.msra.mxu0 %v3305_v38 }
 0x5a5   : > { %3337 = vmatpush.msra.mxu0 %v3304_v16 }
 0x5a6   : > { %3898 = vmatmul.msk.f32.vlgmr.msra.gmra.mxu0 %vm1918_vm15, %v3312_v8 }
 0x623   : > { %v3339_v6 = vpop.f32.mrf.mxu0 }
 0x624   : > { %v3340_v55 = vadd.f32 %v3339_v6, %v3317_v37 }
 0x626   : > { %3343 = vst.msk [vmem:[%s350_s25] sm:$0xf] %vm3342_vm7, %v3340_v55 }
 0x627   : > { %3999 = shalt.err (!%p3996_p3)
}
 0x628   : > { %3911 = dma.vmem_to_hbm [thread:$0]  (%p4132_p5), %s3358_s27, 64, %s3360_s18, %s3345_s28  }
 0x629 PF: > { %p3917_p4 = scmp.ge.s32.totalorder %s4034_s16, 2  ;;  %s3371_s30 = sand.u32 1, %s4022_s13  }
 0x62a   : > { %s3372_s21 = scalar_lea.sflag [#allocation3], %s3371_s30 }
 0x62b   : > { %p3914_p7 = pnand %p3917_p4, %p4136_p6 }
 0x62d   : > { %p3915_p8 = pneg %p3914_p7 }
 0x62f   : > { %4017 = dma.done.wait (%p3915_p8), %s3372_s21, 64  }
 0x630   : > { %4019 = vsyncadd (%p3915_p8), %s3372_s21, 4294967232  ;;  %p20_p9 = scmp.ge.s32.totalorder %s4119_s19, 4   ;;  %s8754_s13 = smov %s4026_s14 }
 0x631   : > { %s8755_s14 = smov %s4030_s15  ;;  %s8756_s15 = smov %s4130_s22 }
 0x632   : > { %s8757_s16 = smov %s4119_s19  ;;  %22 = sbr.rel (!%p20_p9) target bundleno = 5 (0x5), region = 97 }
 0x637   :  { %3378 = vsyncpa [#allocation3], 1 }
 0x638   :  { %3380 = vsyncpa [#allocation3 + $0x1], 1 }

</bundles_post_ra>
